<compile_context>
chip_gen: v7x
topology: tpu7x:2x2x1
jax: 0.10.0
libtpu: 0.0.40
codegen_flags: <defaults>
</compile_context>

<pallas_src>
import functools

import jax
import jax.numpy as jnp
import numpy as np
from jax.experimental import pallas as pl
from jax.experimental.pallas import tpu as pltpu


def _round_up(x, m):
    return ((x + m - 1) // m) * m


# ------------------------- fused Pallas kernel -------------------------

def _fused_kernel(x_ref, wconv_ref, bconv_ref, mask_ref, wfc_ref, bfc_ref,
                  o_ref, acc_ref, *, tile_b, l_pad, f_max, use_roll):
    # x_ref:     (tile_b * l_pad, D)        padded embeddings, batch-flattened,
    #                                       already in compute dtype
    # wconv_ref: (f_max, D, sum_F_pad)      conv taps, REVERSED tap order
    #                                       (slot m holds tap j = f_max-1-m)
    # bconv_ref: (1, sum_F_pad)             conv biases (f32)
    # mask_ref:  (l_pad, sum_F_pad)         1.0 at valid positions, expressed
    #                                       in the down-shifted (by f_max-1) frame
    # wfc_ref:   (sum_F_pad, C_pad)         FC weight (f32), zero rows for pads
    # bfc_ref:   (1, C_pad)
    # o_ref:     (tile_b, C_pad)            lane-dense logits tile (f32)
    # acc_ref:   (tile_b * l_pad, sum_F_pad) f32 VMEM accumulator scratch
    x = x_ref[...]                                          # compute dtype
    sum_f_pad = acc_ref.shape[-1]

    for m in range(f_max):                                  # static unroll (<=5)
        # one tall MXU matmul over every (batch, position) row
        t = jnp.dot(x, wconv_ref[m],
                    preferred_element_type=jnp.float32)     # (tile_b*l_pad, sum_F_pad)
        if m:
            # shift the tap-m contribution DOWN by m rows; rows that wrap
            # across batch boundaries are all masked below.
            if use_roll:
                t = pltpu.roll(t, shift=m, axis=0)          # XLU rotate (no relayout)
            else:
                t = jnp.roll(t, m, axis=0)                  # fallback: slice+concat
            acc_ref[...] += t
        else:
            acc_ref[...] = t

    # conv bias (hoisted, added once) + ReLU, then zero invalid positions.
    # NOTE: masking with 0 AFTER ReLU is only correct because ReLU >= 0, so a
    # masked 0 can never beat the true max.  Do not swap ReLU for GELU/tanh.
    r = jnp.maximum(acc_ref[...] + bconv_ref[...], 0.0)
    # l_pad % 8 == 0 -> splitting the row dim is sublane-tile aligned (free).
    r3 = r.reshape(tile_b, l_pad, sum_f_pad) * mask_ref[...]
    pooled = jnp.max(r3, axis=1)                            # (tile_b, sum_F_pad), f32

    # FC stays in f32 (pooled is already f32; this matmul is tiny).
    o_ref[...] = (jnp.dot(pooled, wfc_ref[...],
                          preferred_element_type=jnp.float32) + bfc_ref[...])


# ------------------------- tiling / VMEM planning -------------------------

def _vmem_plan():
    """Generation-aware (tile budget, vmem_limit_bytes)."""
    cap = 64 * 1024 * 1024                 # conservative fallback (v7x-sized)
    try:
        cap = int(pltpu.get_tpu_info().vmem_capacity_bytes)
    except Exception:
        pass
    if cap >= 96 * 1024 * 1024:            # v5e / v6e: 128 MiB VMEM per core
        return 96 * 1024 * 1024, 110 * 1024 * 1024
    return 44 * 1024 * 1024, 52 * 1024 * 1024   # v7x: 64 MiB per TensorCore


def _choose_tile_b(batch, l_pad, d, sum_f_pad, c_pad, comp_bytes, const_bytes,
                   budget_bytes):
    tile = min(512, _round_up(max(batch, 1), 8))

    def vmem_est(t):
        return (2 * t * l_pad * d * comp_bytes        # input tile (double-buffered)
                + 2 * t * c_pad * 4                   # logits tile (double-buffered)
                + t * l_pad * sum_f_pad * 4           # f32 accumulator scratch
                + 2 * t * l_pad * sum_f_pad * 4       # matmul result + rolled temp
                + const_bytes)                        # weight/bias/mask blocks

    while tile > 8 and vmem_est(tile) > budget_bytes:
        tile = max(8, _round_up(tile // 2, 8))

    # keep >= 4 grid steps (2 per TensorCore on dual-TC chips) when the batch
    # allows it; for tiny batches shrink to the 8-row minimum instead.
    four_step_tile = max(8, _round_up(pl.cdiv(batch, 4), 8))
    return max(8, min(tile, four_step_tile))


# ------------------------- pallas_call wrapper -------------------------

def fused_forward(x2d, wconv, bconv, mask, wfc, bfc, *, batch, tile_b, l_pad,
                  f_max, c_pad, vmem_limit_bytes, use_roll, single_buffer_consts):
    n_rows, d = x2d.shape
    b_pad = n_rows // l_pad
    sum_f_pad = wconv.shape[2]

    def const_spec(shape):
        idx = (lambda b: (0, 0, 0)) if len(shape) == 3 else (lambda b: (0, 0))
        if single_buffer_consts:
            # constants: no need to double-buffer (index never changes)
            return pl.BlockSpec(shape, idx, pipeline_mode=pl.Buffered(1))
        return pl.BlockSpec(shape, idx)

    kernel = functools.partial(_fused_kernel, tile_b=tile_b, l_pad=l_pad,
                               f_max=f_max, use_roll=use_roll)

    out = pl.pallas_call(
        kernel,
        out_shape=jax.ShapeDtypeStruct((b_pad, c_pad), jnp.float32),
        grid=(b_pad // tile_b,),
        in_specs=[
            pl.BlockSpec((tile_b * l_pad, d), lambda b: (b, 0)),
            const_spec(wconv.shape),
            const_spec(bconv.shape),
            const_spec(mask.shape),
            const_spec(wfc.shape),
            const_spec(bfc.shape),
        ],
        out_specs=pl.BlockSpec((tile_b, c_pad), lambda b: (b, 0)),
        scratch_shapes=[pltpu.VMEM((tile_b * l_pad, sum_f_pad), jnp.float32)],
        compiler_params=pltpu.CompilerParams(
            dimension_semantics=("parallel",),       # batch tiles -> megacore/2 TCs
            vmem_limit_bytes=vmem_limit_bytes,
        ),
    )(x2d, wconv, bconv, mask, wfc, bfc)
    return out[:batch]


# ------------------------- model (glue + params) -------------------------

def unfold_windows(emb, f):
    # reference-path helper: (B, L, D) -> (B, L-f+1, f*D)
    B, L, D = emb.shape
    n = L - f + 1
    idx = jnp.arange(n)[:, None] + jnp.arange(f)[None, :]
    return emb[:, idx, :].reshape(B, n, f * D)


class CNNPallas:
    """JAX/Pallas port of the PyTorch CNN module (single channel, eval mode)."""

    def __init__(self, key, *, MODEL, MAX_SENT_LEN, WORD_DIM, VOCAB_SIZE,
                 CLASS_SIZE, FILTERS, FILTER_NUM, DROPOUT_PROB, WV_MATRIX,
                 compute_dtype=jnp.float32):
        assert len(FILTERS) == len(FILTER_NUM)
        # TODO(synk): 'multichannel' second embedding channel not implemented.
        assert MODEL in ("rand", "static", "non-static")
        self.MAX_SENT_LEN = MAX_SENT_LEN
        self.WORD_DIM = WORD_DIM
        self.CLASS_SIZE = CLASS_SIZE
        self.FILTERS = list(FILTERS)
        self.FILTER_NUM = list(FILTER_NUM)
        self.DROPOUT_PROB = DROPOUT_PROB     # eval mode -> dropout is identity
        self.VOCAB_SIZE = VOCAB_SIZE

        self.emb_w = jnp.asarray(WV_MATRIX, dtype=jnp.float32)
        assert self.emb_w.shape == (VOCAB_SIZE + 2, WORD_DIM)

        keys = jax.random.split(key, 2 * len(FILTERS) + 2)
        self.conv_ws, self.conv_bs = [], []
        for i, (f, fn) in enumerate(zip(FILTERS, FILTER_NUM)):
            k = f * WORD_DIM
            self.conv_ws.append(
                0.1 * jax.random.normal(keys[2 * i], (k, fn), dtype=jnp.float32))
            self.conv_bs.append(
                0.1 * jax.random.normal(keys[2 * i + 1], (1, fn), dtype=jnp.float32))

        sum_f = sum(FILTER_NUM)
        self.fc_w = 0.1 * jax.random.normal(keys[-2], (sum_f, CLASS_SIZE),
                                            dtype=jnp.float32)
        self.fc_b = 0.1 * jax.random.normal(keys[-1], (1, CLASS_SIZE),
                                            dtype=jnp.float32)

        # ---- static geometry for the fused kernel ----
        L, D = MAX_SENT_LEN, WORD_DIM
        self.f_max = max(FILTERS)
        self.n_pos = L - min(FILTERS) + 1                        # widest output len
        self.l_pad = _round_up(self.n_pos + self.f_max - 1, 8)   # sublane aligned
        self.sum_f = sum_f
        self.sum_f_pad = _round_up(max(sum_f, 128), 128)         # lane-dense filters
        self.c_pad = _round_up(max(CLASS_SIZE, 128), 128)        # lane-dense logits
        self.pad_id = VOCAB_SIZE + 2                             # extra all-zero row

        # f32 kernel constants (dtype-independent)
        mask = np.zeros((self.l_pad, self.sum_f_pad), np.float32)
        off = 0
        for f, fn in zip(FILTERS, FILTER_NUM):
            mask[self.f_max - 1:self.f_max - 1 + (L - f + 1), off:off + fn] = 1.0
            off += fn
        self.mask = jnp.asarray(mask)                            # (l_pad, sum_F_pad)

        bconv = np.zeros((1, self.sum_f_pad), np.float32)
        bconv[0, :sum_f] = np.concatenate([np.asarray(b)[0] for b in self.conv_bs])
        self.bconv = jnp.asarray(bconv)

        self.wfc = jnp.zeros((self.sum_f_pad, self.c_pad), jnp.float32
                             ).at[:sum_f, :CLASS_SIZE].set(self.fc_w)
        self.bfc = jnp.zeros((1, self.c_pad), jnp.float32
                             ).at[:, :CLASS_SIZE].set(self.fc_b)

        self._kernel_cfg = None   # (use_roll, single_buffer_consts) that compiled
        self.set_compute_dtype(compute_dtype)

    def set_compute_dtype(self, compute_dtype):
        """(Re)build the compute-dtype copies of the matmul inputs once
        (no .astype inside the kernel at every grid step)."""
        self.compute_dtype = compute_dtype
        D = self.WORD_DIM
        # embedding table + one appended all-zero row used for padding
        emb_tab = np.zeros((self.emb_w.shape[0] + 1, D), np.float32)
        emb_tab[:self.emb_w.shape[0]] = np.asarray(self.emb_w)
        self.emb_table_k = jnp.asarray(emb_tab, dtype=compute_dtype)
        # conv taps stacked in REVERSED order: slot m holds tap j = f_max-1-m,
        # so the kernel only needs small positive down-rolls (0..f_max-1).
        wconv = np.zeros((self.f_max, D, self.sum_f_pad), np.float32)
        off = 0
        for f, fn, w in zip(self.FILTERS, self.FILTER_NUM, self.conv_ws):
            w3 = np.asarray(w).reshape(f, D, fn)
            for j in range(f):
                wconv[self.f_max - 1 - j, :, off:off + fn] = w3[j]
            off += fn
        self.wconv_k = jnp.asarray(wconv, dtype=compute_dtype)
        self._kernel_cfg = None

    def __call__(self, inp):
        # inp: (B, MAX_SENT_LEN) int32 token ids
        B = inp.shape[0]
        L, D = self.MAX_SENT_LEN, self.WORD_DIM

        budget, vmem_limit = _vmem_plan()
        comp_bytes = np.dtype(self.compute_dtype).itemsize
        const_bytes = 2 * sum(int(a.size) * a.dtype.itemsize
                              for a in (self.wconv_k, self.bconv, self.mask,
                                        self.wfc, self.bfc))
        tile_b = _choose_tile_b(B, self.l_pad, D, self.sum_f_pad, self.c_pad,
                                comp_bytes, const_bytes, budget)
        b_pad = _round_up(max(B, tile_b), tile_b)

        # Padded gather instead of gather + jnp.pad: the pad id maps to an
        # all-zero embedding row, so jnp.take directly yields the padded
        # (b_pad, l_pad, D) tensor with no extra HBM read/write pass.
        ids = jnp.full((b_pad, self.l_pad), self.pad_id, dtype=jnp.int32)
        ids = ids.at[:B, :L].set(inp)
        x2d = jnp.take(self.emb_table_k, ids, axis=0
                       ).reshape(b_pad * self.l_pad, D)
        # TODO(synk): the embedding gather could be fused into the kernel via
        # PrefetchScalarGridSpec ids in SMEM + manual DMA gather from HBM.
        # TODO(synk): optional int8 weight path for v5e/v6e not implemented.

        configs = ([self._kernel_cfg] if self._kernel_cfg is not None
                   else [(True, True), (True, False), (False, False)])
        last_err = None
        for use_roll, single_buf in configs:
            try:
                out = fused_forward(
                    x2d, self.wconv_k, self.bconv, self.mask, self.wfc, self.bfc,
                    batch=B, tile_b=tile_b, l_pad=self.l_pad, f_max=self.f_max,
                    c_pad=self.c_pad, vmem_limit_bytes=vmem_limit,
                    use_roll=use_roll, single_buffer_consts=single_buf)
                out = jax.block_until_ready(out)
                self._kernel_cfg = (use_roll, single_buf)
                # F.dropout with training=False is identity; no softmax in forward.
                return out[:, :self.CLASS_SIZE]                 # (B, CLASS_SIZE)
            except Exception as e:   # e.g. Buffered(1)/roll unsupported -> fallback
                last_err = e
        raise last_err

    # pure-JAX reference of the same math, for correctness checking
    def reference(self, inp):
        emb = jnp.take(self.emb_w, inp, axis=0)
        feats = []
        for f, w, b in zip(self.FILTERS, self.conv_ws, self.conv_bs):
            windows = unfold_windows(emb, f)
            s = jnp.einsum("bnk,kf->bnf", windows, w) + b[None, :, :]
            feats.append(jnp.max(jnp.maximum(s, 0.0), axis=1))
        x = jnp.concatenate(feats, axis=1)
        return jnp.dot(x, self.fc_w) + self.fc_b


# ------------------------- main -------------------------

if __name__ == "__main__":
    key = jax.random.PRNGKey(0)
    k_wv, k_inp, k_params = jax.random.split(key, 3)

    BATCH_SIZE = 2
    MAX_SENT_LEN = 8
    WORD_DIM = 16
    VOCAB_SIZE = 20
    CLASS_SIZE = 4
    FILTERS = [3, 4, 5]
    FILTER_NUM = [8, 8, 8]

    WV_MATRIX = jax.random.normal(k_wv, (VOCAB_SIZE + 2, WORD_DIM),
                                  dtype=jnp.float32)

    model = CNNPallas(
        k_params,
        MODEL="static",
        MAX_SENT_LEN=MAX_SENT_LEN,
        WORD_DIM=WORD_DIM,
        VOCAB_SIZE=VOCAB_SIZE,
        CLASS_SIZE=CLASS_SIZE,
        FILTERS=FILTERS,
        FILTER_NUM=FILTER_NUM,
        DROPOUT_PROB=0.5,
        WV_MATRIX=WV_MATRIX,
        compute_dtype=jnp.float32,
    )

    inp = jax.random.randint(k_inp, (BATCH_SIZE, MAX_SENT_LEN), 0,
                             VOCAB_SIZE + 2, dtype=jnp.int32)

    ref = jax.block_until_ready(model.reference(inp))

    # f32 matmul path: exact-ish vs reference
    out = jax.block_until_ready(model(inp))
    assert out.shape == (BATCH_SIZE, CLASS_SIZE)
    np.testing.assert_allclose(np.asarray(out), np.asarray(ref),
                               rtol=1e-5, atol=1e-5)

    # bf16 matmul-input path (v6e/v7x MXU); f32 accumulation + f32 FC.
    model.set_compute_dtype(jnp.bfloat16)
    out_bf16 = jax.block_until_ready(model(inp))
    np.testing.assert_allclose(np.asarray(out_bf16), np.asarray(ref),
                               rtol=5e-2, atol=5e-2)

    print("KERNEL_OK")
</pallas_src>

<mosaic_0001>
module attributes {stable_mosaic.version = 11 : i64} {
  func.func @_fused_kernel(%arg0: i32, %arg1: memref<128x16xf32, #tpu.memory_space<vmem>>, %arg2: memref<5x16x128xf32, #tpu.memory_space<vmem>>, %arg3: memref<1x128xf32, #tpu.memory_space<vmem>>, %arg4: memref<16x128xf32, #tpu.memory_space<vmem>>, %arg5: memref<128x128xf32, #tpu.memory_space<vmem>>, %arg6: memref<1x128xf32, #tpu.memory_space<vmem>>, %arg7: memref<8x128xf32, #tpu.memory_space<vmem>>, %arg8: memref<128x128xf32, #tpu.memory_space<vmem>>) attributes {dimension_semantics = [#tpu.dimension_semantics<parallel>], iteration_bounds = array<i64: 1>, scalar_prefetch = 0 : i64, scratch_operands = 1 : i64, tpu.core_type = #tpu.core_type<tc>, window_params = [{transform_indices = @transform_0, window_bounds = array<i64: 128, 16>}, {pipeline_mode = #tpu.pipeline_mode<synchronous>, transform_indices = @transform_1, window_bounds = array<i64: 5, 16, 128>}, {pipeline_mode = #tpu.pipeline_mode<synchronous>, transform_indices = @transform_2, window_bounds = array<i64: 1, 128>}, {pipeline_mode = #tpu.pipeline_mode<synchronous>, transform_indices = @transform_3, window_bounds = array<i64: 16, 128>}, {pipeline_mode = #tpu.pipeline_mode<synchronous>, transform_indices = @transform_4, window_bounds = array<i64: 128, 128>}, {pipeline_mode = #tpu.pipeline_mode<synchronous>, transform_indices = @transform_5, window_bounds = array<i64: 1, 128>}, {transform_indices = @transform_6, window_bounds = array<i64: 8, 128>}]} {
    %c0 = arith.constant 0 : index
    %c0_0 = arith.constant 0 : index
    %0 = vector.load %arg1[%c0, %c0_0] : memref<128x16xf32, #tpu.memory_space<vmem>>, vector<128x16xf32>
    %c0_1 = arith.constant 0 : index
    %c0_2 = arith.constant 0 : index
    %c0_3 = arith.constant 0 : index
    %1 = vector.load %arg2[%c0_1, %c0_2, %c0_3] : memref<5x16x128xf32, #tpu.memory_space<vmem>>, vector<1x16x128xf32>
    %2 = vector.shape_cast %1 : vector<1x16x128xf32> to vector<16x128xf32>
    %cst = arith.constant dense<0.000000e+00> : vector<128x128xf32>
    %3 = tpu.matmul %0, %2, %cst {dimension_numbers = #tpu.dot_dimension_numbers<[1], [0], [0], [1], [0, 0, 1, 1], [], []>} : vector<128x16xf32>, vector<16x128xf32>, vector<128x128xf32> -> vector<128x128xf32>
    %c0_4 = arith.constant 0 : index
    %c0_5 = arith.constant 0 : index
    %4 = vector.load %arg8[%c0_4, %c0_5] : memref<128x128xf32, #tpu.memory_space<vmem>>, vector<128x128xf32>
    tpu.vector_store %arg8[%c0_4, %c0_5], %3 {strides = array<i32>} : memref<128x128xf32, #tpu.memory_space<vmem>>, vector<128x128xf32>,
    %c1 = arith.constant 1 : index
    %c0_6 = arith.constant 0 : index
    %c0_7 = arith.constant 0 : index
    %5 = vector.load %arg2[%c1, %c0_6, %c0_7] : memref<5x16x128xf32, #tpu.memory_space<vmem>>, vector<1x16x128xf32>
    %6 = vector.shape_cast %5 : vector<1x16x128xf32> to vector<16x128xf32>
    %cst_8 = arith.constant dense<0.000000e+00> : vector<128x128xf32>
    %7 = tpu.matmul %0, %6, %cst_8 {dimension_numbers = #tpu.dot_dimension_numbers<[1], [0], [0], [1], [0, 0, 1, 1], [], []>} : vector<128x16xf32>, vector<16x128xf32>, vector<128x128xf32> -> vector<128x128xf32>
    %c1_i32 = arith.constant 1 : i32
    %8 = tpu.dynamic_rotate %7 by %c1_i32 dim 0 : vector<128x128xf32>, i32 -> vector<128x128xf32>
    %c0_9 = arith.constant 0 : index
    %c0_10 = arith.constant 0 : index
    %9 = vector.load %arg8[%c0_9, %c0_10] : memref<128x128xf32, #tpu.memory_space<vmem>>, vector<128x128xf32>
    %10 = arith.addf %9, %8 : vector<128x128xf32>
    %c0_11 = arith.constant 0 : index
    %c0_12 = arith.constant 0 : index
    %11 = vector.load %arg8[%c0_11, %c0_12] : memref<128x128xf32, #tpu.memory_space<vmem>>, vector<128x128xf32>
    tpu.vector_store %arg8[%c0_11, %c0_12], %10 {strides = array<i32>} : memref<128x128xf32, #tpu.memory_space<vmem>>, vector<128x128xf32>,
    %c2 = arith.constant 2 : index
    %c0_13 = arith.constant 0 : index
    %c0_14 = arith.constant 0 : index
    %12 = vector.load %arg2[%c2, %c0_13, %c0_14] : memref<5x16x128xf32, #tpu.memory_space<vmem>>, vector<1x16x128xf32>
    %13 = vector.shape_cast %12 : vector<1x16x128xf32> to vector<16x128xf32>
    %cst_15 = arith.constant dense<0.000000e+00> : vector<128x128xf32>
    %14 = tpu.matmul %0, %13, %cst_15 {dimension_numbers = #tpu.dot_dimension_numbers<[1], [0], [0], [1], [0, 0, 1, 1], [], []>} : vector<128x16xf32>, vector<16x128xf32>, vector<128x128xf32> -> vector<128x128xf32>
    %c2_i32 = arith.constant 2 : i32
    %15 = tpu.dynamic_rotate %14 by %c2_i32 dim 0 : vector<128x128xf32>, i32 -> vector<128x128xf32>
    %c0_16 = arith.constant 0 : index
    %c0_17 = arith.constant 0 : index
    %16 = vector.load %arg8[%c0_16, %c0_17] : memref<128x128xf32, #tpu.memory_space<vmem>>, vector<128x128xf32>
    %17 = arith.addf %16, %15 : vector<128x128xf32>
    %c0_18 = arith.constant 0 : index
    %c0_19 = arith.constant 0 : index
    %18 = vector.load %arg8[%c0_18, %c0_19] : memref<128x128xf32, #tpu.memory_space<vmem>>, vector<128x128xf32>
    tpu.vector_store %arg8[%c0_18, %c0_19], %17 {strides = array<i32>} : memref<128x128xf32, #tpu.memory_space<vmem>>, vector<128x128xf32>,
    %c3 = arith.constant 3 : index
    %c0_20 = arith.constant 0 : index
    %c0_21 = arith.constant 0 : index
    %19 = vector.load %arg2[%c3, %c0_20, %c0_21] : memref<5x16x128xf32, #tpu.memory_space<vmem>>, vector<1x16x128xf32>
    %20 = vector.shape_cast %19 : vector<1x16x128xf32> to vector<16x128xf32>
    %cst_22 = arith.constant dense<0.000000e+00> : vector<128x128xf32>
    %21 = tpu.matmul %0, %20, %cst_22 {dimension_numbers = #tpu.dot_dimension_numbers<[1], [0], [0], [1], [0, 0, 1, 1], [], []>} : vector<128x16xf32>, vector<16x128xf32>, vector<128x128xf32> -> vector<128x128xf32>
    %c3_i32 = arith.constant 3 : i32
    %22 = tpu.dynamic_rotate %21 by %c3_i32 dim 0 : vector<128x128xf32>, i32 -> vector<128x128xf32>
    %c0_23 = arith.constant 0 : index
    %c0_24 = arith.constant 0 : index
    %23 = vector.load %arg8[%c0_23, %c0_24] : memref<128x128xf32, #tpu.memory_space<vmem>>, vector<128x128xf32>
    %24 = arith.addf %23, %22 : vector<128x128xf32>
    %c0_25 = arith.constant 0 : index
    %c0_26 = arith.constant 0 : index
    %25 = vector.load %arg8[%c0_25, %c0_26] : memref<128x128xf32, #tpu.memory_space<vmem>>, vector<128x128xf32>
    tpu.vector_store %arg8[%c0_25, %c0_26], %24 {strides = array<i32>} : memref<128x128xf32, #tpu.memory_space<vmem>>, vector<128x128xf32>,
    %c4 = arith.constant 4 : index
    %c0_27 = arith.constant 0 : index
    %c0_28 = arith.constant 0 : index
    %26 = vector.load %arg2[%c4, %c0_27, %c0_28] : memref<5x16x128xf32, #tpu.memory_space<vmem>>, vector<1x16x128xf32>
    %27 = vector.shape_cast %26 : vector<1x16x128xf32> to vector<16x128xf32>
    %cst_29 = arith.constant dense<0.000000e+00> : vector<128x128xf32>
    %28 = tpu.matmul %0, %27, %cst_29 {dimension_numbers = #tpu.dot_dimension_numbers<[1], [0], [0], [1], [0, 0, 1, 1], [], []>} : vector<128x16xf32>, vector<16x128xf32>, vector<128x128xf32> -> vector<128x128xf32>
    %c4_i32 = arith.constant 4 : i32
    %29 = tpu.dynamic_rotate %28 by %c4_i32 dim 0 : vector<128x128xf32>, i32 -> vector<128x128xf32>
    %c0_30 = arith.constant 0 : index
    %c0_31 = arith.constant 0 : index
    %30 = vector.load %arg8[%c0_30, %c0_31] : memref<128x128xf32, #tpu.memory_space<vmem>>, vector<128x128xf32>
    %31 = arith.addf %30, %29 : vector<128x128xf32>
    %c0_32 = arith.constant 0 : index
    %c0_33 = arith.constant 0 : index
    %32 = vector.load %arg8[%c0_32, %c0_33] : memref<128x128xf32, #tpu.memory_space<vmem>>, vector<128x128xf32>
    tpu.vector_store %arg8[%c0_32, %c0_33], %31 {strides = array<i32>} : memref<128x128xf32, #tpu.memory_space<vmem>>, vector<128x128xf32>,
    %c0_34 = arith.constant 0 : index
    %c0_35 = arith.constant 0 : index
    %33 = vector.load %arg8[%c0_34, %c0_35] : memref<128x128xf32, #tpu.memory_space<vmem>>, vector<128x128xf32>
    %c0_36 = arith.constant 0 : index
    %c0_37 = arith.constant 0 : index
    %34 = vector.load %arg3[%c0_36, %c0_37] : memref<1x128xf32, #tpu.memory_space<vmem>>, vector<1x128xf32>
    %35 = vector.broadcast %34 : vector<1x128xf32> to vector<128x128xf32>
    %36 = arith.addf %33, %35 : vector<128x128xf32>
    %cst_38 = arith.constant 0.000000e+00 : f32
    %37 = vector.broadcast %cst_38 : f32 to vector<128x128xf32>
    %38 = arith.maximumf %36, %37 : vector<128x128xf32>
    %39 = vector.shape_cast %38 : vector<128x128xf32> to vector<8x16x128xf32>
    %c0_39 = arith.constant 0 : index
    %c0_40 = arith.constant 0 : index
    %40 = vector.load %arg4[%c0_39, %c0_40] : memref<16x128xf32, #tpu.memory_space<vmem>>, vector<16x128xf32>
    %41 = vector.shape_cast %40 : vector<16x128xf32> to vector<1x16x128xf32>
    %42 = vector.broadcast %41 : vector<1x16x128xf32> to vector<8x16x128xf32>
    %43 = arith.mulf %39, %42 : vector<8x16x128xf32>
    %cst_41 = arith.constant dense<0xFF800000> : vector<8x128xf32>
    %44 = vector.multi_reduction <maximumf>, %43, %cst_41 [1] : vector<8x16x128xf32> to vector<8x128xf32>
    %c0_42 = arith.constant 0 : index
    %c0_43 = arith.constant 0 : index
    %45 = vector.load %arg5[%c0_42, %c0_43] : memref<128x128xf32, #tpu.memory_space<vmem>>, vector<128x128xf32>
    %cst_44 = arith.constant dense<0.000000e+00> : vector<8x128xf32>
    %46 = tpu.matmul %44, %45, %cst_44 {dimension_numbers = #tpu.dot_dimension_numbers<[1], [0], [0], [1], [0, 0, 1, 1], [], []>} : vector<8x128xf32>, vector<128x128xf32>, vector<8x128xf32> -> vector<8x128xf32>
    %c0_45 = arith.constant 0 : index
    %c0_46 = arith.constant 0 : index
    %47 = vector.load %arg6[%c0_45, %c0_46] : memref<1x128xf32, #tpu.memory_space<vmem>>, vector<1x128xf32>
    %48 = vector.broadcast %47 : vector<1x128xf32> to vector<8x128xf32>
    %49 = arith.addf %46, %48 : vector<8x128xf32>
    %c0_47 = arith.constant 0 : index
    %c0_48 = arith.constant 0 : index
    %50 = vector.load %arg7[%c0_47, %c0_48] : memref<8x128xf32, #tpu.memory_space<vmem>>, vector<8x128xf32>
    tpu.vector_store %arg7[%c0_47, %c0_48], %49 {strides = array<i32>} : memref<8x128xf32, #tpu.memory_space<vmem>>, vector<8x128xf32>,
    return
  }
  func.func @transform_0(%arg0: i32) -> (i32, i32) {
    %c0_i32 = arith.constant 0 : i32
    %c0_i32_0 = arith.constant 0 : i32
    return %arg0, %c0_i32 : i32, i32
  }
  func.func @transform_1(%arg0: i32) -> (i32, i32, i32) {
    %c0_i32 = arith.constant 0 : i32
    %c0_i32_0 = arith.constant 0 : i32
    %c0_i32_1 = arith.constant 0 : i32
    %c0_i32_2 = arith.constant 0 : i32
    return %c0_i32, %c0_i32_0, %c0_i32_1 : i32, i32, i32
  }
  func.func @transform_2(%arg0: i32) -> (i32, i32) {
    %c0_i32 = arith.constant 0 : i32
    %c0_i32_0 = arith.constant 0 : i32
    %c0_i32_1 = arith.constant 0 : i32
    return %c0_i32, %c0_i32_0 : i32, i32
  }
  func.func @transform_3(%arg0: i32) -> (i32, i32) {
    %c0_i32 = arith.constant 0 : i32
    %c0_i32_0 = arith.constant 0 : i32
    %c0_i32_1 = arith.constant 0 : i32
    return %c0_i32, %c0_i32_0 : i32, i32
  }
  func.func @transform_4(%arg0: i32) -> (i32, i32) {
    %c0_i32 = arith.constant 0 : i32
    %c0_i32_0 = arith.constant 0 : i32
    %c0_i32_1 = arith.constant 0 : i32
    return %c0_i32, %c0_i32_0 : i32, i32
  }
  func.func @transform_5(%arg0: i32) -> (i32, i32) {
    %c0_i32 = arith.constant 0 : i32
    %c0_i32_0 = arith.constant 0 : i32
    %c0_i32_1 = arith.constant 0 : i32
    return %c0_i32, %c0_i32_0 : i32, i32
  }
  func.func @transform_6(%arg0: i32) -> (i32, i32) {
    %c0_i32 = arith.constant 0 : i32
    %c0_i32_0 = arith.constant 0 : i32
    return %arg0, %c0_i32 : i32, i32
  }
}

module attributes {stable_mosaic.version = 11 : i64} {
  func.func @_fused_kernel(%arg0: i32, %arg1: memref<128x16xf32, #tpu.memory_space<vmem>>, %arg2: memref<5x16x128xf32, #tpu.memory_space<vmem>>, %arg3: memref<1x128xf32, #tpu.memory_space<vmem>>, %arg4: memref<16x128xf32, #tpu.memory_space<vmem>>, %arg5: memref<128x128xf32, #tpu.memory_space<vmem>>, %arg6: memref<1x128xf32, #tpu.memory_space<vmem>>, %arg7: memref<8x128xf32, #tpu.memory_space<vmem>>, %arg8: memref<128x128xf32, #tpu.memory_space<vmem>>) attributes {dimension_semantics = [#tpu.dimension_semantics<parallel>], iteration_bounds = array<i64: 1>, scalar_prefetch = 0 : i64, scratch_operands = 1 : i64, tpu.core_type = #tpu.core_type<tc>, window_params = [{transform_indices = @transform_0, window_bounds = array<i64: 128, 16>}, {pipeline_mode = #tpu.pipeline_mode<synchronous>, transform_indices = @transform_1, window_bounds = array<i64: 5, 16, 128>}, {pipeline_mode = #tpu.pipeline_mode<synchronous>, transform_indices = @transform_2, window_bounds = array<i64: 1, 128>}, {pipeline_mode = #tpu.pipeline_mode<synchronous>, transform_indices = @transform_3, window_bounds = array<i64: 16, 128>}, {pipeline_mode = #tpu.pipeline_mode<synchronous>, transform_indices = @transform_4, window_bounds = array<i64: 128, 128>}, {pipeline_mode = #tpu.pipeline_mode<synchronous>, transform_indices = @transform_5, window_bounds = array<i64: 1, 128>}, {transform_indices = @transform_6, window_bounds = array<i64: 8, 128>}]} {
    %c0 = arith.constant 0 : index
    %c0_0 = arith.constant 0 : index
    %0 = vector.load %arg1[%c0, %c0_0] : memref<128x16xf32, #tpu.memory_space<vmem>>, vector<128x16xf32>
    %c0_1 = arith.constant 0 : index
    %c0_2 = arith.constant 0 : index
    %c0_3 = arith.constant 0 : index
    %1 = vector.load %arg2[%c0_1, %c0_2, %c0_3] : memref<5x16x128xf32, #tpu.memory_space<vmem>>, vector<1x16x128xf32>
    %2 = vector.shape_cast %1 : vector<1x16x128xf32> to vector<16x128xf32>
    %cst = arith.constant dense<0.000000e+00> : vector<128x128xf32>
    %3 = tpu.matmul %0, %2, %cst {dimension_numbers = #tpu.dot_dimension_numbers<[1], [0], [0], [1], [0, 0, 1, 1], [], []>} : vector<128x16xf32>, vector<16x128xf32>, vector<128x128xf32> -> vector<128x128xf32>
    %c0_4 = arith.constant 0 : index
    %c0_5 = arith.constant 0 : index
    %4 = vector.load %arg8[%c0_4, %c0_5] : memref<128x128xf32, #tpu.memory_space<vmem>>, vector<128x128xf32>
    tpu.vector_store %arg8[%c0_4, %c0_5], %3 {strides = array<i32>} : memref<128x128xf32, #tpu.memory_space<vmem>>, vector<128x128xf32>,
    %c1 = arith.constant 1 : index
    %c0_6 = arith.constant 0 : index
    %c0_7 = arith.constant 0 : index
    %5 = vector.load %arg2[%c1, %c0_6, %c0_7] : memref<5x16x128xf32, #tpu.memory_space<vmem>>, vector<1x16x128xf32>
    %6 = vector.shape_cast %5 : vector<1x16x128xf32> to vector<16x128xf32>
    %cst_8 = arith.constant dense<0.000000e+00> : vector<128x128xf32>
    %7 = tpu.matmul %0, %6, %cst_8 {dimension_numbers = #tpu.dot_dimension_numbers<[1], [0], [0], [1], [0, 0, 1, 1], [], []>} : vector<128x16xf32>, vector<16x128xf32>, vector<128x128xf32> -> vector<128x128xf32>
    %c1_i32 = arith.constant 1 : i32
    %8 = tpu.dynamic_rotate %7 by %c1_i32 dim 0 : vector<128x128xf32>, i32 -> vector<128x128xf32>
    %c0_9 = arith.constant 0 : index
    %c0_10 = arith.constant 0 : index
    %9 = vector.load %arg8[%c0_9, %c0_10] : memref<128x128xf32, #tpu.memory_space<vmem>>, vector<128x128xf32>
    %10 = arith.addf %9, %8 : vector<128x128xf32>
    %c0_11 = arith.constant 0 : index
    %c0_12 = arith.constant 0 : index
    %11 = vector.load %arg8[%c0_11, %c0_12] : memref<128x128xf32, #tpu.memory_space<vmem>>, vector<128x128xf32>
    tpu.vector_store %arg8[%c0_11, %c0_12], %10 {strides = array<i32>} : memref<128x128xf32, #tpu.memory_space<vmem>>, vector<128x128xf32>,
    %c2 = arith.constant 2 : index
    %c0_13 = arith.constant 0 : index
    %c0_14 = arith.constant 0 : index
    %12 = vector.load %arg2[%c2, %c0_13, %c0_14] : memref<5x16x128xf32, #tpu.memory_space<vmem>>, vector<1x16x128xf32>
    %13 = vector.shape_cast %12 : vector<1x16x128xf32> to vector<16x128xf32>
    %cst_15 = arith.constant dense<0.000000e+00> : vector<128x128xf32>
    %14 = tpu.matmul %0, %13, %cst_15 {dimension_numbers = #tpu.dot_dimension_numbers<[1], [0], [0], [1], [0, 0, 1, 1], [], []>} : vector<128x16xf32>, vector<16x128xf32>, vector<128x128xf32> -> vector<128x128xf32>
    %c2_i32 = arith.constant 2 : i32
    %15 = tpu.dynamic_rotate %14 by %c2_i32 dim 0 : vector<128x128xf32>, i32 -> vector<128x128xf32>
    %c0_16 = arith.constant 0 : index
    %c0_17 = arith.constant 0 : index
    %16 = vector.load %arg8[%c0_16, %c0_17] : memref<128x128xf32, #tpu.memory_space<vmem>>, vector<128x128xf32>
    %17 = arith.addf %16, %15 : vector<128x128xf32>
    %c0_18 = arith.constant 0 : index
    %c0_19 = arith.constant 0 : index
    %18 = vector.load %arg8[%c0_18, %c0_19] : memref<128x128xf32, #tpu.memory_space<vmem>>, vector<128x128xf32>
    tpu.vector_store %arg8[%c0_18, %c0_19], %17 {strides = array<i32>} : memref<128x128xf32, #tpu.memory_space<vmem>>, vector<128x128xf32>,
    %c3 = arith.constant 3 : index
    %c0_20 = arith.constant 0 : index
    %c0_21 = arith.constant 0 : index
    %19 = vector.load %arg2[%c3, %c0_20, %c0_21] : memref<5x16x128xf32, #tpu.memory_space<vmem>>, vector<1x16x128xf32>
    %20 = vector.shape_cast %19 : vector<1x16x128xf32> to vector<16x128xf32>
    %cst_22 = arith.constant dense<0.000000e+00> : vector<128x128xf32>
    %21 = tpu.matmul %0, %20, %cst_22 {dimension_numbers = #tpu.dot_dimension_numbers<[1], [0], [0], [1], [0, 0, 1, 1], [], []>} : vector<128x16xf32>, vector<16x128xf32>, vector<128x128xf32> -> vector<128x128xf32>
    %c3_i32 = arith.constant 3 : i32
    %22 = tpu.dynamic_rotate %21 by %c3_i32 dim 0 : vector<128x128xf32>, i32 -> vector<128x128xf32>
    %c0_23 = arith.constant 0 : index
    %c0_24 = arith.constant 0 : index
    %23 = vector.load %arg8[%c0_23, %c0_24] : memref<128x128xf32, #tpu.memory_space<vmem>>, vector<128x128xf32>
    %24 = arith.addf %23, %22 : vector<128x128xf32>
    %c0_25 = arith.constant 0 : index
    %c0_26 = arith.constant 0 : index
    %25 = vector.load %arg8[%c0_25, %c0_26] : memref<128x128xf32, #tpu.memory_space<vmem>>, vector<128x128xf32>
    tpu.vector_store %arg8[%c0_25, %c0_26], %24 {strides = array<i32>} : memref<128x128xf32, #tpu.memory_space<vmem>>, vector<128x128xf32>,
    %c4 = arith.constant 4 : index
    %c0_27 = arith.constant 0 : index
    %c0_28 = arith.constant 0 : index
    %26 = vector.load %arg2[%c4, %c0_27, %c0_28] : memref<5x16x128xf32, #tpu.memory_space<vmem>>, vector<1x16x128xf32>
    %27 = vector.shape_cast %26 : vector<1x16x128xf32> to vector<16x128xf32>
    %cst_29 = arith.constant dense<0.000000e+00> : vector<128x128xf32>
    %28 = tpu.matmul %0, %27, %cst_29 {dimension_numbers = #tpu.dot_dimension_numbers<[1], [0], [0], [1], [0, 0, 1, 1], [], []>} : vector<128x16xf32>, vector<16x128xf32>, vector<128x128xf32> -> vector<128x128xf32>
    %c4_i32 = arith.constant 4 : i32
    %29 = tpu.dynamic_rotate %28 by %c4_i32 dim 0 : vector<128x128xf32>, i32 -> vector<128x128xf32>
    %c0_30 = arith.constant 0 : index
    %c0_31 = arith.constant 0 : index
    %30 = vector.load %arg8[%c0_30, %c0_31] : memref<128x128xf32, #tpu.memory_space<vmem>>, vector<128x128xf32>
    %31 = arith.addf %30, %29 : vector<128x128xf32>
    %c0_32 = arith.constant 0 : index
    %c0_33 = arith.constant 0 : index
    %32 = vector.load %arg8[%c0_32, %c0_33] : memref<128x128xf32, #tpu.memory_space<vmem>>, vector<128x128xf32>
    tpu.vector_store %arg8[%c0_32, %c0_33], %31 {strides = array<i32>} : memref<128x128xf32, #tpu.memory_space<vmem>>, vector<128x128xf32>,
    %c0_34 = arith.constant 0 : index
    %c0_35 = arith.constant 0 : index
    %33 = vector.load %arg8[%c0_34, %c0_35] : memref<128x128xf32, #tpu.memory_space<vmem>>, vector<128x128xf32>
    %c0_36 = arith.constant 0 : index
    %c0_37 = arith.constant 0 : index
    %34 = vector.load %arg3[%c0_36, %c0_37] : memref<1x128xf32, #tpu.memory_space<vmem>>, vector<1x128xf32>
    %35 = vector.broadcast %34 : vector<1x128xf32> to vector<128x128xf32>
    %36 = arith.addf %33, %35 : vector<128x128xf32>
    %cst_38 = arith.constant 0.000000e+00 : f32
    %37 = vector.broadcast %cst_38 : f32 to vector<128x128xf32>
    %38 = arith.maximumf %36, %37 : vector<128x128xf32>
    %39 = vector.shape_cast %38 : vector<128x128xf32> to vector<8x16x128xf32>
    %c0_39 = arith.constant 0 : index
    %c0_40 = arith.constant 0 : index
    %40 = vector.load %arg4[%c0_39, %c0_40] : memref<16x128xf32, #tpu.memory_space<vmem>>, vector<16x128xf32>
    %41 = vector.shape_cast %40 : vector<16x128xf32> to vector<1x16x128xf32>
    %42 = vector.broadcast %41 : vector<1x16x128xf32> to vector<8x16x128xf32>
    %43 = arith.mulf %39, %42 : vector<8x16x128xf32>
    %cst_41 = arith.constant dense<0xFF800000> : vector<8x128xf32>
    %44 = vector.multi_reduction <maximumf>, %43, %cst_41 [1] : vector<8x16x128xf32> to vector<8x128xf32>
    %c0_42 = arith.constant 0 : index
    %c0_43 = arith.constant 0 : index
    %45 = vector.load %arg5[%c0_42, %c0_43] : memref<128x128xf32, #tpu.memory_space<vmem>>, vector<128x128xf32>
    %cst_44 = arith.constant dense<0.000000e+00> : vector<8x128xf32>
    %46 = tpu.matmul %44, %45, %cst_44 {dimension_numbers = #tpu.dot_dimension_numbers<[1], [0], [0], [1], [0, 0, 1, 1], [], []>} : vector<8x128xf32>, vector<128x128xf32>, vector<8x128xf32> -> vector<8x128xf32>
    %c0_45 = arith.constant 0 : index
    %c0_46 = arith.constant 0 : index
    %47 = vector.load %arg6[%c0_45, %c0_46] : memref<1x128xf32, #tpu.memory_space<vmem>>, vector<1x128xf32>
    %48 = vector.broadcast %47 : vector<1x128xf32> to vector<8x128xf32>
    %49 = arith.addf %46, %48 : vector<8x128xf32>
    %c0_47 = arith.constant 0 : index
    %c0_48 = arith.constant 0 : index
    %50 = vector.load %arg7[%c0_47, %c0_48] : memref<8x128xf32, #tpu.memory_space<vmem>>, vector<8x128xf32>
    tpu.vector_store %arg7[%c0_47, %c0_48], %49 {strides = array<i32>} : memref<8x128xf32, #tpu.memory_space<vmem>>, vector<8x128xf32>,
    return
  }
  func.func @transform_0(%arg0: i32) -> (i32, i32) {
    %c0_i32 = arith.constant 0 : i32
    %c0_i32_0 = arith.constant 0 : i32
    return %arg0, %c0_i32 : i32, i32
  }
  func.func @transform_1(%arg0: i32) -> (i32, i32, i32) {
    %c0_i32 = arith.constant 0 : i32
    %c0_i32_0 = arith.constant 0 : i32
    %c0_i32_1 = arith.constant 0 : i32
    %c0_i32_2 = arith.constant 0 : i32
    return %c0_i32, %c0_i32_0, %c0_i32_1 : i32, i32, i32
  }
  func.func @transform_2(%arg0: i32) -> (i32, i32) {
    %c0_i32 = arith.constant 0 : i32
    %c0_i32_0 = arith.constant 0 : i32
    %c0_i32_1 = arith.constant 0 : i32
    return %c0_i32, %c0_i32_0 : i32, i32
  }
  func.func @transform_3(%arg0: i32) -> (i32, i32) {
    %c0_i32 = arith.constant 0 : i32
    %c0_i32_0 = arith.constant 0 : i32
    %c0_i32_1 = arith.constant 0 : i32
    return %c0_i32, %c0_i32_0 : i32, i32
  }
  func.func @transform_4(%arg0: i32) -> (i32, i32) {
    %c0_i32 = arith.constant 0 : i32
    %c0_i32_0 = arith.constant 0 : i32
    %c0_i32_1 = arith.constant 0 : i32
    return %c0_i32, %c0_i32_0 : i32, i32
  }
  func.func @transform_5(%arg0: i32) -> (i32, i32) {
    %c0_i32 = arith.constant 0 : i32
    %c0_i32_0 = arith.constant 0 : i32
    %c0_i32_1 = arith.constant 0 : i32
    return %c0_i32, %c0_i32_0 : i32, i32
  }
  func.func @transform_6(%arg0: i32) -> (i32, i32) {
    %c0_i32 = arith.constant 0 : i32
    %c0_i32_0 = arith.constant 0 : i32
    return %arg0, %c0_i32 : i32, i32
  }
}

module attributes {stable_mosaic.version = 11 : i64} {
  func.func @_fused_kernel(%arg0: i32, %arg1: memref<128x16xf32, #tpu.memory_space<vmem>>, %arg2: memref<5x16x128xf32, #tpu.memory_space<vmem>>, %arg3: memref<1x128xf32, #tpu.memory_space<vmem>>, %arg4: memref<16x128xf32, #tpu.memory_space<vmem>>, %arg5: memref<128x128xf32, #tpu.memory_space<vmem>>, %arg6: memref<1x128xf32, #tpu.memory_space<vmem>>, %arg7: memref<8x128xf32, #tpu.memory_space<vmem>>, %arg8: memref<128x128xf32, #tpu.memory_space<vmem>>) attributes {dimension_semantics = [#tpu.dimension_semantics<parallel>], iteration_bounds = array<i64: 1>, scalar_prefetch = 0 : i64, scratch_operands = 1 : i64, tpu.core_type = #tpu.core_type<tc>, window_params = [{transform_indices = @transform_0, window_bounds = array<i64: 128, 16>}, {pipeline_mode = #tpu.pipeline_mode<synchronous>, transform_indices = @transform_1, window_bounds = array<i64: 5, 16, 128>}, {pipeline_mode = #tpu.pipeline_mode<synchronous>, transform_indices = @transform_2, window_bounds = array<i64: 1, 128>}, {pipeline_mode = #tpu.pipeline_mode<synchronous>, transform_indices = @transform_3, window_bounds = array<i64: 16, 128>}, {pipeline_mode = #tpu.pipeline_mode<synchronous>, transform_indices = @transform_4, window_bounds = array<i64: 128, 128>}, {pipeline_mode = #tpu.pipeline_mode<synchronous>, transform_indices = @transform_5, window_bounds = array<i64: 1, 128>}, {transform_indices = @transform_6, window_bounds = array<i64: 8, 128>}]} {
    %c0 = arith.constant 0 : index
    %c0_0 = arith.constant 0 : index
    %0 = vector.load %arg1[%c0, %c0_0] : memref<128x16xf32, #tpu.memory_space<vmem>>, vector<128x16xf32>
    %c0_1 = arith.constant 0 : index
    %c0_2 = arith.constant 0 : index
    %c0_3 = arith.constant 0 : index
    %1 = vector.load %arg2[%c0_1, %c0_2, %c0_3] : memref<5x16x128xf32, #tpu.memory_space<vmem>>, vector<1x16x128xf32>
    %2 = vector.shape_cast %1 : vector<1x16x128xf32> to vector<16x128xf32>
    %cst = arith.constant dense<0.000000e+00> : vector<128x128xf32>
    %3 = tpu.matmul %0, %2, %cst {dimension_numbers = #tpu.dot_dimension_numbers<[1], [0], [0], [1], [0, 0, 1, 1], [], []>} : vector<128x16xf32>, vector<16x128xf32>, vector<128x128xf32> -> vector<128x128xf32>
    %c0_4 = arith.constant 0 : index
    %c0_5 = arith.constant 0 : index
    %4 = vector.load %arg8[%c0_4, %c0_5] : memref<128x128xf32, #tpu.memory_space<vmem>>, vector<128x128xf32>
    tpu.vector_store %arg8[%c0_4, %c0_5], %3 {strides = array<i32>} : memref<128x128xf32, #tpu.memory_space<vmem>>, vector<128x128xf32>,
    %c1 = arith.constant 1 : index
    %c0_6 = arith.constant 0 : index
    %c0_7 = arith.constant 0 : index
    %5 = vector.load %arg2[%c1, %c0_6, %c0_7] : memref<5x16x128xf32, #tpu.memory_space<vmem>>, vector<1x16x128xf32>
    %6 = vector.shape_cast %5 : vector<1x16x128xf32> to vector<16x128xf32>
    %cst_8 = arith.constant dense<0.000000e+00> : vector<128x128xf32>
    %7 = tpu.matmul %0, %6, %cst_8 {dimension_numbers = #tpu.dot_dimension_numbers<[1], [0], [0], [1], [0, 0, 1, 1], [], []>} : vector<128x16xf32>, vector<16x128xf32>, vector<128x128xf32> -> vector<128x128xf32>
    %8 = vector.extract_strided_slice %7 {offsets = [127, 0], sizes = [1, 128], strides = [1, 1]} : vector<128x128xf32> to vector<1x128xf32>
    %9 = vector.extract_strided_slice %7 {offsets = [0, 0], sizes = [127, 128], strides = [1, 1]} : vector<128x128xf32> to vector<127x128xf32>
    %10 = tpu.concatenate %8, %9 in 0 : vector<1x128xf32>, vector<127x128xf32> -> vector<128x128xf32>
    %c0_9 = arith.constant 0 : index
    %c0_10 = arith.constant 0 : index
    %11 = vector.load %arg8[%c0_9, %c0_10] : memref<128x128xf32, #tpu.memory_space<vmem>>, vector<128x128xf32>
    %12 = arith.addf %11, %10 : vector<128x128xf32>
    %c0_11 = arith.constant 0 : index
    %c0_12 = arith.constant 0 : index
    %13 = vector.load %arg8[%c0_11, %c0_12] : memref<128x128xf32, #tpu.memory_space<vmem>>, vector<128x128xf32>
    tpu.vector_store %arg8[%c0_11, %c0_12], %12 {strides = array<i32>} : memref<128x128xf32, #tpu.memory_space<vmem>>, vector<128x128xf32>,
    %c2 = arith.constant 2 : index
    %c0_13 = arith.constant 0 : index
    %c0_14 = arith.constant 0 : index
    %14 = vector.load %arg2[%c2, %c0_13, %c0_14] : memref<5x16x128xf32, #tpu.memory_space<vmem>>, vector<1x16x128xf32>
    %15 = vector.shape_cast %14 : vector<1x16x128xf32> to vector<16x128xf32>
    %cst_15 = arith.constant dense<0.000000e+00> : vector<128x128xf32>
    %16 = tpu.matmul %0, %15, %cst_15 {dimension_numbers = #tpu.dot_dimension_numbers<[1], [0], [0], [1], [0, 0, 1, 1], [], []>} : vector<128x16xf32>, vector<16x128xf32>, vector<128x128xf32> -> vector<128x128xf32>
    %17 = vector.extract_strided_slice %16 {offsets = [126, 0], sizes = [2, 128], strides = [1, 1]} : vector<128x128xf32> to vector<2x128xf32>
    %18 = vector.extract_strided_slice %16 {offsets = [0, 0], sizes = [126, 128], strides = [1, 1]} : vector<128x128xf32> to vector<126x128xf32>
    %19 = tpu.concatenate %17, %18 in 0 : vector<2x128xf32>, vector<126x128xf32> -> vector<128x128xf32>
    %c0_16 = arith.constant 0 : index
    %c0_17 = arith.constant 0 : index
    %20 = vector.load %arg8[%c0_16, %c0_17] : memref<128x128xf32, #tpu.memory_space<vmem>>, vector<128x128xf32>
    %21 = arith.addf %20, %19 : vector<128x128xf32>
    %c0_18 = arith.constant 0 : index
    %c0_19 = arith.constant 0 : index
    %22 = vector.load %arg8[%c0_18, %c0_19] : memref<128x128xf32, #tpu.memory_space<vmem>>, vector<128x128xf32>
    tpu.vector_store %arg8[%c0_18, %c0_19], %21 {strides = array<i32>} : memref<128x128xf32, #tpu.memory_space<vmem>>, vector<128x128xf32>,
    %c3 = arith.constant 3 : index
    %c0_20 = arith.constant 0 : index
    %c0_21 = arith.constant 0 : index
    %23 = vector.load %arg2[%c3, %c0_20, %c0_21] : memref<5x16x128xf32, #tpu.memory_space<vmem>>, vector<1x16x128xf32>
    %24 = vector.shape_cast %23 : vector<1x16x128xf32> to vector<16x128xf32>
    %cst_22 = arith.constant dense<0.000000e+00> : vector<128x128xf32>
    %25 = tpu.matmul %0, %24, %cst_22 {dimension_numbers = #tpu.dot_dimension_numbers<[1], [0], [0], [1], [0, 0, 1, 1], [], []>} : vector<128x16xf32>, vector<16x128xf32>, vector<128x128xf32> -> vector<128x128xf32>
    %26 = vector.extract_strided_slice %25 {offsets = [125, 0], sizes = [3, 128], strides = [1, 1]} : vector<128x128xf32> to vector<3x128xf32>
    %27 = vector.extract_strided_slice %25 {offsets = [0, 0], sizes = [125, 128], strides = [1, 1]} : vector<128x128xf32> to vector<125x128xf32>
    %28 = tpu.concatenate %26, %27 in 0 : vector<3x128xf32>, vector<125x128xf32> -> vector<128x128xf32>
    %c0_23 = arith.constant 0 : index
    %c0_24 = arith.constant 0 : index
    %29 = vector.load %arg8[%c0_23, %c0_24] : memref<128x128xf32, #tpu.memory_space<vmem>>, vector<128x128xf32>
    %30 = arith.addf %29, %28 : vector<128x128xf32>
    %c0_25 = arith.constant 0 : index
    %c0_26 = arith.constant 0 : index
    %31 = vector.load %arg8[%c0_25, %c0_26] : memref<128x128xf32, #tpu.memory_space<vmem>>, vector<128x128xf32>
    tpu.vector_store %arg8[%c0_25, %c0_26], %30 {strides = array<i32>} : memref<128x128xf32, #tpu.memory_space<vmem>>, vector<128x128xf32>,
    %c4 = arith.constant 4 : index
    %c0_27 = arith.constant 0 : index
    %c0_28 = arith.constant 0 : index
    %32 = vector.load %arg2[%c4, %c0_27, %c0_28] : memref<5x16x128xf32, #tpu.memory_space<vmem>>, vector<1x16x128xf32>
    %33 = vector.shape_cast %32 : vector<1x16x128xf32> to vector<16x128xf32>
    %cst_29 = arith.constant dense<0.000000e+00> : vector<128x128xf32>
    %34 = tpu.matmul %0, %33, %cst_29 {dimension_numbers = #tpu.dot_dimension_numbers<[1], [0], [0], [1], [0, 0, 1, 1], [], []>} : vector<128x16xf32>, vector<16x128xf32>, vector<128x128xf32> -> vector<128x128xf32>
    %35 = vector.extract_strided_slice %34 {offsets = [124, 0], sizes = [4, 128], strides = [1, 1]} : vector<128x128xf32> to vector<4x128xf32>
    %36 = vector.extract_strided_slice %34 {offsets = [0, 0], sizes = [124, 128], strides = [1, 1]} : vector<128x128xf32> to vector<124x128xf32>
    %37 = tpu.concatenate %35, %36 in 0 : vector<4x128xf32>, vector<124x128xf32> -> vector<128x128xf32>
    %c0_30 = arith.constant 0 : index
    %c0_31 = arith.constant 0 : index
    %38 = vector.load %arg8[%c0_30, %c0_31] : memref<128x128xf32, #tpu.memory_space<vmem>>, vector<128x128xf32>
    %39 = arith.addf %38, %37 : vector<128x128xf32>
    %c0_32 = arith.constant 0 : index
    %c0_33 = arith.constant 0 : index
    %40 = vector.load %arg8[%c0_32, %c0_33] : memref<128x128xf32, #tpu.memory_space<vmem>>, vector<128x128xf32>
    tpu.vector_store %arg8[%c0_32, %c0_33], %39 {strides = array<i32>} : memref<128x128xf32, #tpu.memory_space<vmem>>, vector<128x128xf32>,
    %c0_34 = arith.constant 0 : index
    %c0_35 = arith.constant 0 : index
    %41 = vector.load %arg8[%c0_34, %c0_35] : memref<128x128xf32, #tpu.memory_space<vmem>>, vector<128x128xf32>
    %c0_36 = arith.constant 0 : index
    %c0_37 = arith.constant 0 : index
    %42 = vector.load %arg3[%c0_36, %c0_37] : memref<1x128xf32, #tpu.memory_space<vmem>>, vector<1x128xf32>
    %43 = vector.broadcast %42 : vector<1x128xf32> to vector<128x128xf32>
    %44 = arith.addf %41, %43 : vector<128x128xf32>
    %cst_38 = arith.constant 0.000000e+00 : f32
    %45 = vector.broadcast %cst_38 : f32 to vector<128x128xf32>
    %46 = arith.maximumf %44, %45 : vector<128x128xf32>
    %47 = vector.shape_cast %46 : vector<128x128xf32> to vector<8x16x128xf32>
    %c0_39 = arith.constant 0 : index
    %c0_40 = arith.constant 0 : index
    %48 = vector.load %arg4[%c0_39, %c0_40] : memref<16x128xf32, #tpu.memory_space<vmem>>, vector<16x128xf32>
    %49 = vector.shape_cast %48 : vector<16x128xf32> to vector<1x16x128xf32>
    %50 = vector.broadcast %49 : vector<1x16x128xf32> to vector<8x16x128xf32>
    %51 = arith.mulf %47, %50 : vector<8x16x128xf32>
    %cst_41 = arith.constant dense<0xFF800000> : vector<8x128xf32>
    %52 = vector.multi_reduction <maximumf>, %51, %cst_41 [1] : vector<8x16x128xf32> to vector<8x128xf32>
    %c0_42 = arith.constant 0 : index
    %c0_43 = arith.constant 0 : index
    %53 = vector.load %arg5[%c0_42, %c0_43] : memref<128x128xf32, #tpu.memory_space<vmem>>, vector<128x128xf32>
    %cst_44 = arith.constant dense<0.000000e+00> : vector<8x128xf32>
    %54 = tpu.matmul %52, %53, %cst_44 {dimension_numbers = #tpu.dot_dimension_numbers<[1], [0], [0], [1], [0, 0, 1, 1], [], []>} : vector<8x128xf32>, vector<128x128xf32>, vector<8x128xf32> -> vector<8x128xf32>
    %c0_45 = arith.constant 0 : index
    %c0_46 = arith.constant 0 : index
    %55 = vector.load %arg6[%c0_45, %c0_46] : memref<1x128xf32, #tpu.memory_space<vmem>>, vector<1x128xf32>
    %56 = vector.broadcast %55 : vector<1x128xf32> to vector<8x128xf32>
    %57 = arith.addf %54, %56 : vector<8x128xf32>
    %c0_47 = arith.constant 0 : index
    %c0_48 = arith.constant 0 : index
    %58 = vector.load %arg7[%c0_47, %c0_48] : memref<8x128xf32, #tpu.memory_space<vmem>>, vector<8x128xf32>
    tpu.vector_store %arg7[%c0_47, %c0_48], %57 {strides = array<i32>} : memref<8x128xf32, #tpu.memory_space<vmem>>, vector<8x128xf32>,
    return
  }
  func.func @transform_0(%arg0: i32) -> (i32, i32) {
    %c0_i32 = arith.constant 0 : i32
    %c0_i32_0 = arith.constant 0 : i32
    return %arg0, %c0_i32 : i32, i32
  }
  func.func @transform_1(%arg0: i32) -> (i32, i32, i32) {
    %c0_i32 = arith.constant 0 : i32
    %c0_i32_0 = arith.constant 0 : i32
    %c0_i32_1 = arith.constant 0 : i32
    %c0_i32_2 = arith.constant 0 : i32
    return %c0_i32, %c0_i32_0, %c0_i32_1 : i32, i32, i32
  }
  func.func @transform_2(%arg0: i32) -> (i32, i32) {
    %c0_i32 = arith.constant 0 : i32
    %c0_i32_0 = arith.constant 0 : i32
    %c0_i32_1 = arith.constant 0 : i32
    return %c0_i32, %c0_i32_0 : i32, i32
  }
  func.func @transform_3(%arg0: i32) -> (i32, i32) {
    %c0_i32 = arith.constant 0 : i32
    %c0_i32_0 = arith.constant 0 : i32
    %c0_i32_1 = arith.constant 0 : i32
    return %c0_i32, %c0_i32_0 : i32, i32
  }
  func.func @transform_4(%arg0: i32) -> (i32, i32) {
    %c0_i32 = arith.constant 0 : i32
    %c0_i32_0 = arith.constant 0 : i32
    %c0_i32_1 = arith.constant 0 : i32
    return %c0_i32, %c0_i32_0 : i32, i32
  }
  func.func @transform_5(%arg0: i32) -> (i32, i32) {
    %c0_i32 = arith.constant 0 : i32
    %c0_i32_0 = arith.constant 0 : i32
    %c0_i32_1 = arith.constant 0 : i32
    return %c0_i32, %c0_i32_0 : i32, i32
  }
  func.func @transform_6(%arg0: i32) -> (i32, i32) {
    %c0_i32 = arith.constant 0 : i32
    %c0_i32_0 = arith.constant 0 : i32
    return %arg0, %c0_i32 : i32, i32
  }
}

</mosaic_0001>

<bundles_post_ra>
// kernel: tpu_custom_call.1
= control target key start
LH: loop header
LB: loop body
LE: loop exit
PB: predicated region body
PF: predicated region fallthrough
CT: control target
= control target key end

     0   :  { %11 = vsyncpa [#allocation4], 0  ;;  %s2538_s0 = inlined_call_operand.vmem [shape: f32[128,16], index: 0, kind: input, shape index: {}]   ;;  %s2539_s1 = inlined_call_operand.hbm [shape: f32[5,16,128], index: 1, kind: input, shape index: {}]   ;;  %s2540_s2 = inlined_call_operand.vmem [shape: f32[1,128], index: 2, kind: input, shape index: {}]   ;;  %s2541_s3 = inlined_call_operand.vmem [shape: f32[16,128], index: 3, kind: input, shape index: {}]   ;;  %s2542_s4 = inlined_call_operand.vmem [shape: f32[128,128], index: 4, kind: input, shape index: {}]   ;;  %s2543_s5 = inlined_call_operand.vmem [shape: f32[1,128], index: 5, kind: input, shape index: {}]   ;;  %s2544_s6 = inlined_call_operand.hbm [shape: f32[8,128], index: 6, kind: output, shape index: {}]  }
   0x1   :  { %12 = vsyncpa [#allocation5], 0  ;;  %s1910_s21 = smov [#allocation3]   ;;  %s1862_s25 = scalar_lea.hbm %s2539_s1, 1280 }
   0x2   :  { %s20_s22 = sshll.u32 %s1910_s21, 4  ;;  %p1863_p0 = scmp.ne.s32.totalorder %s2539_s1, %s1862_s25  ;;  %s21_s22 = int_to_ptr.vmem [resolvable:$true] %s20_s22 }
   0x3   :  { %p1866_p1 = scmp.lt.u32.totalorder %s1862_s25, %s2539_s1 }
   0x5   :  { %p1868_p2 = pnand %p1866_p1, %p1863_p0 }
   0x7   :  { %1871 = shalt.err (!%p1868_p2)
}
   0x8   :  { %s1872_s30 = scalar_lea.vmem %s21_s22, 1280  ;;  %p1877_p4 = scmp.lt.s32.totalorder %s21_s22, %s21_s22 }
   0x9   :  { %p1873_p3 = scmp.ne.s32.totalorder %s21_s22, %s1872_s30  ;;  %p1878_p5 = scmp.lt.s32.totalorder %s1872_s30, %s1872_s30 }
   0xb   :  { %p1879_p6 = por %p1878_p5, %p1877_p4 }
   0xd   :  { %p1880_p7 = pnand %p1879_p6, %p1873_p3 }
   0xf   :  { %1883 = shalt.err (!%p1880_p7)
}
  0x10   :  { %s1911_s7 = smov 128   ;;  %s1912_s8 = smov 8  }
  0x11   :  { %26 = dma.hbm_to_vmem [thread:$0]  %s2539_s1, 1280, %s21_s22, [#allocation4], %s1911_s7, %s1911_s7, %s1912_s8  }
  0x12   :  { %1906 = dma.done.wait [#allocation4], 1280  }
  0x13   :  { %1907 = vsyncadd [#allocation4], 4294966016  ;;  %vm56_vm0 = vcmask 130048   ;;  %v54_v0 = vld [vmem:[#allocation3] sm:$0xff]  ;;  %v55_v1 = vld [vmem:[#allocation3 + $0x8] sm:$0xff]  ;;  %v1913_v34 = vmov 0.0|0.0  }
  0x14   :  { %v1967_v2 = vld [vmem:[%s2538_s0] sm:$0xff]  ;;  %v1809_v3 = vpack.c.bf16 %v55_v1, %v54_v0  ;;  %v1974_v4 = vld [vmem:[%s2538_s0 + $0x50] sm:$0xff]  ;;  %v499_v6 = vld [vmem:[#allocation3 + $0x28] sm:$0xff]  ;;  %vm1914_vm1 = vmmov 0   ;;  %v1915_v55 = vmov 0.0   ;;  %v430_v1 = vlaneseq  ;;  %s1916_s27 = smov [#allocation6]  }
  0x15   :  { %1638 = vmatprep.mubr.msk.f32.mxu0 %vm56_vm0, %v1967_v2  ;;  %1653 = vmatprep.mubr.msk.f32.mxu1 %vm56_vm0, %v1974_v4  ;;  %v498_v5 = vld [vmem:[#allocation3 + $0x20] sm:$0xff]  ;;  %v1981_v7 = vld [vmem:[%s2538_s0 + $0x8] sm:$0xff]  ;;  %v1986_v9 = vld [vmem:[%s2538_s0 + $0x58] sm:$0xff]  ;;  %vm1344_vm6 = vcmask 1041409   ;;  %vm1346_vm7 = vcmask 1042434   ;;  %vm1348_vm8 = vcmask 1043459  }
  0x16   :  { %1810 = vmatprep.subr.bf16.mxu0 %v1809_v3  ;;  %1853 = vmatprep.subr.bf16.mxu1 %v1809_v3  ;;  %v1817_v8 = vpack.c.bf16 %v499_v6, %v498_v5  ;;  %v267_v10 = vld [vmem:[#allocation3 + $0x10] sm:$0xff]  ;;  %v268_v11 = vld [vmem:[#allocation3 + $0x18] sm:$0xff]  ;;  %v1996_v14 = vld [vmem:[%s2538_s0 + $0x60] sm:$0xff]  ;;  %v2245_v6 = vshrl.u32 %v430_v1, 7  ;;  %vm1350_vm9 = vcmask 1044484   ;;  %vm1352_vm10 = vcmask 1045509  }
  0x17   :  { %1812 = vmatpush3.bf16.msra.mxu0 %v1809_v3  ;;  %1854 = vmatpush3.bf16.msra.mxu1 %v1809_v3  ;;  %v1991_v12 = vld [vmem:[%s2538_s0 + $0x10] sm:$0xff]  ;;  %v1813_v13 = vpack.c.bf16 %v268_v11, %v267_v10  ;;  %v2005_v15 = vld [vmem:[%s2538_s0 + $0x18] sm:$0xff]  ;;  %v2012_v18 = vld [vmem:[%s2538_s0 + $0x68] sm:$0xff]  ;;  %vm1354_vm11 = vcmask 1046534   ;;  %vm1356_vm12 = vcmask 1047559   ;;  %s1436_s28 = sshll.u32 %s1916_s27, 4  ;;  %s1437_s28 = int_to_ptr.vmem [resolvable:$true] %s1436_s28 }
  0x18   :  { %1818 = vmatprep.subr.bf16.mxu0 %v1817_v8  ;;  %v727_v16 = vld [vmem:[#allocation3 + $0x30] sm:$0xff]  ;;  %v728_v17 = vld [vmem:[#allocation3 + $0x38] sm:$0xff]  ;;  %v956_v19 = vld [vmem:[#allocation3 + $0x40] sm:$0xff]  ;;  %vm432_vm2 = vcmp.lt.s32.totalorder %v2245_v6, 1  ;;  %vm661_vm3 = vcmp.lt.s32.totalorder %v2245_v6, 2  ;;  %vm890_vm4 = vcmp.lt.s32.totalorder %v2245_v6, 3  ;;  %p1889_p9 = scmp.lt.s32.totalorder %s1437_s28, %s1437_s28 }
  0x19   :  { %v957_v20 = vld [vmem:[#allocation3 + $0x48] sm:$0xff]  ;;  %1814 = vmatprep.subr.bf16.mxu1 %v1813_v13  ;;  %v2019_v21 = vld [vmem:[%s2538_s0 + $0x20] sm:$0xff]  ;;  %v2024_v22 = vld [vmem:[%s2538_s0 + $0x70] sm:$0xff]  ;;  %v1821_v23 = vpack.c.bf16 %v728_v17, %v727_v16  ;;  %vm1119_vm5 = vcmp.lt.s32.totalorder %v2245_v6, 4  ;;  %s1884_s29 = scalar_lea.vmem %s1437_s28, 128 }
  0x1a   :  { %1639 = vmatmul.mubr.msk.f32.vlgmr.msra.gmra.mrb[0].mxu0 %vm56_vm0, %v1981_v7  ;;  %1654 = vmatmul.mubr.msk.f32.vlgmr.msra.gmra.mrb[0].mxu1 %vm56_vm0, %v1986_v9  ;;  %v1825_v24 = vpack.c.bf16 %v957_v20, %v956_v19  ;;  %v2037_v25 = vld [vmem:[%s2538_s0 + $0x28] sm:$0xff]  ;;  %v2042_v26 = vld [vmem:[%s2538_s0 + $0x78] sm:$0xff]  ;;  %v2047_v27 = vld [vmem:[%s2538_s0 + $0x30] sm:$0xff]  ;;  %p1885_p8 = scmp.ne.s32.totalorder %s1437_s28, %s1884_s29  ;;  %p1890_p10 = scmp.lt.s32.totalorder %s1884_s29, %s1884_s29 }
  0x1b   :  { %1820 = vmatpush3.bf16.msra.mxu0 %v1817_v8  ;;  %1641 = vmatprep.mubr.msk.f32.mxu0 %vm56_vm0, %v1991_v12  ;;  %v45_v28 = vld [vmem:[%s2538_s0 + $0x38] sm:$0xff]  ;;  %v46_v29 = vld [vmem:[%s2538_s0 + $0x40] sm:$0xff]  ;;  %v47_v30 = vld [vmem:[%s2538_s0 + $0x48] sm:$0xff] }
  0x1c   :  { %1656 = vmatprep.mubr.msk.f32.mxu1 %vm56_vm0, %v1996_v14  ;;  %1816 = vmatpush3.bf16.msra.mxu1 %v1813_v13  ;;  %v1313_v31 = vld [vmem:[%s2542_s4] sm:$0xff]  ;;  %v1314_v32 = vld [vmem:[%s2542_s4 + $0x8] sm:$0xff]  ;;  %v1315_v35 = vld [vmem:[%s2542_s4 + $0x10] sm:$0xff]  ;;  %p1891_p11 = por %p1890_p10, %p1889_p9 }
  0x1d   :  { %1822 = vmatprep.subr.bf16.mxu1 %v1821_v23  ;;  %1826 = vmatprep.subr.bf16.mxu0 %v1825_v24  ;;  %v1830_v33 = vpack.c.bf16 %v1314_v32, %v1313_v31  ;;  %v1316_v36 = vld [vmem:[%s2542_s4 + $0x18] sm:$0xff]  ;;  %v1317_v38 = vld [vmem:[%s2542_s4 + $0x20] sm:$0xff]  ;;  %v1318_v39 = vld [vmem:[%s2542_s4 + $0x28] sm:$0xff] }
  0x1e   :  { %1642 = vmatmul.mubr.msk.f32.gmra.mrb[2].mxu0 %vm56_vm0, %v2005_v15  ;;  %1657 = vmatmul.mubr.msk.f32.gmra.mrb[2].mxu1 %vm56_vm0, %v2012_v18  ;;  %v1833_v37 = vpack.c.bf16 %v1316_v36, %v1315_v35  ;;  %v1836_v40 = vpack.c.bf16 %v1318_v39, %v1317_v38  ;;  %v1319_v41 = vld [vmem:[%s2542_s4 + $0x30] sm:$0xff]  ;;  %v1320_v42 = vld [vmem:[%s2542_s4 + $0x38] sm:$0xff]  ;;  %v1321_v44 = vld [vmem:[%s2542_s4 + $0x40] sm:$0xff]  ;;  %p1892_p12 = pnand %p1891_p11, %p1885_p8 }
  0x1f   :  { %1644 = vmatprep.mubr.msk.f32.mxu0 %vm56_vm0, %v2019_v21  ;;  %1659 = vmatprep.mubr.msk.f32.mxu1 %vm56_vm0, %v2024_v22  ;;  %v1839_v43 = vpack.c.bf16 %v1320_v42, %v1319_v41  ;;  %v1322_v45 = vld [vmem:[%s2542_s4 + $0x48] sm:$0xff]  ;;  %v1323_v47 = vld [vmem:[%s2542_s4 + $0x50] sm:$0xff]  ;;  %v1324_v48 = vld [vmem:[%s2542_s4 + $0x58] sm:$0xff] }
  0x20   :  { %v1842_v46 = vpack.c.bf16 %v1322_v45, %v1321_v44  ;;  %v1845_v49 = vpack.c.bf16 %v1324_v48, %v1323_v47  ;;  %v1325_v50 = vld [vmem:[%s2542_s4 + $0x60] sm:$0xff]  ;;  %v1326_v51 = vld [vmem:[%s2542_s4 + $0x68] sm:$0xff]  ;;  %v1327_v53 = vld [vmem:[%s2542_s4 + $0x70] sm:$0xff] }
  0x21   :  { %v1848_v52 = vpack.c.bf16 %v1326_v51, %v1325_v50  ;;  %v1328_v54 = vld [vmem:[%s2542_s4 + $0x78] sm:$0xff] }
  0x22   :  { %1645 = vmatmul.mubr.msk.f32.gmra.mrb[4].mxu0 %vm56_vm0, %v2037_v25  ;;  %1660 = vmatmul.mubr.msk.f32.gmra.mrb[4].mxu1 %vm56_vm0, %v2042_v26  ;;  %v1851_v56 = vpack.c.bf16 %v1328_v54, %v1327_v53 }
  0x23   :  { %1647 = vmatprep.mubr.msk.f32.mxu0 %vm56_vm0, %v2047_v27  ;;  %1666 = vmatprep.mubr.msk.f32.mxu1 %vm56_vm0, %v1967_v2 }
  0x26   :  { %1648 = vmatmul.mubr.msk.f32.gmra.mrb[6].mxu0 %vm56_vm0, %v45_v28  ;;  %1667 = vmatmul.mubr.msk.f32.vlgmr.msra.gmra.mrb[6].mxu1 %vm56_vm0, %v1981_v7 }
  0x27   :  { %1650 = vmatprep.mubr.msk.f32.mxu0 %vm56_vm0, %v46_v29  ;;  %1669 = vmatprep.mubr.msk.f32.mxu1 %vm56_vm0, %v1991_v12 }
  0x28   :  { %1824 = vmatpush3.bf16.msra.mxu1 %v1821_v23 }
  0x29   :  { %1829 = vmatprep.subr.bf16.mxu1 %v1913_v34 }
  0x2a   :  { %1651 = vmatmul.mubr.msk.f32.gmra.mrb[8].mxu0 %vm56_vm0, %v47_v30  ;;  %1670 = vmatmul.mubr.msk.f32.gmra.mrb[8].mxu1 %vm56_vm0, %v2005_v15 }
  0x2b   :  { %1672 = vmatprep.mubr.msk.f32.mxu1 %vm56_vm0, %v2019_v21  ;;  %1694 = vmatprep.mubr.msk.f32.mxu0 %vm56_vm0, %v1967_v2 }
  0x2e   :  { %1673 = vmatmul.mubr.msk.f32.gmra.mrb[10].mxu1 %vm56_vm0, %v2037_v25  ;;  %1695 = vmatmul.mubr.msk.f32.vlgmr.msra.gmra.mrb[10].mxu0 %vm56_vm0, %v1981_v7 }
  0x2f   :  { %1828 = vmatpush3.bf16.msra.mxu0 %v1825_v24  ;;  %1675 = vmatprep.mubr.msk.f32.mxu1 %vm56_vm0, %v2047_v27 }
  0x30   :  { %1697 = vmatprep.mubr.msk.f32.mxu0 %vm56_vm0, %v1991_v12 }
  0x32   :  { %1676 = vmatmul.mubr.msk.f32.gmra.mrb[12].mxu1 %vm56_vm0, %v45_v28  ;;  %1698 = vmatmul.mubr.msk.f32.gmra.mrb[12].mxu0 %vm56_vm0, %v2005_v15 }
  0x33   :  { %1678 = vmatprep.mubr.msk.f32.mxu1 %vm56_vm0, %v46_v29  ;;  %1700 = vmatprep.mubr.msk.f32.mxu0 %vm56_vm0, %v2019_v21 }
  0x36   :  { %1679 = vmatmul.mubr.msk.f32.gmra.mrb[14].mxu1 %vm56_vm0, %v47_v30  ;;  %1701 = vmatmul.mubr.msk.f32.gmra.mrb[14].mxu0 %vm56_vm0, %v2037_v25 }
  0x37   :  { %1681 = vmatprep.mubr.msk.f32.mxu1 %vm56_vm0, %v1974_v4  ;;  %1703 = vmatprep.mubr.msk.f32.mxu0 %vm56_vm0, %v2047_v27 }
  0x3a   :  { %1682 = vmatmul.mubr.msk.f32.gmra.mrb[16].mxu1 %vm56_vm0, %v1986_v9  ;;  %1704 = vmatmul.mubr.msk.f32.gmra.mrb[16].mxu0 %vm56_vm0, %v45_v28 }
  0x3b   :  { %1684 = vmatprep.mubr.msk.f32.mxu1 %vm56_vm0, %v1996_v14  ;;  %1706 = vmatprep.mubr.msk.f32.mxu0 %vm56_vm0, %v46_v29 }
  0x3e   :  { %1685 = vmatmul.mubr.msk.f32.gmra.mrb[18].mxu1 %vm56_vm0, %v2012_v18  ;;  %1707 = vmatmul.mubr.msk.f32.gmra.mrb[18].mxu0 %vm56_vm0, %v47_v30 }
  0x3f   :  { %1687 = vmatprep.mubr.msk.f32.mxu1 %vm56_vm0, %v2024_v22  ;;  %1709 = vmatprep.mubr.msk.f32.mxu0 %vm56_vm0, %v1974_v4 }
  0x42   :  { %1688 = vmatmul.mubr.msk.f32.gmra.mrb[20].mxu1 %vm56_vm0, %v2042_v26  ;;  %1710 = vmatmul.mubr.msk.f32.gmra.mrb[20].mxu0 %vm56_vm0, %v1986_v9 }
  0x43   :  { %1712 = vmatprep.mubr.msk.f32.mxu0 %vm56_vm0, %v1996_v14  ;;  %1722 = vmatprep.mubr.msk.f32.mxu1 %vm56_vm0, %v1967_v2 }
  0x46   :  { %1713 = vmatmul.mubr.msk.f32.gmra.mrb[22].mxu0 %vm56_vm0, %v2012_v18  ;;  %1723 = vmatmul.mubr.msk.f32.vlgmr.msra.gmra.mrb[22].mxu1 %vm56_vm0, %v1981_v7 }
  0x47   :  { %1715 = vmatprep.mubr.msk.f32.mxu0 %vm56_vm0, %v2024_v22  ;;  %1725 = vmatprep.mubr.msk.f32.mxu1 %vm56_vm0, %v1991_v12 }
  0x48   :  { %1831 = vmatpush3.bf16.msra.mxu1 %v1830_v33 }
  0x49   :  { %1832 = vmatprep.subr.bf16.mxu1 %v1913_v34 }
  0x4a   :  { %1716 = vmatmul.mubr.msk.f32.gmra.mrb[24].mxu0 %vm56_vm0, %v2042_v26  ;;  %1726 = vmatmul.mubr.msk.f32.gmra.mrb[24].mxu1 %vm56_vm0, %v2005_v15 }
  0x4b   :  { %1728 = vmatprep.mubr.msk.f32.mxu1 %vm56_vm0, %v2019_v21  ;;  %1750 = vmatprep.mubr.msk.f32.mxu0 %vm56_vm0, %v1967_v2 }
  0x4c   :  { %1834 = vmatpush3.bf16.msra.mxu1 %v1833_v37 }
  0x4d   :  { %1835 = vmatprep.subr.bf16.mxu1 %v1913_v34 }
  0x4e   :  { %1729 = vmatmul.mubr.msk.f32.gmra.mrb[26].mxu1 %vm56_vm0, %v2037_v25  ;;  %1751 = vmatmul.mubr.msk.f32.vlgmr.msra.gmra.mrb[26].mxu0 %vm56_vm0, %v1981_v7 }
  0x4f   :  { %1731 = vmatprep.mubr.msk.f32.mxu1 %vm56_vm0, %v2047_v27  ;;  %1753 = vmatprep.mubr.msk.f32.mxu0 %vm56_vm0, %v1991_v12 }
  0x50   :  { %1837 = vmatpush3.bf16.msra.mxu1 %v1836_v40 }
  0x51   :  { %1838 = vmatprep.subr.bf16.mxu1 %v1913_v34 }
  0x52   :  { %1732 = vmatmul.mubr.msk.f32.gmra.mrb[28].mxu1 %vm56_vm0, %v45_v28  ;;  %1754 = vmatmul.mubr.msk.f32.gmra.mrb[28].mxu0 %vm56_vm0, %v2005_v15 }
  0x53   :  { %1734 = vmatprep.mubr.msk.f32.mxu1 %vm56_vm0, %v46_v29  ;;  %1756 = vmatprep.mubr.msk.f32.mxu0 %vm56_vm0, %v2019_v21 }
  0x54   :  { %1840 = vmatpush3.bf16.msra.mxu1 %v1839_v43 }
  0x55   :  { %1841 = vmatprep.subr.bf16.mxu1 %v1913_v34 }
  0x56   :  { %1735 = vmatmul.mubr.msk.f32.gmra.mrb[30].mxu1 %vm56_vm0, %v47_v30  ;;  %1757 = vmatmul.mubr.msk.f32.gmra.mrb[30].mxu0 %vm56_vm0, %v2037_v25 }
  0x57   :  { %1737 = vmatprep.mubr.msk.f32.mxu1 %vm56_vm0, %v1974_v4  ;;  %1759 = vmatprep.mubr.msk.f32.mxu0 %vm56_vm0, %v2047_v27 }
  0x58   :  { %1843 = vmatpush3.bf16.msra.mxu1 %v1842_v46 }
  0x59   :  { %1844 = vmatprep.subr.bf16.mxu1 %v1913_v34 }
  0x5a   :  { %1738 = vmatmul.mubr.msk.f32.gmra.mrb[32].mxu1 %vm56_vm0, %v1986_v9  ;;  %1760 = vmatmul.mubr.msk.f32.gmra.mrb[32].mxu0 %vm56_vm0, %v45_v28 }
  0x5b   :  { %1740 = vmatprep.mubr.msk.f32.mxu1 %vm56_vm0, %v1996_v14  ;;  %1762 = vmatprep.mubr.msk.f32.mxu0 %vm56_vm0, %v46_v29 }
  0x5c   :  { %1846 = vmatpush3.bf16.msra.mxu1 %v1845_v49 }
  0x5d   :  { %1847 = vmatprep.subr.bf16.mxu1 %v1913_v34 }
  0x5e   :  { %1741 = vmatmul.mubr.msk.f32.gmra.mrb[34].mxu1 %vm56_vm0, %v2012_v18  ;;  %1763 = vmatmul.mubr.msk.f32.gmra.mrb[34].mxu0 %vm56_vm0, %v47_v30 }
  0x5f   :  { %1743 = vmatprep.mubr.msk.f32.mxu1 %vm56_vm0, %v2024_v22  ;;  %1765 = vmatprep.mubr.msk.f32.mxu0 %vm56_vm0, %v1974_v4 }
  0x60   :  { %1849 = vmatpush3.bf16.msra.mxu1 %v1848_v52 }
  0x61   :  { %1850 = vmatprep.subr.bf16.mxu1 %v1913_v34 }
  0x62   :  { %1744 = vmatmul.mubr.msk.f32.gmra.mrb[36].mxu1 %vm56_vm0, %v2042_v26  ;;  %1766 = vmatmul.mubr.msk.f32.gmra.mrb[36].mxu0 %vm56_vm0, %v1986_v9 }
  0x63   :  { %1768 = vmatprep.mubr.msk.f32.mxu0 %vm56_vm0, %v1996_v14  ;;  %1806 = vmatprep.mubr.msk.f32.mxu1 %vm1914_vm1, %v1915_v55 }
  0x64   :  { %1852 = vmatpush3.bf16.msra.mxu1 %v1851_v56 }
  0x66   :  { %1769 = vmatmul.mubr.msk.f32.gmra.mrb[38].mxu0 %vm56_vm0, %v2012_v18 }
  0x67   :  { %1771 = vmatprep.mubr.msk.f32.mxu0 %vm56_vm0, %v2024_v22 }
  0x6a   :  { %1772 = vmatmul.mubr.msk.f32.gmra.mrb[40].mxu0 %vm56_vm0, %v2042_v26 }
  0xed   :  { %v1640_v57 = vpop.f32.mrb[0].mxu0  ;;  %v2231_v58 = vpop.f32.mrb[0].mxu1 }
  0xee   :  { %v2233_v59 = vpop.f32.mrb[1].mxu0  ;;  %v2235_v60 = vpop.f32.mrb[1].mxu1 }
  0xf1   :  { %v1643_v61 = vpop.f32.mrb[2].mxu0  ;;  %v2237_v62 = vpop.f32.mrb[2].mxu1 }
  0xf2   :  { %v181_v63 = vpop.f32.mrb[3].mxu0  ;;  %v2239_v0 = vpop.f32.mrb[3].mxu1 }
  0xf5   :  { %v1646_v2 = vpop.f32.mrb[4].mxu0  ;;  %v2241_v3 = vpop.f32.mrb[4].mxu1 }
  0xf6   :  { %v191_v4 = vpop.f32.mrb[5].mxu0  ;;  %v2243_v5 = vpop.f32.mrb[5].mxu1 }
  0xf9   :  { %v1649_v7 = vpop.f32.mrb[6].mxu0  ;;  %v1668_v8 = vpop.f32.mrb[6].mxu1 }
  0xfa   :  { %v415_v9 = vrot.slane %v1668_v8, 7  ;;  %v201_v10 = vpop.f32.mrb[7].mxu0  ;;  %v2247_v11 = vpop.f32.mrb[7].mxu1 }
  0xfb   :  { %v414_v12 = vrot.slane %v2247_v11, 7 }
  0xfd   :  { %v447_v13 = vsel %vm432_vm2, %v414_v12, %v415_v9  ;;  %v1652_v14 = vpop.f32.mrb[8].mxu0  ;;  %v1671_v15 = vpop.f32.mrb[8].mxu1 }
  0xfe   :  { %v466_v16 = vadd.f32 %v1640_v57, %v447_v13  ;;  %v417_v17 = vrot.slane %v1671_v15, 7  ;;  %v211_v18 = vpop.f32.mrb[9].mxu0  ;;  %v345_v19 = vpop.f32.mrb[9].mxu1 }
  0xff   :  { %v416_v20 = vrot.slane %v345_v19, 7 }
 0x101   :  { %v445_v21 = vsel %vm432_vm2, %v416_v20, %v417_v17  ;;  %v446_v22 = vsel %vm432_vm2, %v415_v9, %v416_v20  ;;  %v1674_v23 = vpop.f32.mrb[10].mxu1  ;;  %v1696_v24 = vpop.f32.mrb[10].mxu0 }
 0x102   :  { %v467_v25 = vadd.f32 %v446_v22, %v181_v63  ;;  %v468_v26 = vadd.f32 %v1643_v61, %v445_v21  ;;  %v419_v27 = vrot.slane %v1674_v23, 7  ;;  %v646_v28 = vrot.slane %v1696_v24, 6  ;;  %v355_v29 = vpop.f32.mrb[11].mxu1  ;;  %v2260_v30 = vpop.f32.mrb[11].mxu0 }
 0x103   :  { %v418_v31 = vrot.slane %v355_v29, 7  ;;  %v645_v32 = vrot.slane %v2260_v30, 6 }
 0x105   :  { %v443_v33 = vsel %vm432_vm2, %v418_v31, %v419_v27  ;;  %v444_v34 = vsel %vm432_vm2, %v417_v17, %v418_v31  ;;  %v676_v35 = vsel %vm661_vm3, %v645_v32, %v646_v28  ;;  %v1677_v36 = vpop.f32.mrb[12].mxu1  ;;  %v1699_v37 = vpop.f32.mrb[12].mxu0 }
 0x106   :  { %v469_v38 = vadd.f32 %v444_v34, %v191_v4  ;;  %v470_v39 = vadd.f32 %v1646_v2, %v443_v33  ;;  %v2271_v40 = vadd.f32 %v676_v35, %v466_v16  ;;  %v421_v41 = vrot.slane %v1677_v36, 7  ;;  %v365_v42 = vpop.f32.mrb[13].mxu1  ;;  %v576_v43 = vpop.f32.mrb[13].mxu0 }
 0x107   :  { %v648_v44 = vrot.slane %v1699_v37, 6  ;;  %v420_v45 = vrot.slane %v365_v42, 7  ;;  %v647_v46 = vrot.slane %v576_v43, 6 }
 0x109   :  { %v441_v47 = vsel %vm432_vm2, %v420_v45, %v421_v41  ;;  %v442_v48 = vsel %vm432_vm2, %v419_v27, %v420_v45  ;;  %v674_v49 = vsel %vm661_vm3, %v647_v46, %v648_v44  ;;  %v675_v50 = vsel %vm661_vm3, %v646_v28, %v647_v46  ;;  %v1680_v51 = vpop.f32.mrb[14].mxu1  ;;  %v1702_v52 = vpop.f32.mrb[14].mxu0 }
 0x10a   :  { %v471_v53 = vadd.f32 %v442_v48, %v201_v10  ;;  %v472_v54 = vadd.f32 %v1649_v7, %v441_v47  ;;  %v2281_v55 = vadd.f32 %v675_v50, %v467_v25  ;;  %v2283_v56 = vadd.f32 %v674_v49, %v468_v26  ;;  %v375_v57 = vpop.f32.mrb[15].mxu1  ;;  %v586_v61 = vpop.f32.mrb[15].mxu0 }
 0x10b   :  { %v423_v63 = vrot.slane %v1680_v51, 7  ;;  %v650_v1 = vrot.slane %v1702_v52, 6  ;;  %v422_v2 = vrot.slane %v375_v57, 7  ;;  %v649_v4 = vrot.slane %v586_v61, 6 }
 0x10d   :  { %v439_v8 = vsel %vm432_vm2, %v422_v2, %v423_v63  ;;  %v440_v9 = vsel %vm432_vm2, %v421_v41, %v422_v2  ;;  %v672_v10 = vsel %vm661_vm3, %v649_v4, %v650_v1  ;;  %v673_v7 = vsel %vm661_vm3, %v648_v44, %v649_v4  ;;  %v1683_v13 = vpop.f32.mrb[16].mxu1  ;;  %v1705_v15 = vpop.f32.mrb[16].mxu0 }
 0x10e   :  { %v473_v16 = vadd.f32 %v440_v9, %v211_v18  ;;  %v474_v17 = vadd.f32 %v1652_v14, %v439_v8  ;;  %v2293_v19 = vadd.f32 %v673_v7, %v469_v38  ;;  %v2295_v20 = vadd.f32 %v672_v10, %v470_v39  ;;  %v385_v21 = vpop.f32.mrb[17].mxu1  ;;  %v596_v22 = vpop.f32.mrb[17].mxu0 }
 0x10f   :  { %v425_v23 = vrot.slane %v1683_v13, 7  ;;  %v652_v24 = vrot.slane %v1705_v15, 6  ;;  %v424_v25 = vrot.slane %v385_v21, 7  ;;  %v651_v26 = vrot.slane %v596_v22, 6 }
 0x111   :  { %v437_v27 = vsel %vm432_vm2, %v424_v25, %v425_v23  ;;  %v438_v28 = vsel %vm432_vm2, %v423_v63, %v424_v25  ;;  %v670_v18 = vsel %vm661_vm3, %v651_v26, %v652_v24  ;;  %v671_v14 = vsel %vm661_vm3, %v650_v1, %v651_v26  ;;  %v1686_v29 = vpop.f32.mrb[18].mxu1  ;;  %v1708_v31 = vpop.f32.mrb[18].mxu0 }
 0x112   :  { %v475_v33 = vadd.f32 %v438_v28, %v2235_v60  ;;  %v476_v34 = vadd.f32 %v2231_v58, %v437_v27  ;;  %v2307_v35 = vadd.f32 %v671_v14, %v471_v53  ;;  %v2309_v36 = vadd.f32 %v670_v18, %v472_v54  ;;  %v395_v37 = vpop.f32.mrb[19].mxu1  ;;  %v606_v38 = vpop.f32.mrb[19].mxu0 }
 0x113   :  { %v427_v39 = vrot.slane %v1686_v29, 7  ;;  %v654_v41 = vrot.slane %v1708_v31, 6  ;;  %v426_v42 = vrot.slane %v395_v37, 7  ;;  %v653_v43 = vrot.slane %v606_v38, 6 }
 0x115   :  { %v435_v44 = vsel %vm432_vm2, %v426_v42, %v427_v39  ;;  %v436_v45 = vsel %vm432_vm2, %v425_v23, %v426_v42  ;;  %v668_v60 = vsel %vm661_vm3, %v653_v43, %v654_v41  ;;  %v669_v58 = vsel %vm661_vm3, %v652_v24, %v653_v43  ;;  %v1689_v46 = vpop.f32.mrb[20].mxu1  ;;  %v1711_v47 = vpop.f32.mrb[20].mxu0 }
 0x116   :  { %v477_v48 = vadd.f32 %v436_v45, %v2239_v0  ;;  %v478_v49 = vadd.f32 %v2237_v62, %v435_v44  ;;  %v2321_v50 = vadd.f32 %v669_v58, %v473_v16  ;;  %v2323_v51 = vadd.f32 %v668_v60, %v474_v17  ;;  %v405_v52 = vpop.f32.mrb[21].mxu1  ;;  %v616_v53 = vpop.f32.mrb[21].mxu0 }
 0x117   :  { %v429_v54 = vrot.slane %v1689_v46, 7  ;;  %v656_v57 = vrot.slane %v1711_v47, 6  ;;  %v428_v61 = vrot.slane %v405_v52, 7  ;;  %v655_v63 = vrot.slane %v616_v53, 6 }
 0x119   :  { %v448_v1 = vsel %vm432_vm2, %v429_v54, %v414_v12  ;;  %v433_v62 = vsel %vm432_vm2, %v428_v61, %v429_v54  ;;  %v434_v0 = vsel %vm432_vm2, %v427_v39, %v428_v61  ;;  %v666_v2 = vsel %vm661_vm3, %v655_v63, %v656_v57  ;;  %v1714_v4 = vpop.f32.mrb[22].mxu0  ;;  %v1724_v8 = vpop.f32.mrb[22].mxu1 }
 0x11a   :  { %v465_v9 = vadd.f32 %v448_v1, %v2233_v59  ;;  %v479_v10 = vadd.f32 %v434_v0, %v2243_v5  ;;  %v480_v11 = vadd.f32 %v2241_v3, %v433_v62  ;;  %v667_v12 = vsel %vm661_vm3, %v654_v41, %v655_v63  ;;  %v626_v7 = vpop.f32.mrb[23].mxu0  ;;  %v2341_v13 = vpop.f32.mrb[23].mxu1 }
 0x11b   :  { %v2343_v15 = vadd.f32 %v667_v12, %v475_v33  ;;  %v2345_v16 = vadd.f32 %v666_v2, %v476_v34  ;;  %v658_v17 = vrot.slane %v1714_v4, 6  ;;  %v875_v21 = vrot.slane %v1724_v8, 5 }
 0x11c   :  { %v657_v22 = vrot.slane %v626_v7, 6  ;;  %v874_v23 = vrot.slane %v2341_v13, 5 }
 0x11d   :  { %v1717_v59 = vpop.f32.mrb[24].mxu0  ;;  %v1727_v24 = vpop.f32.mrb[24].mxu1 }
 0x11e   :  { %v664_v3 = vsel %vm661_vm3, %v657_v22, %v658_v17  ;;  %v665_v5 = vsel %vm661_vm3, %v656_v57, %v657_v22  ;;  %v905_v25 = vsel %vm890_vm4, %v874_v23, %v875_v21  ;;  %v660_v26 = vrot.slane %v1717_v59, 6  ;;  %v636_v27 = vpop.f32.mrb[25].mxu0  ;;  %v805_v28 = vpop.f32.mrb[25].mxu1 }
 0x11f   :  { %v2356_v18 = vadd.f32 %v665_v5, %v477_v48  ;;  %v2358_v14 = vadd.f32 %v664_v3, %v478_v49  ;;  %v924_v29 = vadd.f32 %v905_v25, %v2271_v40  ;;  %v877_v31 = vrot.slane %v1727_v24, 5  ;;  %v2410_v3 = vld [vmem:[%s2540_s2] ss:$0 sm:$0xff] }
 0x120   :  { %v677_v33 = vsel %vm661_vm3, %v660_v26, %v645_v32  ;;  %v659_v34 = vrot.slane %v636_v27, 6  ;;  %v876_v37 = vrot.slane %v805_v28, 5 }
 0x121   :  { %v2365_v38 = vadd.f32 %v677_v33, %v465_v9  ;;  %v1730_v39 = vpop.f32.mrb[26].mxu1  ;;  %v1752_v41 = vpop.f32.mrb[26].mxu0 }
 0x122   :  { %v662_v42 = vsel %vm661_vm3, %v659_v34, %v660_v26  ;;  %v663_v40 = vsel %vm661_vm3, %v658_v17, %v659_v34  ;;  %v903_v30 = vsel %vm890_vm4, %v876_v37, %v877_v31  ;;  %v904_v32 = vsel %vm890_vm4, %v875_v21, %v876_v37  ;;  %v815_v43 = vpop.f32.mrb[27].mxu1  ;;  %v2376_v44 = vpop.f32.mrb[27].mxu0 }
 0x123   :  { %v2378_v45 = vadd.f32 %v663_v40, %v479_v10  ;;  %v2380_v60 = vadd.f32 %v662_v42, %v480_v11  ;;  %v925_v58 = vadd.f32 %v904_v32, %v2281_v55  ;;  %v926_v46 = vadd.f32 %v903_v30, %v2283_v56 }
 0x124   :  { %v879_v47 = vrot.slane %v1730_v39, 5  ;;  %v1104_v48 = vrot.slane %v1752_v41, 4  ;;  %v878_v49 = vrot.slane %v815_v43, 5  ;;  %v1103_v52 = vrot.slane %v2376_v44, 4 }
 0x125   :  { %v1733_v53 = vpop.f32.mrb[28].mxu1  ;;  %v1755_v54 = vpop.f32.mrb[28].mxu0 }
 0x126   :  { %v901_v57 = vsel %vm890_vm4, %v878_v49, %v879_v47  ;;  %v902_v61 = vsel %vm890_vm4, %v877_v31, %v878_v49  ;;  %v1134_v55 = vsel %vm1119_vm5, %v1103_v52, %v1104_v48  ;;  %v881_v63 = vrot.slane %v1733_v53, 5  ;;  %v825_v56 = vpop.f32.mrb[29].mxu1  ;;  %v1034_v1 = vpop.f32.mrb[29].mxu0  ;;  %v2432_v49 = vld [vmem:[%s2541_s3 + $0x8] sm:$0xff] }
 0x127   :  { %v927_v62 = vadd.f32 %v902_v61, %v2293_v19  ;;  %v928_v0 = vadd.f32 %v901_v57, %v2295_v20  ;;  %v2395_v2 = vadd.f32 %v1134_v55, %v924_v29  ;;  %v1106_v4 = vrot.slane %v1755_v54, 4 }
 0x128   :  { %v880_v8 = vrot.slane %v825_v56, 5  ;;  %v1105_v9 = vrot.slane %v1034_v1, 4 }
 0x129   :  { %v1736_v10 = vpop.f32.mrb[30].mxu1  ;;  %v1758_v11 = vpop.f32.mrb[30].mxu0 }
 0x12a   :  { %v899_v12 = vsel %vm890_vm4, %v880_v8, %v881_v63  ;;  %v900_v7 = vsel %vm890_vm4, %v879_v47, %v880_v8  ;;  %v1132_v17 = vsel %vm1119_vm5, %v1105_v9, %v1106_v4  ;;  %v1133_v19 = vsel %vm1119_vm5, %v1104_v48, %v1105_v9  ;;  %v835_v20 = vpop.f32.mrb[31].mxu1  ;;  %v1044_v21 = vpop.f32.mrb[31].mxu0 }
 0x12b   :  { %v929_v22 = vadd.f32 %v900_v7, %v2307_v35  ;;  %v930_v59 = vadd.f32 %v899_v12, %v2309_v36  ;;  %v1154_v24 = vadd.f32 %v1133_v19, %v925_v58  ;;  %v1155_v5 = vadd.f32 %v1132_v17, %v926_v46  ;;  %v2417_v35 = vld [vmem:[%s2541_s3] sm:$0xff] }
 0x12c   :  { %v883_v25 = vrot.slane %v1736_v10, 5  ;;  %v1108_v26 = vrot.slane %v1758_v11, 4  ;;  %v882_v27 = vrot.slane %v835_v20, 5  ;;  %v1107_v29 = vrot.slane %v1044_v21, 4 }
 0x12d   :  { %v1209_v28 = vadd.f32 %v2410_v3, %v1154_v24  ;;  %v1739_v31 = vpop.f32.mrb[32].mxu1  ;;  %v1761_v33 = vpop.f32.mrb[32].mxu0  ;;  %v1210_v34 = vadd.f32 %v2410_v3, %v1155_v5 }
 0x12e   :  { %v897_v36 = vsel %vm890_vm4, %v882_v27, %v883_v25  ;;  %v898_v37 = vsel %vm890_vm4, %v881_v63, %v882_v27  ;;  %v885_v39 = vrot.slane %v1739_v31, 5  ;;  %v845_v41 = vpop.f32.mrb[33].mxu1  ;;  %v1054_v42 = vpop.f32.mrb[33].mxu0  ;;  %v1130_v43 = vsel %vm1119_vm5, %v1107_v29, %v1108_v26 }
 0x12f   :  { %v1225_v40 = vmax.f32 %v1209_v28, 0.0  ;;  %v931_v30 = vadd.f32 %v898_v37, %v2321_v50  ;;  %v932_v32 = vadd.f32 %v897_v36, %v2323_v51  ;;  %v1226_v58 = vmax.f32 %v1210_v34, 0.0 }
 0x130   :  { %v1131_v46 = vsel %vm1119_vm5, %v1106_v4, %v1107_v29  ;;  %v1157_v47 = vadd.f32 %v1130_v43, %v928_v0  ;;  %v1110_v48 = vrot.slane %v1761_v33, 4  ;;  %v884_v50 = vrot.slane %v845_v41, 5 }
 0x131   :  { %v1243_v53 = vmul.f32 %v2417_v35, %v1225_v40  ;;  %v1156_v54 = vadd.f32 %v1131_v46, %v927_v62  ;;  %v1109_v57 = vrot.slane %v1054_v42, 4  ;;  %v1742_v51 = vpop.f32.mrb[34].mxu1  ;;  %v2435_v61 = vpop.f32.mrb[34].mxu0  ;;  %v1244_v55 = vmul.f32 %v2432_v49, %v1226_v58 }
 0x132   :  { %v1212_v63 = vadd.f32 %v2410_v3, %v1157_v47  ;;  %v887_v56 = vrot.slane %v1742_v51, 5  ;;  %v1112_v1 = vrot.slane %v2435_v61, 4  ;;  %v855_v0 = vpop.f32.mrb[35].mxu1  ;;  %v1064_v4 = vpop.f32.mrb[35].mxu0  ;;  %v895_v9 = vsel %vm890_vm4, %v884_v50, %v885_v39 }
 0x133   :  { %v1211_v8 = vadd.f32 %v2410_v3, %v1156_v54  ;;  %v896_v62 = vsel %vm890_vm4, %v883_v25, %v884_v50  ;;  %v1128_v10 = vsel %vm1119_vm5, %v1109_v57, %v1110_v48  ;;  %v2447_v11 = vmax.f32 %v1243_v53, %v1244_v55 }
 0x134   :  { %v1228_v12 = vmax.f32 %v1212_v63, 0.0  ;;  %v933_v7 = vadd.f32 %v896_v62, %v2343_v15  ;;  %v934_v17 = vadd.f32 %v895_v9, %v2345_v16  ;;  %v1129_v20 = vsel %vm1119_vm5, %v1108_v26, %v1109_v57 }
 0x135   :  { %v1227_v19 = vmax.f32 %v1211_v8, 0.0  ;;  %v1159_v21 = vadd.f32 %v1128_v10, %v930_v59  ;;  %v886_v24 = vrot.slane %v855_v0, 5  ;;  %v1745_v5 = vpop.f32.mrb[36].mxu1  ;;  %v1767_v27 = vpop.f32.mrb[36].mxu0  ;;  %v1158_v28 = vadd.f32 %v1129_v20, %v929_v22 }
 0x136   :  { %v1246_v25 = vmul.f32 %v2432_v49, %v1228_v12  ;;  %v1111_v29 = vrot.slane %v1064_v4, 4  ;;  %v865_v31 = vpop.f32.mrb[37].mxu1  ;;  %v1074_v33 = vpop.f32.mrb[37].mxu0  ;;  %v889_v54 = vrot.slane %v1745_v5, 5 }
 0x137   :  { %v1245_v34 = vmul.f32 %v2417_v35, %v1227_v19  ;;  %v1214_v15 = vadd.f32 %v2410_v3, %v1159_v21  ;;  %v893_v16 = vsel %vm890_vm4, %v886_v24, %v887_v56  ;;  %v894_v26 = vsel %vm890_vm4, %v885_v39, %v886_v24 }
 0x138   :  { %v1213_v59 = vadd.f32 %v2410_v3, %v1158_v28  ;;  %v935_v36 = vadd.f32 %v894_v26, %v2356_v18  ;;  %v936_v37 = vadd.f32 %v893_v16, %v2358_v14  ;;  %v1126_v42 = vsel %vm1119_vm5, %v1111_v29, %v1112_v1 }
 0x139   :  { %v2463_v22 = vmax.f32 %v1245_v34, %v1246_v25  ;;  %v1230_v41 = vmax.f32 %v1214_v15, 0.0  ;;  %v1127_v40 = vsel %vm1119_vm5, %v1110_v48, %v1111_v29  ;;  %v1770_v43 = vpop.f32.mrb[38].mxu0  ;;  %v1161_v47 = vadd.f32 %v1126_v42, %v932_v32 }
 0x13a   :  { %v1229_v58 = vmax.f32 %v1213_v59, 0.0  ;;  %v1160_v46 = vadd.f32 %v1127_v40, %v931_v30  ;;  %v1084_v39 = vpop.f32.mrb[39].mxu0  ;;  %v906_v57 = vsel %vm890_vm4, %v889_v54, %v874_v23  ;;  %v1114_v48 = vrot.slane %v1767_v27, 4 }
 0x13b   :  { %v1248_v53 = vmul.f32 %v2432_v49, %v1230_v41  ;;  %v1216_v50 = vadd.f32 %v2410_v3, %v1161_v47  ;;  %v888_v51 = vrot.slane %v865_v31, 5  ;;  %v1113_v61 = vrot.slane %v1074_v33, 4 }
 0x13c   :  { %v1247_v18 = vmul.f32 %v2417_v35, %v1229_v58  ;;  %v1215_v14 = vadd.f32 %v2410_v3, %v1160_v46  ;;  %v923_v4 = vadd.f32 %v906_v57, %v2365_v38  ;;  %v1116_v24 = vrot.slane %v1770_v43, 4 }
 0x13d   :  { %v1773_v30 = vpop.f32.mrb[40].mxu0  ;;  %v1232_v63 = vmax.f32 %v1216_v50, 0.0  ;;  %v891_v8 = vsel %vm890_vm4, %v888_v51, %v889_v54  ;;  %v892_v9 = vsel %vm890_vm4, %v887_v56, %v888_v51  ;;  %v1124_v12 = vsel %vm1119_vm5, %v1113_v61, %v1114_v48 }
 0x13e   :  { %v1278_v32 = vmax.f32 %v1247_v18, %v1248_v53  ;;  %v1231_v55 = vmax.f32 %v1215_v14, 0.0  ;;  %v1094_v0 = vpop.f32.mrb[41].mxu0  ;;  %v937_v62 = vadd.f32 %v892_v9, %v2378_v45  ;;  %v938_v10 = vadd.f32 %v891_v8, %v2380_v60 }
 0x13f   :  { %v1250_v23 = vmul.f32 %v2432_v49, %v1232_v63  ;;  %v1125_v38 = vsel %vm1119_vm5, %v1112_v1, %v1113_v61  ;;  %v1163_v20 = vadd.f32 %v1124_v12, %v934_v17  ;;  %v1115_v5 = vrot.slane %v1084_v39, 4 }
 0x140   :  { %v1249_v13 = vmul.f32 %v2417_v35, %v1231_v55  ;;  %v1162_v21 = vadd.f32 %v1125_v38, %v933_v7  ;;  %v1208_v56 = vadd.f32 %v2410_v3, %v2395_v2  ;;  %v1118_v25 = vrot.slane %v1773_v30, 4 }
 0x141   :  { %v1218_v27 = vadd.f32 %v2410_v3, %v1163_v20  ;;  %v1122_v60 = vsel %vm1119_vm5, %v1115_v5, %v1116_v24  ;;  %v1123_v28 = vsel %vm1119_vm5, %v1114_v48, %v1115_v5  ;;  %v1117_v31 = vrot.slane %v1094_v0, 4 }
 0x142   :  { %v1285_v19 = vmax.f32 %v1249_v13, %v1250_v23  ;;  %v1217_v45 = vadd.f32 %v2410_v3, %v1162_v21  ;;  %v1164_v1 = vadd.f32 %v1123_v28, %v935_v36  ;;  %v1165_v7 = vadd.f32 %v1122_v60, %v936_v37 }
 0x143   :  { %v1234_v29 = vmax.f32 %v1218_v27, 0.0  ;;  %v1135_v2 = vsel %vm1119_vm5, %v1118_v25, %v1103_v52  ;;  %v1224_v33 = vmax.f32 %v1208_v56, 0.0  ;;  %v1265_v34 = vrot.slane %v2447_v11, 4 }
 0x144   :  { %v1233_v17 = vmax.f32 %v1217_v45, 0.0  ;;  %v1219_v16 = vadd.f32 %v2410_v3, %v1164_v1  ;;  %v1220_v59 = vadd.f32 %v2410_v3, %v1165_v7  ;;  %v1152_v36 = vadd.f32 %v1135_v2, %v923_v4 }
 0x145   :  { %v1252_v15 = vmul.f32 %v2432_v49, %v1234_v29  ;;  %v1120_v37 = vsel %vm1119_vm5, %v1117_v31, %v1118_v25  ;;  %v1272_v44 = vrot.slane %v2463_v22, 4  ;;  %v1279_v41 = vrot.slane %v1278_v32, 4 }
 0x146   :  { %v1251_v26 = vmul.f32 %v2417_v35, %v1233_v17  ;;  %v1235_v52 = vmax.f32 %v1219_v16, 0.0  ;;  %v1121_v42 = vsel %vm1119_vm5, %v1116_v24, %v1117_v31  ;;  %v1236_v43 = vmax.f32 %v1220_v59, 0.0 }
 0x147   :  { %v1207_v58 = vadd.f32 %v2410_v3, %v1152_v36  ;;  %v1166_v46 = vadd.f32 %v1121_v42, %v937_v62  ;;  %v1266_v47 = vmax.f32 %v2447_v11, %v1265_v34  ;;  %v1286_v39 = vrot.slane %v1285_v19, 4 }
 0x148   :  { %v1292_v40 = vmax.f32 %v1251_v26, %v1252_v15  ;;  %v1253_v53 = vmul.f32 %v2417_v35, %v1235_v52  ;;  %v1167_v54 = vadd.f32 %v1120_v37, %v938_v10  ;;  %v1254_v14 = vmul.f32 %v2432_v49, %v1236_v43 }
 0x149   :  { %v1223_v50 = vmax.f32 %v1207_v58, 0.0  ;;  %v1221_v57 = vadd.f32 %v2410_v3, %v1166_v46  ;;  %v1242_v6 = vmul.f32 %v2432_v49, %v1224_v33  ;;  %v1273_v48 = vmax.f32 %v2463_v22, %v1272_v44 }
 0x14a   :  { %v1293_v18 = vrot.slane %v1292_v40, 4  ;;  %v1222_v51 = vadd.f32 %v2410_v3, %v1167_v54  ;;  %v1280_v61 = vmax.f32 %v1278_v32, %v1279_v41  ;;  %v1299_v30 = vmax.f32 %v1253_v53, %v1254_v14  ;;  %v1526_v54 = vld [vmem:[%s2543_s5] ss:$0 sm:$0xff] }
 0x14b   :  { %v1241_v11 = vmul.f32 %v2417_v35, %v1223_v50  ;;  %v1237_v55 = vmax.f32 %v1221_v57, 0.0  ;;  %v1267_v63 = vrot.slane %v1266_v47, 2  ;;  %v1287_v0 = vmax.f32 %v1285_v19, %v1286_v39 }
 0x14c   :  { %v1238_v4 = vmax.f32 %v1222_v51, 0.0  ;;  %v1294_v8 = vmax.f32 %v1292_v40, %v1293_v18  ;;  %v1300_v9 = vrot.slane %v1299_v30, 4  ;;  %v1274_v62 = vrot.slane %v1273_v48, 2 }
 0x14d   :  { %v1257_v13 = vmax.f32 %v1241_v11, %v1242_v6  ;;  %v1255_v23 = vmul.f32 %v2417_v35, %v1237_v55  ;;  %v1281_v12 = vrot.slane %v1280_v61, 2  ;;  %v1288_v3 = vrot.slane %v1287_v0, 2 }
 0x14e   :  { %v1256_v10 = vmul.f32 %v2432_v49, %v1238_v4  ;;  %v1301_v22 = vmax.f32 %v1299_v30, %v1300_v9  ;;  %v1268_v20 = vmax.f32 %v1266_v47, %v1267_v63  ;;  %v1295_v21 = vrot.slane %v1294_v8, 2 }
 0x14f   :  { %v1258_v38 = vrot.slane %v1257_v13, 4  ;;  %v1275_v5 = vmax.f32 %v1273_v48, %v1274_v62  ;;  %v1282_v27 = vmax.f32 %v1280_v61, %v1281_v12  ;;  %v1289_v45 = vmax.f32 %v1287_v0, %v1288_v3 }
 0x150   :  { %v1306_v32 = vmax.f32 %v1255_v23, %v1256_v10  ;;  %v1302_v19 = vrot.slane %v1301_v22, 2  ;;  %v1269_v28 = vrot.slane %v1268_v20, 1  ;;  %v1296_v35 = vmax.f32 %v1294_v8, %v1295_v21 }
 0x151   :  { %v1259_v24 = vmax.f32 %v1257_v13, %v1258_v38  ;;  %v1276_v1 = vrot.slane %v1275_v5, 1  ;;  %v1283_v7 = vrot.slane %v1282_v27, 1  ;;  %v1290_v31 = vrot.slane %v1289_v45, 1 }
 0x152   :  { %v1307_v56 = vrot.slane %v1306_v32, 4  ;;  %v1303_v49 = vmax.f32 %v1301_v22, %v1302_v19  ;;  %v1270_v34 = vmax.f32 %v1268_v20, %v1269_v28  ;;  %v1297_v16 = vrot.slane %v1296_v35, 1 }
 0x153   :  { %v1260_v25 = vrot.slane %v1259_v24, 2  ;;  %v1277_v26 = vmax.f32 %v1275_v5, %v1276_v1  ;;  %v1284_v36 = vmax.f32 %v1282_v27, %v1283_v7  ;;  %v1291_v41 = vmax.f32 %v1289_v45, %v1290_v31 }
 0x154   :  { %v1308_v60 = vmax.f32 %v1306_v32, %v1307_v56  ;;  %v1304_v59 = vrot.slane %v1303_v49, 1  ;;  %v1298_v42 = vmax.f32 %v1296_v35, %v1297_v16 }
 0x155   :  { %v1261_v29 = vmax.f32 %v1259_v24, %v1260_v25 }
 0x156   :  { %v1309_v17 = vrot.slane %v1308_v60, 2  ;;  %v1305_v43 = vmax.f32 %v1303_v49, %v1304_v59 }
 0x157   :  { %v1262_v2 = vrot.slane %v1261_v29, 1 }
 0x158   :  { %v1310_v33 = vmax.f32 %v1308_v60, %v1309_v17 }
 0x159   :  { %v1263_v15 = vmax.f32 %v1261_v29, %v1262_v2 }
 0x15a   :  { %v1311_v37 = vrot.slane %v1310_v33, 1 }
 0x15b   :  { %v1345_v44 = vsel %vm1344_vm6, %v1270_v34, %v1263_v15 }
 0x15c   :  { %v1347_v52 = vsel %vm1346_vm7, %v1277_v26, %v1345_v44  ;;  %v1312_v46 = vmax.f32 %v1310_v33, %v1311_v37 }
 0x15d   :  { %v1349_v40 = vsel %vm1348_vm8, %v1284_v36, %v1347_v52 }
 0x15e   :  { %v1351_v58 = vsel %vm1350_vm9, %v1291_v41, %v1349_v40 }
 0x15f   :  { %v1353_v47 = vsel %vm1352_vm10, %v1298_v42, %v1351_v58 }
 0x160   :  { %v1355_v39 = vsel %vm1354_vm11, %v1305_v43, %v1353_v47 }
 0x161   :  { %v1357_v53 = vsel %vm1356_vm12, %v1312_v46, %v1355_v39 }
 0x162   :  { %1807 = vmatmul.mubr.f32.vlgmr.msra.gmra.mrb[38].mxu1 %v1357_v53 }
 0x235   :  { %v1425_v18 = vpop.f32.mrb[38].mxu1 }
 0x236   :  { %v1426_v14 = vadd.f32 %v1526_v54, %v1425_v18  ;;  %v1808_v50 = vpop.f32.mrb[39].mxu1 }
 0x238   :  { %1429 = vst [vmem:[#allocation6] sm:$0xff] %v1426_v14 }
 0x239   :  { %1895 = shalt.err (!%p1892_p12)
}
 0x23a   :  { %s1896_s8 = scalar_lea.hbm %s2544_s6, 128 }
 0x23b   :  { %p1897_p13 = scmp.ne.s32.totalorder %s2544_s6, %s1896_s8  ;;  %p1900_p0 = scmp.lt.u32.totalorder %s1896_s8, %s2544_s6 }
 0x23d   :  { %p1902_p1 = pnand %p1900_p0, %p1897_p13 }
 0x23f   :  { %1905 = shalt.err (!%p1902_p1)
}
 0x240   :  { %1439 = dma.vmem_to_hbm [thread:$0]  %s1437_s28, 128, %s2544_s6, [#allocation5]  }
 0x241   :  { %1908 = dma.done.wait [#allocation5], 128  }
 0x242   :  { %1909 = vsyncadd [#allocation5], 4294967168 }
 0x243   :  { %1443 = vsyncpa [#allocation4], 1 }
 0x244   :  { %1444 = vsyncpa [#allocation5], 1 }

// kernel: tpu_custom_call.1
= control target key start
LH: loop header
LB: loop body
LE: loop exit
PB: predicated region body
PF: predicated region fallthrough
CT: control target
= control target key end

     0   :  { %11 = vsyncpa [#allocation4], 0  ;;  %s2538_s0 = inlined_call_operand.vmem [shape: f32[128,16], index: 0, kind: input, shape index: {}]   ;;  %s2539_s1 = inlined_call_operand.hbm [shape: f32[5,16,128], index: 1, kind: input, shape index: {}]   ;;  %s2540_s2 = inlined_call_operand.vmem [shape: f32[1,128], index: 2, kind: input, shape index: {}]   ;;  %s2541_s3 = inlined_call_operand.vmem [shape: f32[16,128], index: 3, kind: input, shape index: {}]   ;;  %s2542_s4 = inlined_call_operand.vmem [shape: f32[128,128], index: 4, kind: input, shape index: {}]   ;;  %s2543_s5 = inlined_call_operand.vmem [shape: f32[1,128], index: 5, kind: input, shape index: {}]   ;;  %s2544_s6 = inlined_call_operand.hbm [shape: f32[8,128], index: 6, kind: output, shape index: {}]  }
   0x1   :  { %12 = vsyncpa [#allocation5], 0  ;;  %s1910_s21 = smov [#allocation3]   ;;  %s1862_s25 = scalar_lea.hbm %s2539_s1, 1280 }
   0x2   :  { %s20_s22 = sshll.u32 %s1910_s21, 4  ;;  %p1863_p0 = scmp.ne.s32.totalorder %s2539_s1, %s1862_s25  ;;  %s21_s22 = int_to_ptr.vmem [resolvable:$true] %s20_s22 }
   0x3   :  { %p1866_p1 = scmp.lt.u32.totalorder %s1862_s25, %s2539_s1 }
   0x5   :  { %p1868_p2 = pnand %p1866_p1, %p1863_p0 }
   0x7   :  { %1871 = shalt.err (!%p1868_p2)
}
   0x8   :  { %s1872_s30 = scalar_lea.vmem %s21_s22, 1280  ;;  %p1877_p4 = scmp.lt.s32.totalorder %s21_s22, %s21_s22 }
   0x9   :  { %p1873_p3 = scmp.ne.s32.totalorder %s21_s22, %s1872_s30  ;;  %p1878_p5 = scmp.lt.s32.totalorder %s1872_s30, %s1872_s30 }
   0xb   :  { %p1879_p6 = por %p1878_p5, %p1877_p4 }
   0xd   :  { %p1880_p7 = pnand %p1879_p6, %p1873_p3 }
   0xf   :  { %1883 = shalt.err (!%p1880_p7)
}
  0x10   :  { %s1911_s7 = smov 128   ;;  %s1912_s8 = smov 8  }
  0x11   :  { %26 = dma.hbm_to_vmem [thread:$0]  %s2539_s1, 1280, %s21_s22, [#allocation4], %s1911_s7, %s1911_s7, %s1912_s8  }
  0x12   :  { %1906 = dma.done.wait [#allocation4], 1280  }
  0x13   :  { %1907 = vsyncadd [#allocation4], 4294966016  ;;  %vm56_vm0 = vcmask 130048   ;;  %v54_v0 = vld [vmem:[#allocation3] sm:$0xff]  ;;  %v55_v1 = vld [vmem:[#allocation3 + $0x8] sm:$0xff]  ;;  %v1913_v34 = vmov 0.0|0.0  }
  0x14   :  { %v1967_v2 = vld [vmem:[%s2538_s0] sm:$0xff]  ;;  %v1809_v3 = vpack.c.bf16 %v55_v1, %v54_v0  ;;  %v1974_v4 = vld [vmem:[%s2538_s0 + $0x50] sm:$0xff]  ;;  %v499_v6 = vld [vmem:[#allocation3 + $0x28] sm:$0xff]  ;;  %vm1914_vm1 = vmmov 0   ;;  %v1915_v55 = vmov 0.0   ;;  %v430_v1 = vlaneseq  ;;  %s1916_s27 = smov [#allocation6]  }
  0x15   :  { %1638 = vmatprep.mubr.msk.f32.mxu0 %vm56_vm0, %v1967_v2  ;;  %1653 = vmatprep.mubr.msk.f32.mxu1 %vm56_vm0, %v1974_v4  ;;  %v498_v5 = vld [vmem:[#allocation3 + $0x20] sm:$0xff]  ;;  %v1981_v7 = vld [vmem:[%s2538_s0 + $0x8] sm:$0xff]  ;;  %v1986_v9 = vld [vmem:[%s2538_s0 + $0x58] sm:$0xff]  ;;  %vm1344_vm6 = vcmask 1041409   ;;  %vm1346_vm7 = vcmask 1042434   ;;  %vm1348_vm8 = vcmask 1043459  }
  0x16   :  { %1810 = vmatprep.subr.bf16.mxu0 %v1809_v3  ;;  %1853 = vmatprep.subr.bf16.mxu1 %v1809_v3  ;;  %v1817_v8 = vpack.c.bf16 %v499_v6, %v498_v5  ;;  %v267_v10 = vld [vmem:[#allocation3 + $0x10] sm:$0xff]  ;;  %v268_v11 = vld [vmem:[#allocation3 + $0x18] sm:$0xff]  ;;  %v1996_v14 = vld [vmem:[%s2538_s0 + $0x60] sm:$0xff]  ;;  %v2245_v6 = vshrl.u32 %v430_v1, 7  ;;  %vm1350_vm9 = vcmask 1044484   ;;  %vm1352_vm10 = vcmask 1045509  }
  0x17   :  { %1812 = vmatpush3.bf16.msra.mxu0 %v1809_v3  ;;  %1854 = vmatpush3.bf16.msra.mxu1 %v1809_v3  ;;  %v1991_v12 = vld [vmem:[%s2538_s0 + $0x10] sm:$0xff]  ;;  %v1813_v13 = vpack.c.bf16 %v268_v11, %v267_v10  ;;  %v2005_v15 = vld [vmem:[%s2538_s0 + $0x18] sm:$0xff]  ;;  %v2012_v18 = vld [vmem:[%s2538_s0 + $0x68] sm:$0xff]  ;;  %vm1354_vm11 = vcmask 1046534   ;;  %vm1356_vm12 = vcmask 1047559   ;;  %s1436_s28 = sshll.u32 %s1916_s27, 4  ;;  %s1437_s28 = int_to_ptr.vmem [resolvable:$true] %s1436_s28 }
  0x18   :  { %1818 = vmatprep.subr.bf16.mxu0 %v1817_v8  ;;  %v727_v16 = vld [vmem:[#allocation3 + $0x30] sm:$0xff]  ;;  %v728_v17 = vld [vmem:[#allocation3 + $0x38] sm:$0xff]  ;;  %v956_v19 = vld [vmem:[#allocation3 + $0x40] sm:$0xff]  ;;  %vm432_vm2 = vcmp.lt.s32.totalorder %v2245_v6, 1  ;;  %vm661_vm3 = vcmp.lt.s32.totalorder %v2245_v6, 2  ;;  %vm890_vm4 = vcmp.lt.s32.totalorder %v2245_v6, 3  ;;  %p1889_p9 = scmp.lt.s32.totalorder %s1437_s28, %s1437_s28 }
  0x19   :  { %v957_v20 = vld [vmem:[#allocation3 + $0x48] sm:$0xff]  ;;  %1814 = vmatprep.subr.bf16.mxu1 %v1813_v13  ;;  %v2019_v21 = vld [vmem:[%s2538_s0 + $0x20] sm:$0xff]  ;;  %v2024_v22 = vld [vmem:[%s2538_s0 + $0x70] sm:$0xff]  ;;  %v1821_v23 = vpack.c.bf16 %v728_v17, %v727_v16  ;;  %vm1119_vm5 = vcmp.lt.s32.totalorder %v2245_v6, 4  ;;  %s1884_s29 = scalar_lea.vmem %s1437_s28, 128 }
  0x1a   :  { %1639 = vmatmul.mubr.msk.f32.vlgmr.msra.gmra.mrb[0].mxu0 %vm56_vm0, %v1981_v7  ;;  %1654 = vmatmul.mubr.msk.f32.vlgmr.msra.gmra.mrb[0].mxu1 %vm56_vm0, %v1986_v9  ;;  %v1825_v24 = vpack.c.bf16 %v957_v20, %v956_v19  ;;  %v2037_v25 = vld [vmem:[%s2538_s0 + $0x28] sm:$0xff]  ;;  %v2042_v26 = vld [vmem:[%s2538_s0 + $0x78] sm:$0xff]  ;;  %v2047_v27 = vld [vmem:[%s2538_s0 + $0x30] sm:$0xff]  ;;  %p1885_p8 = scmp.ne.s32.totalorder %s1437_s28, %s1884_s29  ;;  %p1890_p10 = scmp.lt.s32.totalorder %s1884_s29, %s1884_s29 }
  0x1b   :  { %1820 = vmatpush3.bf16.msra.mxu0 %v1817_v8  ;;  %1641 = vmatprep.mubr.msk.f32.mxu0 %vm56_vm0, %v1991_v12  ;;  %v45_v28 = vld [vmem:[%s2538_s0 + $0x38] sm:$0xff]  ;;  %v46_v29 = vld [vmem:[%s2538_s0 + $0x40] sm:$0xff]  ;;  %v47_v30 = vld [vmem:[%s2538_s0 + $0x48] sm:$0xff] }
  0x1c   :  { %1656 = vmatprep.mubr.msk.f32.mxu1 %vm56_vm0, %v1996_v14  ;;  %1816 = vmatpush3.bf16.msra.mxu1 %v1813_v13  ;;  %v1313_v31 = vld [vmem:[%s2542_s4] sm:$0xff]  ;;  %v1314_v32 = vld [vmem:[%s2542_s4 + $0x8] sm:$0xff]  ;;  %v1315_v35 = vld [vmem:[%s2542_s4 + $0x10] sm:$0xff]  ;;  %p1891_p11 = por %p1890_p10, %p1889_p9 }
  0x1d   :  { %1822 = vmatprep.subr.bf16.mxu1 %v1821_v23  ;;  %1826 = vmatprep.subr.bf16.mxu0 %v1825_v24  ;;  %v1830_v33 = vpack.c.bf16 %v1314_v32, %v1313_v31  ;;  %v1316_v36 = vld [vmem:[%s2542_s4 + $0x18] sm:$0xff]  ;;  %v1317_v38 = vld [vmem:[%s2542_s4 + $0x20] sm:$0xff]  ;;  %v1318_v39 = vld [vmem:[%s2542_s4 + $0x28] sm:$0xff] }
  0x1e   :  { %1642 = vmatmul.mubr.msk.f32.gmra.mrb[2].mxu0 %vm56_vm0, %v2005_v15  ;;  %1657 = vmatmul.mubr.msk.f32.gmra.mrb[2].mxu1 %vm56_vm0, %v2012_v18  ;;  %v1833_v37 = vpack.c.bf16 %v1316_v36, %v1315_v35  ;;  %v1836_v40 = vpack.c.bf16 %v1318_v39, %v1317_v38  ;;  %v1319_v41 = vld [vmem:[%s2542_s4 + $0x30] sm:$0xff]  ;;  %v1320_v42 = vld [vmem:[%s2542_s4 + $0x38] sm:$0xff]  ;;  %v1321_v44 = vld [vmem:[%s2542_s4 + $0x40] sm:$0xff]  ;;  %p1892_p12 = pnand %p1891_p11, %p1885_p8 }
  0x1f   :  { %1644 = vmatprep.mubr.msk.f32.mxu0 %vm56_vm0, %v2019_v21  ;;  %1659 = vmatprep.mubr.msk.f32.mxu1 %vm56_vm0, %v2024_v22  ;;  %v1839_v43 = vpack.c.bf16 %v1320_v42, %v1319_v41  ;;  %v1322_v45 = vld [vmem:[%s2542_s4 + $0x48] sm:$0xff]  ;;  %v1323_v47 = vld [vmem:[%s2542_s4 + $0x50] sm:$0xff]  ;;  %v1324_v48 = vld [vmem:[%s2542_s4 + $0x58] sm:$0xff] }
  0x20   :  { %v1842_v46 = vpack.c.bf16 %v1322_v45, %v1321_v44  ;;  %v1845_v49 = vpack.c.bf16 %v1324_v48, %v1323_v47  ;;  %v1325_v50 = vld [vmem:[%s2542_s4 + $0x60] sm:$0xff]  ;;  %v1326_v51 = vld [vmem:[%s2542_s4 + $0x68] sm:$0xff]  ;;  %v1327_v53 = vld [vmem:[%s2542_s4 + $0x70] sm:$0xff] }
  0x21   :  { %v1848_v52 = vpack.c.bf16 %v1326_v51, %v1325_v50  ;;  %v1328_v54 = vld [vmem:[%s2542_s4 + $0x78] sm:$0xff] }
  0x22   :  { %1645 = vmatmul.mubr.msk.f32.gmra.mrb[4].mxu0 %vm56_vm0, %v2037_v25  ;;  %1660 = vmatmul.mubr.msk.f32.gmra.mrb[4].mxu1 %vm56_vm0, %v2042_v26  ;;  %v1851_v56 = vpack.c.bf16 %v1328_v54, %v1327_v53 }
  0x23   :  { %1647 = vmatprep.mubr.msk.f32.mxu0 %vm56_vm0, %v2047_v27  ;;  %1666 = vmatprep.mubr.msk.f32.mxu1 %vm56_vm0, %v1967_v2 }
  0x26   :  { %1648 = vmatmul.mubr.msk.f32.gmra.mrb[6].mxu0 %vm56_vm0, %v45_v28  ;;  %1667 = vmatmul.mubr.msk.f32.vlgmr.msra.gmra.mrb[6].mxu1 %vm56_vm0, %v1981_v7 }
  0x27   :  { %1650 = vmatprep.mubr.msk.f32.mxu0 %vm56_vm0, %v46_v29  ;;  %1669 = vmatprep.mubr.msk.f32.mxu1 %vm56_vm0, %v1991_v12 }
  0x28   :  { %1824 = vmatpush3.bf16.msra.mxu1 %v1821_v23 }
  0x29   :  { %1829 = vmatprep.subr.bf16.mxu1 %v1913_v34 }
  0x2a   :  { %1651 = vmatmul.mubr.msk.f32.gmra.mrb[8].mxu0 %vm56_vm0, %v47_v30  ;;  %1670 = vmatmul.mubr.msk.f32.gmra.mrb[8].mxu1 %vm56_vm0, %v2005_v15 }
  0x2b   :  { %1672 = vmatprep.mubr.msk.f32.mxu1 %vm56_vm0, %v2019_v21  ;;  %1694 = vmatprep.mubr.msk.f32.mxu0 %vm56_vm0, %v1967_v2 }
  0x2e   :  { %1673 = vmatmul.mubr.msk.f32.gmra.mrb[10].mxu1 %vm56_vm0, %v2037_v25  ;;  %1695 = vmatmul.mubr.msk.f32.vlgmr.msra.gmra.mrb[10].mxu0 %vm56_vm0, %v1981_v7 }
  0x2f   :  { %1828 = vmatpush3.bf16.msra.mxu0 %v1825_v24  ;;  %1675 = vmatprep.mubr.msk.f32.mxu1 %vm56_vm0, %v2047_v27 }
  0x30   :  { %1697 = vmatprep.mubr.msk.f32.mxu0 %vm56_vm0, %v1991_v12 }
  0x32   :  { %1676 = vmatmul.mubr.msk.f32.gmra.mrb[12].mxu1 %vm56_vm0, %v45_v28  ;;  %1698 = vmatmul.mubr.msk.f32.gmra.mrb[12].mxu0 %vm56_vm0, %v2005_v15 }
  0x33   :  { %1678 = vmatprep.mubr.msk.f32.mxu1 %vm56_vm0, %v46_v29  ;;  %1700 = vmatprep.mubr.msk.f32.mxu0 %vm56_vm0, %v2019_v21 }
  0x36   :  { %1679 = vmatmul.mubr.msk.f32.gmra.mrb[14].mxu1 %vm56_vm0, %v47_v30  ;;  %1701 = vmatmul.mubr.msk.f32.gmra.mrb[14].mxu0 %vm56_vm0, %v2037_v25 }
  0x37   :  { %1681 = vmatprep.mubr.msk.f32.mxu1 %vm56_vm0, %v1974_v4  ;;  %1703 = vmatprep.mubr.msk.f32.mxu0 %vm56_vm0, %v2047_v27 }
  0x3a   :  { %1682 = vmatmul.mubr.msk.f32.gmra.mrb[16].mxu1 %vm56_vm0, %v1986_v9  ;;  %1704 = vmatmul.mubr.msk.f32.gmra.mrb[16].mxu0 %vm56_vm0, %v45_v28 }
  0x3b   :  { %1684 = vmatprep.mubr.msk.f32.mxu1 %vm56_vm0, %v1996_v14  ;;  %1706 = vmatprep.mubr.msk.f32.mxu0 %vm56_vm0, %v46_v29 }
  0x3e   :  { %1685 = vmatmul.mubr.msk.f32.gmra.mrb[18].mxu1 %vm56_vm0, %v2012_v18  ;;  %1707 = vmatmul.mubr.msk.f32.gmra.mrb[18].mxu0 %vm56_vm0, %v47_v30 }
  0x3f   :  { %1687 = vmatprep.mubr.msk.f32.mxu1 %vm56_vm0, %v2024_v22  ;;  %1709 = vmatprep.mubr.msk.f32.mxu0 %vm56_vm0, %v1974_v4 }
  0x42   :  { %1688 = vmatmul.mubr.msk.f32.gmra.mrb[20].mxu1 %vm56_vm0, %v2042_v26  ;;  %1710 = vmatmul.mubr.msk.f32.gmra.mrb[20].mxu0 %vm56_vm0, %v1986_v9 }
  0x43   :  { %1712 = vmatprep.mubr.msk.f32.mxu0 %vm56_vm0, %v1996_v14  ;;  %1722 = vmatprep.mubr.msk.f32.mxu1 %vm56_vm0, %v1967_v2 }
  0x46   :  { %1713 = vmatmul.mubr.msk.f32.gmra.mrb[22].mxu0 %vm56_vm0, %v2012_v18  ;;  %1723 = vmatmul.mubr.msk.f32.vlgmr.msra.gmra.mrb[22].mxu1 %vm56_vm0, %v1981_v7 }
  0x47   :  { %1715 = vmatprep.mubr.msk.f32.mxu0 %vm56_vm0, %v2024_v22  ;;  %1725 = vmatprep.mubr.msk.f32.mxu1 %vm56_vm0, %v1991_v12 }
  0x48   :  { %1831 = vmatpush3.bf16.msra.mxu1 %v1830_v33 }
  0x49   :  { %1832 = vmatprep.subr.bf16.mxu1 %v1913_v34 }
  0x4a   :  { %1716 = vmatmul.mubr.msk.f32.gmra.mrb[24].mxu0 %vm56_vm0, %v2042_v26  ;;  %1726 = vmatmul.mubr.msk.f32.gmra.mrb[24].mxu1 %vm56_vm0, %v2005_v15 }
  0x4b   :  { %1728 = vmatprep.mubr.msk.f32.mxu1 %vm56_vm0, %v2019_v21  ;;  %1750 = vmatprep.mubr.msk.f32.mxu0 %vm56_vm0, %v1967_v2 }
  0x4c   :  { %1834 = vmatpush3.bf16.msra.mxu1 %v1833_v37 }
  0x4d   :  { %1835 = vmatprep.subr.bf16.mxu1 %v1913_v34 }
  0x4e   :  { %1729 = vmatmul.mubr.msk.f32.gmra.mrb[26].mxu1 %vm56_vm0, %v2037_v25  ;;  %1751 = vmatmul.mubr.msk.f32.vlgmr.msra.gmra.mrb[26].mxu0 %vm56_vm0, %v1981_v7 }
  0x4f   :  { %1731 = vmatprep.mubr.msk.f32.mxu1 %vm56_vm0, %v2047_v27  ;;  %1753 = vmatprep.mubr.msk.f32.mxu0 %vm56_vm0, %v1991_v12 }
  0x50   :  { %1837 = vmatpush3.bf16.msra.mxu1 %v1836_v40 }
  0x51   :  { %1838 = vmatprep.subr.bf16.mxu1 %v1913_v34 }
  0x52   :  { %1732 = vmatmul.mubr.msk.f32.gmra.mrb[28].mxu1 %vm56_vm0, %v45_v28  ;;  %1754 = vmatmul.mubr.msk.f32.gmra.mrb[28].mxu0 %vm56_vm0, %v2005_v15 }
  0x53   :  { %1734 = vmatprep.mubr.msk.f32.mxu1 %vm56_vm0, %v46_v29  ;;  %1756 = vmatprep.mubr.msk.f32.mxu0 %vm56_vm0, %v2019_v21 }
  0x54   :  { %1840 = vmatpush3.bf16.msra.mxu1 %v1839_v43 }
  0x55   :  { %1841 = vmatprep.subr.bf16.mxu1 %v1913_v34 }
  0x56   :  { %1735 = vmatmul.mubr.msk.f32.gmra.mrb[30].mxu1 %vm56_vm0, %v47_v30  ;;  %1757 = vmatmul.mubr.msk.f32.gmra.mrb[30].mxu0 %vm56_vm0, %v2037_v25 }
  0x57   :  { %1737 = vmatprep.mubr.msk.f32.mxu1 %vm56_vm0, %v1974_v4  ;;  %1759 = vmatprep.mubr.msk.f32.mxu0 %vm56_vm0, %v2047_v27 }
  0x58   :  { %1843 = vmatpush3.bf16.msra.mxu1 %v1842_v46 }
  0x59   :  { %1844 = vmatprep.subr.bf16.mxu1 %v1913_v34 }
  0x5a   :  { %1738 = vmatmul.mubr.msk.f32.gmra.mrb[32].mxu1 %vm56_vm0, %v1986_v9  ;;  %1760 = vmatmul.mubr.msk.f32.gmra.mrb[32].mxu0 %vm56_vm0, %v45_v28 }
  0x5b   :  { %1740 = vmatprep.mubr.msk.f32.mxu1 %vm56_vm0, %v1996_v14  ;;  %1762 = vmatprep.mubr.msk.f32.mxu0 %vm56_vm0, %v46_v29 }
  0x5c   :  { %1846 = vmatpush3.bf16.msra.mxu1 %v1845_v49 }
  0x5d   :  { %1847 = vmatprep.subr.bf16.mxu1 %v1913_v34 }
  0x5e   :  { %1741 = vmatmul.mubr.msk.f32.gmra.mrb[34].mxu1 %vm56_vm0, %v2012_v18  ;;  %1763 = vmatmul.mubr.msk.f32.gmra.mrb[34].mxu0 %vm56_vm0, %v47_v30 }
  0x5f   :  { %1743 = vmatprep.mubr.msk.f32.mxu1 %vm56_vm0, %v2024_v22  ;;  %1765 = vmatprep.mubr.msk.f32.mxu0 %vm56_vm0, %v1974_v4 }
  0x60   :  { %1849 = vmatpush3.bf16.msra.mxu1 %v1848_v52 }
  0x61   :  { %1850 = vmatprep.subr.bf16.mxu1 %v1913_v34 }
  0x62   :  { %1744 = vmatmul.mubr.msk.f32.gmra.mrb[36].mxu1 %vm56_vm0, %v2042_v26  ;;  %1766 = vmatmul.mubr.msk.f32.gmra.mrb[36].mxu0 %vm56_vm0, %v1986_v9 }
  0x63   :  { %1768 = vmatprep.mubr.msk.f32.mxu0 %vm56_vm0, %v1996_v14  ;;  %1806 = vmatprep.mubr.msk.f32.mxu1 %vm1914_vm1, %v1915_v55 }
  0x64   :  { %1852 = vmatpush3.bf16.msra.mxu1 %v1851_v56 }
  0x66   :  { %1769 = vmatmul.mubr.msk.f32.gmra.mrb[38].mxu0 %vm56_vm0, %v2012_v18 }
  0x67   :  { %1771 = vmatprep.mubr.msk.f32.mxu0 %vm56_vm0, %v2024_v22 }
  0x6a   :  { %1772 = vmatmul.mubr.msk.f32.gmra.mrb[40].mxu0 %vm56_vm0, %v2042_v26 }
  0xed   :  { %v1640_v57 = vpop.f32.mrb[0].mxu0  ;;  %v2231_v58 = vpop.f32.mrb[0].mxu1 }
  0xee   :  { %v2233_v59 = vpop.f32.mrb[1].mxu0  ;;  %v2235_v60 = vpop.f32.mrb[1].mxu1 }
  0xf1   :  { %v1643_v61 = vpop.f32.mrb[2].mxu0  ;;  %v2237_v62 = vpop.f32.mrb[2].mxu1 }
  0xf2   :  { %v181_v63 = vpop.f32.mrb[3].mxu0  ;;  %v2239_v0 = vpop.f32.mrb[3].mxu1 }
  0xf5   :  { %v1646_v2 = vpop.f32.mrb[4].mxu0  ;;  %v2241_v3 = vpop.f32.mrb[4].mxu1 }
  0xf6   :  { %v191_v4 = vpop.f32.mrb[5].mxu0  ;;  %v2243_v5 = vpop.f32.mrb[5].mxu1 }
  0xf9   :  { %v1649_v7 = vpop.f32.mrb[6].mxu0  ;;  %v1668_v8 = vpop.f32.mrb[6].mxu1 }
  0xfa   :  { %v415_v9 = vrot.slane %v1668_v8, 7  ;;  %v201_v10 = vpop.f32.mrb[7].mxu0  ;;  %v2247_v11 = vpop.f32.mrb[7].mxu1 }
  0xfb   :  { %v414_v12 = vrot.slane %v2247_v11, 7 }
  0xfd   :  { %v447_v13 = vsel %vm432_vm2, %v414_v12, %v415_v9  ;;  %v1652_v14 = vpop.f32.mrb[8].mxu0  ;;  %v1671_v15 = vpop.f32.mrb[8].mxu1 }
  0xfe   :  { %v466_v16 = vadd.f32 %v1640_v57, %v447_v13  ;;  %v417_v17 = vrot.slane %v1671_v15, 7  ;;  %v211_v18 = vpop.f32.mrb[9].mxu0  ;;  %v345_v19 = vpop.f32.mrb[9].mxu1 }
  0xff   :  { %v416_v20 = vrot.slane %v345_v19, 7 }
 0x101   :  { %v445_v21 = vsel %vm432_vm2, %v416_v20, %v417_v17  ;;  %v446_v22 = vsel %vm432_vm2, %v415_v9, %v416_v20  ;;  %v1674_v23 = vpop.f32.mrb[10].mxu1  ;;  %v1696_v24 = vpop.f32.mrb[10].mxu0 }
 0x102   :  { %v467_v25 = vadd.f32 %v446_v22, %v181_v63  ;;  %v468_v26 = vadd.f32 %v1643_v61, %v445_v21  ;;  %v419_v27 = vrot.slane %v1674_v23, 7  ;;  %v646_v28 = vrot.slane %v1696_v24, 6  ;;  %v355_v29 = vpop.f32.mrb[11].mxu1  ;;  %v2260_v30 = vpop.f32.mrb[11].mxu0 }
 0x103   :  { %v418_v31 = vrot.slane %v355_v29, 7  ;;  %v645_v32 = vrot.slane %v2260_v30, 6 }
 0x105   :  { %v443_v33 = vsel %vm432_vm2, %v418_v31, %v419_v27  ;;  %v444_v34 = vsel %vm432_vm2, %v417_v17, %v418_v31  ;;  %v676_v35 = vsel %vm661_vm3, %v645_v32, %v646_v28  ;;  %v1677_v36 = vpop.f32.mrb[12].mxu1  ;;  %v1699_v37 = vpop.f32.mrb[12].mxu0 }
 0x106   :  { %v469_v38 = vadd.f32 %v444_v34, %v191_v4  ;;  %v470_v39 = vadd.f32 %v1646_v2, %v443_v33  ;;  %v2271_v40 = vadd.f32 %v676_v35, %v466_v16  ;;  %v421_v41 = vrot.slane %v1677_v36, 7  ;;  %v365_v42 = vpop.f32.mrb[13].mxu1  ;;  %v576_v43 = vpop.f32.mrb[13].mxu0 }
 0x107   :  { %v648_v44 = vrot.slane %v1699_v37, 6  ;;  %v420_v45 = vrot.slane %v365_v42, 7  ;;  %v647_v46 = vrot.slane %v576_v43, 6 }
 0x109   :  { %v441_v47 = vsel %vm432_vm2, %v420_v45, %v421_v41  ;;  %v442_v48 = vsel %vm432_vm2, %v419_v27, %v420_v45  ;;  %v674_v49 = vsel %vm661_vm3, %v647_v46, %v648_v44  ;;  %v675_v50 = vsel %vm661_vm3, %v646_v28, %v647_v46  ;;  %v1680_v51 = vpop.f32.mrb[14].mxu1  ;;  %v1702_v52 = vpop.f32.mrb[14].mxu0 }
 0x10a   :  { %v471_v53 = vadd.f32 %v442_v48, %v201_v10  ;;  %v472_v54 = vadd.f32 %v1649_v7, %v441_v47  ;;  %v2281_v55 = vadd.f32 %v675_v50, %v467_v25  ;;  %v2283_v56 = vadd.f32 %v674_v49, %v468_v26  ;;  %v375_v57 = vpop.f32.mrb[15].mxu1  ;;  %v586_v61 = vpop.f32.mrb[15].mxu0 }
 0x10b   :  { %v423_v63 = vrot.slane %v1680_v51, 7  ;;  %v650_v1 = vrot.slane %v1702_v52, 6  ;;  %v422_v2 = vrot.slane %v375_v57, 7  ;;  %v649_v4 = vrot.slane %v586_v61, 6 }
 0x10d   :  { %v439_v8 = vsel %vm432_vm2, %v422_v2, %v423_v63  ;;  %v440_v9 = vsel %vm432_vm2, %v421_v41, %v422_v2  ;;  %v672_v10 = vsel %vm661_vm3, %v649_v4, %v650_v1  ;;  %v673_v7 = vsel %vm661_vm3, %v648_v44, %v649_v4  ;;  %v1683_v13 = vpop.f32.mrb[16].mxu1  ;;  %v1705_v15 = vpop.f32.mrb[16].mxu0 }
 0x10e   :  { %v473_v16 = vadd.f32 %v440_v9, %v211_v18  ;;  %v474_v17 = vadd.f32 %v1652_v14, %v439_v8  ;;  %v2293_v19 = vadd.f32 %v673_v7, %v469_v38  ;;  %v2295_v20 = vadd.f32 %v672_v10, %v470_v39  ;;  %v385_v21 = vpop.f32.mrb[17].mxu1  ;;  %v596_v22 = vpop.f32.mrb[17].mxu0 }
 0x10f   :  { %v425_v23 = vrot.slane %v1683_v13, 7  ;;  %v652_v24 = vrot.slane %v1705_v15, 6  ;;  %v424_v25 = vrot.slane %v385_v21, 7  ;;  %v651_v26 = vrot.slane %v596_v22, 6 }
 0x111   :  { %v437_v27 = vsel %vm432_vm2, %v424_v25, %v425_v23  ;;  %v438_v28 = vsel %vm432_vm2, %v423_v63, %v424_v25  ;;  %v670_v18 = vsel %vm661_vm3, %v651_v26, %v652_v24  ;;  %v671_v14 = vsel %vm661_vm3, %v650_v1, %v651_v26  ;;  %v1686_v29 = vpop.f32.mrb[18].mxu1  ;;  %v1708_v31 = vpop.f32.mrb[18].mxu0 }
 0x112   :  { %v475_v33 = vadd.f32 %v438_v28, %v2235_v60  ;;  %v476_v34 = vadd.f32 %v2231_v58, %v437_v27  ;;  %v2307_v35 = vadd.f32 %v671_v14, %v471_v53  ;;  %v2309_v36 = vadd.f32 %v670_v18, %v472_v54  ;;  %v395_v37 = vpop.f32.mrb[19].mxu1  ;;  %v606_v38 = vpop.f32.mrb[19].mxu0 }
 0x113   :  { %v427_v39 = vrot.slane %v1686_v29, 7  ;;  %v654_v41 = vrot.slane %v1708_v31, 6  ;;  %v426_v42 = vrot.slane %v395_v37, 7  ;;  %v653_v43 = vrot.slane %v606_v38, 6 }
 0x115   :  { %v435_v44 = vsel %vm432_vm2, %v426_v42, %v427_v39  ;;  %v436_v45 = vsel %vm432_vm2, %v425_v23, %v426_v42  ;;  %v668_v60 = vsel %vm661_vm3, %v653_v43, %v654_v41  ;;  %v669_v58 = vsel %vm661_vm3, %v652_v24, %v653_v43  ;;  %v1689_v46 = vpop.f32.mrb[20].mxu1  ;;  %v1711_v47 = vpop.f32.mrb[20].mxu0 }
 0x116   :  { %v477_v48 = vadd.f32 %v436_v45, %v2239_v0  ;;  %v478_v49 = vadd.f32 %v2237_v62, %v435_v44  ;;  %v2321_v50 = vadd.f32 %v669_v58, %v473_v16  ;;  %v2323_v51 = vadd.f32 %v668_v60, %v474_v17  ;;  %v405_v52 = vpop.f32.mrb[21].mxu1  ;;  %v616_v53 = vpop.f32.mrb[21].mxu0 }
 0x117   :  { %v429_v54 = vrot.slane %v1689_v46, 7  ;;  %v656_v57 = vrot.slane %v1711_v47, 6  ;;  %v428_v61 = vrot.slane %v405_v52, 7  ;;  %v655_v63 = vrot.slane %v616_v53, 6 }
 0x119   :  { %v448_v1 = vsel %vm432_vm2, %v429_v54, %v414_v12  ;;  %v433_v62 = vsel %vm432_vm2, %v428_v61, %v429_v54  ;;  %v434_v0 = vsel %vm432_vm2, %v427_v39, %v428_v61  ;;  %v666_v2 = vsel %vm661_vm3, %v655_v63, %v656_v57  ;;  %v1714_v4 = vpop.f32.mrb[22].mxu0  ;;  %v1724_v8 = vpop.f32.mrb[22].mxu1 }
 0x11a   :  { %v465_v9 = vadd.f32 %v448_v1, %v2233_v59  ;;  %v479_v10 = vadd.f32 %v434_v0, %v2243_v5  ;;  %v480_v11 = vadd.f32 %v2241_v3, %v433_v62  ;;  %v667_v12 = vsel %vm661_vm3, %v654_v41, %v655_v63  ;;  %v626_v7 = vpop.f32.mrb[23].mxu0  ;;  %v2341_v13 = vpop.f32.mrb[23].mxu1 }
 0x11b   :  { %v2343_v15 = vadd.f32 %v667_v12, %v475_v33  ;;  %v2345_v16 = vadd.f32 %v666_v2, %v476_v34  ;;  %v658_v17 = vrot.slane %v1714_v4, 6  ;;  %v875_v21 = vrot.slane %v1724_v8, 5 }
 0x11c   :  { %v657_v22 = vrot.slane %v626_v7, 6  ;;  %v874_v23 = vrot.slane %v2341_v13, 5 }
 0x11d   :  { %v1717_v59 = vpop.f32.mrb[24].mxu0  ;;  %v1727_v24 = vpop.f32.mrb[24].mxu1 }
 0x11e   :  { %v664_v3 = vsel %vm661_vm3, %v657_v22, %v658_v17  ;;  %v665_v5 = vsel %vm661_vm3, %v656_v57, %v657_v22  ;;  %v905_v25 = vsel %vm890_vm4, %v874_v23, %v875_v21  ;;  %v660_v26 = vrot.slane %v1717_v59, 6  ;;  %v636_v27 = vpop.f32.mrb[25].mxu0  ;;  %v805_v28 = vpop.f32.mrb[25].mxu1 }
 0x11f   :  { %v2356_v18 = vadd.f32 %v665_v5, %v477_v48  ;;  %v2358_v14 = vadd.f32 %v664_v3, %v478_v49  ;;  %v924_v29 = vadd.f32 %v905_v25, %v2271_v40  ;;  %v877_v31 = vrot.slane %v1727_v24, 5  ;;  %v2410_v3 = vld [vmem:[%s2540_s2] ss:$0 sm:$0xff] }
 0x120   :  { %v677_v33 = vsel %vm661_vm3, %v660_v26, %v645_v32  ;;  %v659_v34 = vrot.slane %v636_v27, 6  ;;  %v876_v37 = vrot.slane %v805_v28, 5 }
 0x121   :  { %v2365_v38 = vadd.f32 %v677_v33, %v465_v9  ;;  %v1730_v39 = vpop.f32.mrb[26].mxu1  ;;  %v1752_v41 = vpop.f32.mrb[26].mxu0 }
 0x122   :  { %v662_v42 = vsel %vm661_vm3, %v659_v34, %v660_v26  ;;  %v663_v40 = vsel %vm661_vm3, %v658_v17, %v659_v34  ;;  %v903_v30 = vsel %vm890_vm4, %v876_v37, %v877_v31  ;;  %v904_v32 = vsel %vm890_vm4, %v875_v21, %v876_v37  ;;  %v815_v43 = vpop.f32.mrb[27].mxu1  ;;  %v2376_v44 = vpop.f32.mrb[27].mxu0 }
 0x123   :  { %v2378_v45 = vadd.f32 %v663_v40, %v479_v10  ;;  %v2380_v60 = vadd.f32 %v662_v42, %v480_v11  ;;  %v925_v58 = vadd.f32 %v904_v32, %v2281_v55  ;;  %v926_v46 = vadd.f32 %v903_v30, %v2283_v56 }
 0x124   :  { %v879_v47 = vrot.slane %v1730_v39, 5  ;;  %v1104_v48 = vrot.slane %v1752_v41, 4  ;;  %v878_v49 = vrot.slane %v815_v43, 5  ;;  %v1103_v52 = vrot.slane %v2376_v44, 4 }
 0x125   :  { %v1733_v53 = vpop.f32.mrb[28].mxu1  ;;  %v1755_v54 = vpop.f32.mrb[28].mxu0 }
 0x126   :  { %v901_v57 = vsel %vm890_vm4, %v878_v49, %v879_v47  ;;  %v902_v61 = vsel %vm890_vm4, %v877_v31, %v878_v49  ;;  %v1134_v55 = vsel %vm1119_vm5, %v1103_v52, %v1104_v48  ;;  %v881_v63 = vrot.slane %v1733_v53, 5  ;;  %v825_v56 = vpop.f32.mrb[29].mxu1  ;;  %v1034_v1 = vpop.f32.mrb[29].mxu0  ;;  %v2432_v49 = vld [vmem:[%s2541_s3 + $0x8] sm:$0xff] }
 0x127   :  { %v927_v62 = vadd.f32 %v902_v61, %v2293_v19  ;;  %v928_v0 = vadd.f32 %v901_v57, %v2295_v20  ;;  %v2395_v2 = vadd.f32 %v1134_v55, %v924_v29  ;;  %v1106_v4 = vrot.slane %v1755_v54, 4 }
 0x128   :  { %v880_v8 = vrot.slane %v825_v56, 5  ;;  %v1105_v9 = vrot.slane %v1034_v1, 4 }
 0x129   :  { %v1736_v10 = vpop.f32.mrb[30].mxu1  ;;  %v1758_v11 = vpop.f32.mrb[30].mxu0 }
 0x12a   :  { %v899_v12 = vsel %vm890_vm4, %v880_v8, %v881_v63  ;;  %v900_v7 = vsel %vm890_vm4, %v879_v47, %v880_v8  ;;  %v1132_v17 = vsel %vm1119_vm5, %v1105_v9, %v1106_v4  ;;  %v1133_v19 = vsel %vm1119_vm5, %v1104_v48, %v1105_v9  ;;  %v835_v20 = vpop.f32.mrb[31].mxu1  ;;  %v1044_v21 = vpop.f32.mrb[31].mxu0 }
 0x12b   :  { %v929_v22 = vadd.f32 %v900_v7, %v2307_v35  ;;  %v930_v59 = vadd.f32 %v899_v12, %v2309_v36  ;;  %v1154_v24 = vadd.f32 %v1133_v19, %v925_v58  ;;  %v1155_v5 = vadd.f32 %v1132_v17, %v926_v46  ;;  %v2417_v35 = vld [vmem:[%s2541_s3] sm:$0xff] }
 0x12c   :  { %v883_v25 = vrot.slane %v1736_v10, 5  ;;  %v1108_v26 = vrot.slane %v1758_v11, 4  ;;  %v882_v27 = vrot.slane %v835_v20, 5  ;;  %v1107_v29 = vrot.slane %v1044_v21, 4 }
 0x12d   :  { %v1209_v28 = vadd.f32 %v2410_v3, %v1154_v24  ;;  %v1739_v31 = vpop.f32.mrb[32].mxu1  ;;  %v1761_v33 = vpop.f32.mrb[32].mxu0  ;;  %v1210_v34 = vadd.f32 %v2410_v3, %v1155_v5 }
 0x12e   :  { %v897_v36 = vsel %vm890_vm4, %v882_v27, %v883_v25  ;;  %v898_v37 = vsel %vm890_vm4, %v881_v63, %v882_v27  ;;  %v885_v39 = vrot.slane %v1739_v31, 5  ;;  %v845_v41 = vpop.f32.mrb[33].mxu1  ;;  %v1054_v42 = vpop.f32.mrb[33].mxu0  ;;  %v1130_v43 = vsel %vm1119_vm5, %v1107_v29, %v1108_v26 }
 0x12f   :  { %v1225_v40 = vmax.f32 %v1209_v28, 0.0  ;;  %v931_v30 = vadd.f32 %v898_v37, %v2321_v50  ;;  %v932_v32 = vadd.f32 %v897_v36, %v2323_v51  ;;  %v1226_v58 = vmax.f32 %v1210_v34, 0.0 }
 0x130   :  { %v1131_v46 = vsel %vm1119_vm5, %v1106_v4, %v1107_v29  ;;  %v1157_v47 = vadd.f32 %v1130_v43, %v928_v0  ;;  %v1110_v48 = vrot.slane %v1761_v33, 4  ;;  %v884_v50 = vrot.slane %v845_v41, 5 }
 0x131   :  { %v1243_v53 = vmul.f32 %v2417_v35, %v1225_v40  ;;  %v1156_v54 = vadd.f32 %v1131_v46, %v927_v62  ;;  %v1109_v57 = vrot.slane %v1054_v42, 4  ;;  %v1742_v51 = vpop.f32.mrb[34].mxu1  ;;  %v2435_v61 = vpop.f32.mrb[34].mxu0  ;;  %v1244_v55 = vmul.f32 %v2432_v49, %v1226_v58 }
 0x132   :  { %v1212_v63 = vadd.f32 %v2410_v3, %v1157_v47  ;;  %v887_v56 = vrot.slane %v1742_v51, 5  ;;  %v1112_v1 = vrot.slane %v2435_v61, 4  ;;  %v855_v0 = vpop.f32.mrb[35].mxu1  ;;  %v1064_v4 = vpop.f32.mrb[35].mxu0  ;;  %v895_v9 = vsel %vm890_vm4, %v884_v50, %v885_v39 }
 0x133   :  { %v1211_v8 = vadd.f32 %v2410_v3, %v1156_v54  ;;  %v896_v62 = vsel %vm890_vm4, %v883_v25, %v884_v50  ;;  %v1128_v10 = vsel %vm1119_vm5, %v1109_v57, %v1110_v48  ;;  %v2447_v11 = vmax.f32 %v1243_v53, %v1244_v55 }
 0x134   :  { %v1228_v12 = vmax.f32 %v1212_v63, 0.0  ;;  %v933_v7 = vadd.f32 %v896_v62, %v2343_v15  ;;  %v934_v17 = vadd.f32 %v895_v9, %v2345_v16  ;;  %v1129_v20 = vsel %vm1119_vm5, %v1108_v26, %v1109_v57 }
 0x135   :  { %v1227_v19 = vmax.f32 %v1211_v8, 0.0  ;;  %v1159_v21 = vadd.f32 %v1128_v10, %v930_v59  ;;  %v886_v24 = vrot.slane %v855_v0, 5  ;;  %v1745_v5 = vpop.f32.mrb[36].mxu1  ;;  %v1767_v27 = vpop.f32.mrb[36].mxu0  ;;  %v1158_v28 = vadd.f32 %v1129_v20, %v929_v22 }
 0x136   :  { %v1246_v25 = vmul.f32 %v2432_v49, %v1228_v12  ;;  %v1111_v29 = vrot.slane %v1064_v4, 4  ;;  %v865_v31 = vpop.f32.mrb[37].mxu1  ;;  %v1074_v33 = vpop.f32.mrb[37].mxu0  ;;  %v889_v54 = vrot.slane %v1745_v5, 5 }
 0x137   :  { %v1245_v34 = vmul.f32 %v2417_v35, %v1227_v19  ;;  %v1214_v15 = vadd.f32 %v2410_v3, %v1159_v21  ;;  %v893_v16 = vsel %vm890_vm4, %v886_v24, %v887_v56  ;;  %v894_v26 = vsel %vm890_vm4, %v885_v39, %v886_v24 }
 0x138   :  { %v1213_v59 = vadd.f32 %v2410_v3, %v1158_v28  ;;  %v935_v36 = vadd.f32 %v894_v26, %v2356_v18  ;;  %v936_v37 = vadd.f32 %v893_v16, %v2358_v14  ;;  %v1126_v42 = vsel %vm1119_vm5, %v1111_v29, %v1112_v1 }
 0x139   :  { %v2463_v22 = vmax.f32 %v1245_v34, %v1246_v25  ;;  %v1230_v41 = vmax.f32 %v1214_v15, 0.0  ;;  %v1127_v40 = vsel %vm1119_vm5, %v1110_v48, %v1111_v29  ;;  %v1770_v43 = vpop.f32.mrb[38].mxu0  ;;  %v1161_v47 = vadd.f32 %v1126_v42, %v932_v32 }
 0x13a   :  { %v1229_v58 = vmax.f32 %v1213_v59, 0.0  ;;  %v1160_v46 = vadd.f32 %v1127_v40, %v931_v30  ;;  %v1084_v39 = vpop.f32.mrb[39].mxu0  ;;  %v906_v57 = vsel %vm890_vm4, %v889_v54, %v874_v23  ;;  %v1114_v48 = vrot.slane %v1767_v27, 4 }
 0x13b   :  { %v1248_v53 = vmul.f32 %v2432_v49, %v1230_v41  ;;  %v1216_v50 = vadd.f32 %v2410_v3, %v1161_v47  ;;  %v888_v51 = vrot.slane %v865_v31, 5  ;;  %v1113_v61 = vrot.slane %v1074_v33, 4 }
 0x13c   :  { %v1247_v18 = vmul.f32 %v2417_v35, %v1229_v58  ;;  %v1215_v14 = vadd.f32 %v2410_v3, %v1160_v46  ;;  %v923_v4 = vadd.f32 %v906_v57, %v2365_v38  ;;  %v1116_v24 = vrot.slane %v1770_v43, 4 }
 0x13d   :  { %v1773_v30 = vpop.f32.mrb[40].mxu0  ;;  %v1232_v63 = vmax.f32 %v1216_v50, 0.0  ;;  %v891_v8 = vsel %vm890_vm4, %v888_v51, %v889_v54  ;;  %v892_v9 = vsel %vm890_vm4, %v887_v56, %v888_v51  ;;  %v1124_v12 = vsel %vm1119_vm5, %v1113_v61, %v1114_v48 }
 0x13e   :  { %v1278_v32 = vmax.f32 %v1247_v18, %v1248_v53  ;;  %v1231_v55 = vmax.f32 %v1215_v14, 0.0  ;;  %v1094_v0 = vpop.f32.mrb[41].mxu0  ;;  %v937_v62 = vadd.f32 %v892_v9, %v2378_v45  ;;  %v938_v10 = vadd.f32 %v891_v8, %v2380_v60 }
 0x13f   :  { %v1250_v23 = vmul.f32 %v2432_v49, %v1232_v63  ;;  %v1125_v38 = vsel %vm1119_vm5, %v1112_v1, %v1113_v61  ;;  %v1163_v20 = vadd.f32 %v1124_v12, %v934_v17  ;;  %v1115_v5 = vrot.slane %v1084_v39, 4 }
 0x140   :  { %v1249_v13 = vmul.f32 %v2417_v35, %v1231_v55  ;;  %v1162_v21 = vadd.f32 %v1125_v38, %v933_v7  ;;  %v1208_v56 = vadd.f32 %v2410_v3, %v2395_v2  ;;  %v1118_v25 = vrot.slane %v1773_v30, 4 }
 0x141   :  { %v1218_v27 = vadd.f32 %v2410_v3, %v1163_v20  ;;  %v1122_v60 = vsel %vm1119_vm5, %v1115_v5, %v1116_v24  ;;  %v1123_v28 = vsel %vm1119_vm5, %v1114_v48, %v1115_v5  ;;  %v1117_v31 = vrot.slane %v1094_v0, 4 }
 0x142   :  { %v1285_v19 = vmax.f32 %v1249_v13, %v1250_v23  ;;  %v1217_v45 = vadd.f32 %v2410_v3, %v1162_v21  ;;  %v1164_v1 = vadd.f32 %v1123_v28, %v935_v36  ;;  %v1165_v7 = vadd.f32 %v1122_v60, %v936_v37 }
 0x143   :  { %v1234_v29 = vmax.f32 %v1218_v27, 0.0  ;;  %v1135_v2 = vsel %vm1119_vm5, %v1118_v25, %v1103_v52  ;;  %v1224_v33 = vmax.f32 %v1208_v56, 0.0  ;;  %v1265_v34 = vrot.slane %v2447_v11, 4 }
 0x144   :  { %v1233_v17 = vmax.f32 %v1217_v45, 0.0  ;;  %v1219_v16 = vadd.f32 %v2410_v3, %v1164_v1  ;;  %v1220_v59 = vadd.f32 %v2410_v3, %v1165_v7  ;;  %v1152_v36 = vadd.f32 %v1135_v2, %v923_v4 }
 0x145   :  { %v1252_v15 = vmul.f32 %v2432_v49, %v1234_v29  ;;  %v1120_v37 = vsel %vm1119_vm5, %v1117_v31, %v1118_v25  ;;  %v1272_v44 = vrot.slane %v2463_v22, 4  ;;  %v1279_v41 = vrot.slane %v1278_v32, 4 }
 0x146   :  { %v1251_v26 = vmul.f32 %v2417_v35, %v1233_v17  ;;  %v1235_v52 = vmax.f32 %v1219_v16, 0.0  ;;  %v1121_v42 = vsel %vm1119_vm5, %v1116_v24, %v1117_v31  ;;  %v1236_v43 = vmax.f32 %v1220_v59, 0.0 }
 0x147   :  { %v1207_v58 = vadd.f32 %v2410_v3, %v1152_v36  ;;  %v1166_v46 = vadd.f32 %v1121_v42, %v937_v62  ;;  %v1266_v47 = vmax.f32 %v2447_v11, %v1265_v34  ;;  %v1286_v39 = vrot.slane %v1285_v19, 4 }
 0x148   :  { %v1292_v40 = vmax.f32 %v1251_v26, %v1252_v15  ;;  %v1253_v53 = vmul.f32 %v2417_v35, %v1235_v52  ;;  %v1167_v54 = vadd.f32 %v1120_v37, %v938_v10  ;;  %v1254_v14 = vmul.f32 %v2432_v49, %v1236_v43 }
 0x149   :  { %v1223_v50 = vmax.f32 %v1207_v58, 0.0  ;;  %v1221_v57 = vadd.f32 %v2410_v3, %v1166_v46  ;;  %v1242_v6 = vmul.f32 %v2432_v49, %v1224_v33  ;;  %v1273_v48 = vmax.f32 %v2463_v22, %v1272_v44 }
 0x14a   :  { %v1293_v18 = vrot.slane %v1292_v40, 4  ;;  %v1222_v51 = vadd.f32 %v2410_v3, %v1167_v54  ;;  %v1280_v61 = vmax.f32 %v1278_v32, %v1279_v41  ;;  %v1299_v30 = vmax.f32 %v1253_v53, %v1254_v14  ;;  %v1526_v54 = vld [vmem:[%s2543_s5] ss:$0 sm:$0xff] }
 0x14b   :  { %v1241_v11 = vmul.f32 %v2417_v35, %v1223_v50  ;;  %v1237_v55 = vmax.f32 %v1221_v57, 0.0  ;;  %v1267_v63 = vrot.slane %v1266_v47, 2  ;;  %v1287_v0 = vmax.f32 %v1285_v19, %v1286_v39 }
 0x14c   :  { %v1238_v4 = vmax.f32 %v1222_v51, 0.0  ;;  %v1294_v8 = vmax.f32 %v1292_v40, %v1293_v18  ;;  %v1300_v9 = vrot.slane %v1299_v30, 4  ;;  %v1274_v62 = vrot.slane %v1273_v48, 2 }
 0x14d   :  { %v1257_v13 = vmax.f32 %v1241_v11, %v1242_v6  ;;  %v1255_v23 = vmul.f32 %v2417_v35, %v1237_v55  ;;  %v1281_v12 = vrot.slane %v1280_v61, 2  ;;  %v1288_v3 = vrot.slane %v1287_v0, 2 }
 0x14e   :  { %v1256_v10 = vmul.f32 %v2432_v49, %v1238_v4  ;;  %v1301_v22 = vmax.f32 %v1299_v30, %v1300_v9  ;;  %v1268_v20 = vmax.f32 %v1266_v47, %v1267_v63  ;;  %v1295_v21 = vrot.slane %v1294_v8, 2 }
 0x14f   :  { %v1258_v38 = vrot.slane %v1257_v13, 4  ;;  %v1275_v5 = vmax.f32 %v1273_v48, %v1274_v62  ;;  %v1282_v27 = vmax.f32 %v1280_v61, %v1281_v12  ;;  %v1289_v45 = vmax.f32 %v1287_v0, %v1288_v3 }
 0x150   :  { %v1306_v32 = vmax.f32 %v1255_v23, %v1256_v10  ;;  %v1302_v19 = vrot.slane %v1301_v22, 2  ;;  %v1269_v28 = vrot.slane %v1268_v20, 1  ;;  %v1296_v35 = vmax.f32 %v1294_v8, %v1295_v21 }
 0x151   :  { %v1259_v24 = vmax.f32 %v1257_v13, %v1258_v38  ;;  %v1276_v1 = vrot.slane %v1275_v5, 1  ;;  %v1283_v7 = vrot.slane %v1282_v27, 1  ;;  %v1290_v31 = vrot.slane %v1289_v45, 1 }
 0x152   :  { %v1307_v56 = vrot.slane %v1306_v32, 4  ;;  %v1303_v49 = vmax.f32 %v1301_v22, %v1302_v19  ;;  %v1270_v34 = vmax.f32 %v1268_v20, %v1269_v28  ;;  %v1297_v16 = vrot.slane %v1296_v35, 1 }
 0x153   :  { %v1260_v25 = vrot.slane %v1259_v24, 2  ;;  %v1277_v26 = vmax.f32 %v1275_v5, %v1276_v1  ;;  %v1284_v36 = vmax.f32 %v1282_v27, %v1283_v7  ;;  %v1291_v41 = vmax.f32 %v1289_v45, %v1290_v31 }
 0x154   :  { %v1308_v60 = vmax.f32 %v1306_v32, %v1307_v56  ;;  %v1304_v59 = vrot.slane %v1303_v49, 1  ;;  %v1298_v42 = vmax.f32 %v1296_v35, %v1297_v16 }
 0x155   :  { %v1261_v29 = vmax.f32 %v1259_v24, %v1260_v25 }
 0x156   :  { %v1309_v17 = vrot.slane %v1308_v60, 2  ;;  %v1305_v43 = vmax.f32 %v1303_v49, %v1304_v59 }
 0x157   :  { %v1262_v2 = vrot.slane %v1261_v29, 1 }
 0x158   :  { %v1310_v33 = vmax.f32 %v1308_v60, %v1309_v17 }
 0x159   :  { %v1263_v15 = vmax.f32 %v1261_v29, %v1262_v2 }
 0x15a   :  { %v1311_v37 = vrot.slane %v1310_v33, 1 }
 0x15b   :  { %v1345_v44 = vsel %vm1344_vm6, %v1270_v34, %v1263_v15 }
 0x15c   :  { %v1347_v52 = vsel %vm1346_vm7, %v1277_v26, %v1345_v44  ;;  %v1312_v46 = vmax.f32 %v1310_v33, %v1311_v37 }
 0x15d   :  { %v1349_v40 = vsel %vm1348_vm8, %v1284_v36, %v1347_v52 }
 0x15e   :  { %v1351_v58 = vsel %vm1350_vm9, %v1291_v41, %v1349_v40 }
 0x15f   :  { %v1353_v47 = vsel %vm1352_vm10, %v1298_v42, %v1351_v58 }
 0x160   :  { %v1355_v39 = vsel %vm1354_vm11, %v1305_v43, %v1353_v47 }
 0x161   :  { %v1357_v53 = vsel %vm1356_vm12, %v1312_v46, %v1355_v39 }
 0x162   :  { %1807 = vmatmul.mubr.f32.vlgmr.msra.gmra.mrb[38].mxu1 %v1357_v53 }
 0x235   :  { %v1425_v18 = vpop.f32.mrb[38].mxu1 }
 0x236   :  { %v1426_v14 = vadd.f32 %v1526_v54, %v1425_v18  ;;  %v1808_v50 = vpop.f32.mrb[39].mxu1 }
 0x238   :  { %1429 = vst [vmem:[#allocation6] sm:$0xff] %v1426_v14 }
 0x239   :  { %1895 = shalt.err (!%p1892_p12)
}
 0x23a   :  { %s1896_s8 = scalar_lea.hbm %s2544_s6, 128 }
 0x23b   :  { %p1897_p13 = scmp.ne.s32.totalorder %s2544_s6, %s1896_s8  ;;  %p1900_p0 = scmp.lt.u32.totalorder %s1896_s8, %s2544_s6 }
 0x23d   :  { %p1902_p1 = pnand %p1900_p0, %p1897_p13 }
 0x23f   :  { %1905 = shalt.err (!%p1902_p1)
}
 0x240   :  { %1439 = dma.vmem_to_hbm [thread:$0]  %s1437_s28, 128, %s2544_s6, [#allocation5]  }
 0x241   :  { %1908 = dma.done.wait [#allocation5], 128  }
 0x242   :  { %1909 = vsyncadd [#allocation5], 4294967168 }
 0x243   :  { %1443 = vsyncpa [#allocation4], 1 }
 0x244   :  { %1444 = vsyncpa [#allocation5], 1 }

// kernel: tpu_custom_call.1
= control target key start
LH: loop header
LB: loop body
LE: loop exit
PB: predicated region body
PF: predicated region fallthrough
CT: control target
= control target key end

     0   :  { %11 = vsyncpa [#allocation4], 0  ;;  %s2598_s0 = inlined_call_operand.vmem [shape: f32[128,16], index: 0, kind: input, shape index: {}]   ;;  %s2599_s1 = inlined_call_operand.hbm [shape: f32[5,16,128], index: 1, kind: input, shape index: {}]   ;;  %s2600_s2 = inlined_call_operand.vmem [shape: f32[1,128], index: 2, kind: input, shape index: {}]   ;;  %s2601_s3 = inlined_call_operand.vmem [shape: f32[16,128], index: 3, kind: input, shape index: {}]   ;;  %s2602_s4 = inlined_call_operand.vmem [shape: f32[128,128], index: 4, kind: input, shape index: {}]   ;;  %s2603_s5 = inlined_call_operand.vmem [shape: f32[1,128], index: 5, kind: input, shape index: {}]   ;;  %s2604_s6 = inlined_call_operand.hbm [shape: f32[8,128], index: 6, kind: output, shape index: {}]  }
   0x1   :  { %12 = vsyncpa [#allocation5], 0  ;;  %s2040_s21 = smov [#allocation3]   ;;  %s1992_s25 = scalar_lea.hbm %s2599_s1, 1280 }
   0x2   :  { %s20_s22 = sshll.u32 %s2040_s21, 4  ;;  %p1993_p0 = scmp.ne.s32.totalorder %s2599_s1, %s1992_s25  ;;  %s21_s22 = int_to_ptr.vmem [resolvable:$true] %s20_s22 }
   0x3   :  { %p1996_p1 = scmp.lt.u32.totalorder %s1992_s25, %s2599_s1 }
   0x5   :  { %p1998_p2 = pnand %p1996_p1, %p1993_p0 }
   0x7   :  { %2001 = shalt.err (!%p1998_p2)
}
   0x8   :  { %s2002_s30 = scalar_lea.vmem %s21_s22, 1280  ;;  %p2007_p4 = scmp.lt.s32.totalorder %s21_s22, %s21_s22 }
   0x9   :  { %p2003_p3 = scmp.ne.s32.totalorder %s21_s22, %s2002_s30  ;;  %p2008_p5 = scmp.lt.s32.totalorder %s2002_s30, %s2002_s30 }
   0xb   :  { %p2009_p6 = por %p2008_p5, %p2007_p4 }
   0xd   :  { %p2010_p7 = pnand %p2009_p6, %p2003_p3 }
   0xf   :  { %2013 = shalt.err (!%p2010_p7)
}
  0x10   :  { %s2041_s7 = smov 128   ;;  %s2042_s8 = smov 8  }
  0x11   :  { %26 = dma.hbm_to_vmem [thread:$0]  %s2599_s1, 1280, %s21_s22, [#allocation4], %s2041_s7, %s2041_s7, %s2042_s8  }
  0x12   :  { %2036 = dma.done.wait [#allocation4], 1280  }
  0x13   :  { %2037 = vsyncadd [#allocation4], 4294966016  ;;  %vm56_vm0 = vcmask 130048   ;;  %v54_v0 = vld [vmem:[#allocation3] sm:$0xff]  ;;  %v55_v1 = vld [vmem:[#allocation3 + $0x8] sm:$0xff]  ;;  %v2043_v34 = vmov 0.0|0.0  }
  0x14   :  { %v2097_v2 = vld [vmem:[%s2598_s0] sm:$0xff]  ;;  %v1939_v3 = vpack.c.bf16 %v55_v1, %v54_v0  ;;  %v2104_v4 = vld [vmem:[%s2598_s0 + $0x50] sm:$0xff]  ;;  %v530_v6 = vld [vmem:[#allocation3 + $0x28] sm:$0xff]  ;;  %vm2044_vm1 = vmmov 0   ;;  %v2045_v55 = vmov 0.0   ;;  %vm432_vm2 = vcmask 1040384  }
  0x15   :  { %1768 = vmatprep.mubr.msk.f32.mxu0 %vm56_vm0, %v2097_v2  ;;  %1783 = vmatprep.mubr.msk.f32.mxu1 %vm56_vm0, %v2104_v4  ;;  %v529_v5 = vld [vmem:[#allocation3 + $0x20] sm:$0xff]  ;;  %v2111_v7 = vld [vmem:[%s2598_s0 + $0x8] sm:$0xff]  ;;  %v2116_v9 = vld [vmem:[%s2598_s0 + $0x58] sm:$0xff]  ;;  %vm694_vm3 = vcmask 1041408   ;;  %vm956_vm4 = vcmask 1042432   ;;  %vm1218_vm5 = vcmask 1043456  }
  0x16   :  { %1940 = vmatprep.subr.bf16.mxu0 %v1939_v3  ;;  %1983 = vmatprep.subr.bf16.mxu1 %v1939_v3  ;;  %v1947_v8 = vpack.c.bf16 %v530_v6, %v529_v5  ;;  %v267_v10 = vld [vmem:[#allocation3 + $0x10] sm:$0xff]  ;;  %v268_v11 = vld [vmem:[#allocation3 + $0x18] sm:$0xff]  ;;  %v2126_v14 = vld [vmem:[%s2598_s0 + $0x60] sm:$0xff]  ;;  %vm1474_vm6 = vcmask 1041409   ;;  %vm1476_vm7 = vcmask 1042434   ;;  %vm1478_vm8 = vcmask 1043459  }
  0x17   :  { %1942 = vmatpush3.bf16.msra.mxu0 %v1939_v3  ;;  %1984 = vmatpush3.bf16.msra.mxu1 %v1939_v3  ;;  %v2121_v12 = vld [vmem:[%s2598_s0 + $0x10] sm:$0xff]  ;;  %v1943_v13 = vpack.c.bf16 %v268_v11, %v267_v10  ;;  %v2135_v15 = vld [vmem:[%s2598_s0 + $0x18] sm:$0xff]  ;;  %v2142_v18 = vld [vmem:[%s2598_s0 + $0x68] sm:$0xff]  ;;  %vm1480_vm9 = vcmask 1044484   ;;  %vm1482_vm10 = vcmask 1045509   ;;  %vm1484_vm11 = vcmask 1046534  }
  0x18   :  { %1948 = vmatprep.subr.bf16.mxu0 %v1947_v8  ;;  %v791_v16 = vld [vmem:[#allocation3 + $0x30] sm:$0xff]  ;;  %v792_v17 = vld [vmem:[#allocation3 + $0x38] sm:$0xff]  ;;  %v1053_v19 = vld [vmem:[#allocation3 + $0x40] sm:$0xff]  ;;  %vm1486_vm12 = vcmask 1047559   ;;  %s2046_s27 = smov [#allocation6]  }
  0x19   :  { %v1054_v20 = vld [vmem:[#allocation3 + $0x48] sm:$0xff]  ;;  %1944 = vmatprep.subr.bf16.mxu1 %v1943_v13  ;;  %v2149_v21 = vld [vmem:[%s2598_s0 + $0x20] sm:$0xff]  ;;  %v2154_v22 = vld [vmem:[%s2598_s0 + $0x70] sm:$0xff]  ;;  %v1951_v23 = vpack.c.bf16 %v792_v17, %v791_v16  ;;  %s1566_s28 = sshll.u32 %s2046_s27, 4  ;;  %s1567_s28 = int_to_ptr.vmem [resolvable:$true] %s1566_s28 }
  0x1a   :  { %1769 = vmatmul.mubr.msk.f32.vlgmr.msra.gmra.mrb[0].mxu0 %vm56_vm0, %v2111_v7  ;;  %1784 = vmatmul.mubr.msk.f32.vlgmr.msra.gmra.mrb[0].mxu1 %vm56_vm0, %v2116_v9  ;;  %v1955_v24 = vpack.c.bf16 %v1054_v20, %v1053_v19  ;;  %v2167_v25 = vld [vmem:[%s2598_s0 + $0x28] sm:$0xff]  ;;  %v2172_v26 = vld [vmem:[%s2598_s0 + $0x78] sm:$0xff]  ;;  %v2177_v27 = vld [vmem:[%s2598_s0 + $0x30] sm:$0xff]  ;;  %s2014_s29 = scalar_lea.vmem %s1567_s28, 128  ;;  %p2019_p9 = scmp.lt.s32.totalorder %s1567_s28, %s1567_s28 }
  0x1b   :  { %1950 = vmatpush3.bf16.msra.mxu0 %v1947_v8  ;;  %1771 = vmatprep.mubr.msk.f32.mxu0 %vm56_vm0, %v2121_v12  ;;  %v45_v28 = vld [vmem:[%s2598_s0 + $0x38] sm:$0xff]  ;;  %v46_v29 = vld [vmem:[%s2598_s0 + $0x40] sm:$0xff]  ;;  %v47_v30 = vld [vmem:[%s2598_s0 + $0x48] sm:$0xff]  ;;  %p2015_p8 = scmp.ne.s32.totalorder %s1567_s28, %s2014_s29  ;;  %p2020_p10 = scmp.lt.s32.totalorder %s2014_s29, %s2014_s29 }
  0x1c   :  { %1786 = vmatprep.mubr.msk.f32.mxu1 %vm56_vm0, %v2126_v14  ;;  %1946 = vmatpush3.bf16.msra.mxu1 %v1943_v13  ;;  %v1443_v31 = vld [vmem:[%s2602_s4] sm:$0xff]  ;;  %v1444_v32 = vld [vmem:[%s2602_s4 + $0x8] sm:$0xff]  ;;  %v1445_v35 = vld [vmem:[%s2602_s4 + $0x10] sm:$0xff] }
  0x1d   :  { %1952 = vmatprep.subr.bf16.mxu1 %v1951_v23  ;;  %1956 = vmatprep.subr.bf16.mxu0 %v1955_v24  ;;  %v1960_v33 = vpack.c.bf16 %v1444_v32, %v1443_v31  ;;  %v1446_v36 = vld [vmem:[%s2602_s4 + $0x18] sm:$0xff]  ;;  %v1447_v38 = vld [vmem:[%s2602_s4 + $0x20] sm:$0xff]  ;;  %v1448_v39 = vld [vmem:[%s2602_s4 + $0x28] sm:$0xff]  ;;  %p2021_p11 = por %p2020_p10, %p2019_p9 }
  0x1e   :  { %1772 = vmatmul.mubr.msk.f32.gmra.mrb[2].mxu0 %vm56_vm0, %v2135_v15  ;;  %1787 = vmatmul.mubr.msk.f32.gmra.mrb[2].mxu1 %vm56_vm0, %v2142_v18  ;;  %v1963_v37 = vpack.c.bf16 %v1446_v36, %v1445_v35  ;;  %v1966_v40 = vpack.c.bf16 %v1448_v39, %v1447_v38  ;;  %v1449_v41 = vld [vmem:[%s2602_s4 + $0x30] sm:$0xff]  ;;  %v1450_v42 = vld [vmem:[%s2602_s4 + $0x38] sm:$0xff]  ;;  %v1451_v44 = vld [vmem:[%s2602_s4 + $0x40] sm:$0xff] }
  0x1f   :  { %1774 = vmatprep.mubr.msk.f32.mxu0 %vm56_vm0, %v2149_v21  ;;  %1789 = vmatprep.mubr.msk.f32.mxu1 %vm56_vm0, %v2154_v22  ;;  %v1969_v43 = vpack.c.bf16 %v1450_v42, %v1449_v41  ;;  %v1452_v45 = vld [vmem:[%s2602_s4 + $0x48] sm:$0xff]  ;;  %v1453_v47 = vld [vmem:[%s2602_s4 + $0x50] sm:$0xff]  ;;  %v1454_v48 = vld [vmem:[%s2602_s4 + $0x58] sm:$0xff]  ;;  %p2022_p12 = pnand %p2021_p11, %p2015_p8 }
  0x20   :  { %v1972_v46 = vpack.c.bf16 %v1452_v45, %v1451_v44  ;;  %v1975_v49 = vpack.c.bf16 %v1454_v48, %v1453_v47  ;;  %v1455_v50 = vld [vmem:[%s2602_s4 + $0x60] sm:$0xff]  ;;  %v1456_v51 = vld [vmem:[%s2602_s4 + $0x68] sm:$0xff]  ;;  %v1457_v53 = vld [vmem:[%s2602_s4 + $0x70] sm:$0xff] }
  0x21   :  { %v1978_v52 = vpack.c.bf16 %v1456_v51, %v1455_v50  ;;  %v1458_v54 = vld [vmem:[%s2602_s4 + $0x78] sm:$0xff] }
  0x22   :  { %1775 = vmatmul.mubr.msk.f32.gmra.mrb[4].mxu0 %vm56_vm0, %v2167_v25  ;;  %1790 = vmatmul.mubr.msk.f32.gmra.mrb[4].mxu1 %vm56_vm0, %v2172_v26  ;;  %v1981_v56 = vpack.c.bf16 %v1458_v54, %v1457_v53 }
  0x23   :  { %1777 = vmatprep.mubr.msk.f32.mxu0 %vm56_vm0, %v2177_v27  ;;  %1796 = vmatprep.mubr.msk.f32.mxu1 %vm56_vm0, %v2097_v2 }
  0x26   :  { %1778 = vmatmul.mubr.msk.f32.gmra.mrb[6].mxu0 %vm56_vm0, %v45_v28  ;;  %1797 = vmatmul.mubr.msk.f32.vlgmr.msra.gmra.mrb[6].mxu1 %vm56_vm0, %v2111_v7 }
  0x27   :  { %1780 = vmatprep.mubr.msk.f32.mxu0 %vm56_vm0, %v46_v29  ;;  %1799 = vmatprep.mubr.msk.f32.mxu1 %vm56_vm0, %v2121_v12 }
  0x28   :  { %1954 = vmatpush3.bf16.msra.mxu1 %v1951_v23 }
  0x29   :  { %1959 = vmatprep.subr.bf16.mxu1 %v2043_v34 }
  0x2a   :  { %1781 = vmatmul.mubr.msk.f32.gmra.mrb[8].mxu0 %vm56_vm0, %v47_v30  ;;  %1800 = vmatmul.mubr.msk.f32.gmra.mrb[8].mxu1 %vm56_vm0, %v2135_v15 }
  0x2b   :  { %1802 = vmatprep.mubr.msk.f32.mxu1 %vm56_vm0, %v2149_v21  ;;  %1824 = vmatprep.mubr.msk.f32.mxu0 %vm56_vm0, %v2097_v2 }
  0x2e   :  { %1803 = vmatmul.mubr.msk.f32.gmra.mrb[10].mxu1 %vm56_vm0, %v2167_v25  ;;  %1825 = vmatmul.mubr.msk.f32.vlgmr.msra.gmra.mrb[10].mxu0 %vm56_vm0, %v2111_v7 }
  0x2f   :  { %1958 = vmatpush3.bf16.msra.mxu0 %v1955_v24  ;;  %1805 = vmatprep.mubr.msk.f32.mxu1 %vm56_vm0, %v2177_v27 }
  0x30   :  { %1827 = vmatprep.mubr.msk.f32.mxu0 %vm56_vm0, %v2121_v12 }
  0x32   :  { %1806 = vmatmul.mubr.msk.f32.gmra.mrb[12].mxu1 %vm56_vm0, %v45_v28  ;;  %1828 = vmatmul.mubr.msk.f32.gmra.mrb[12].mxu0 %vm56_vm0, %v2135_v15 }
  0x33   :  { %1808 = vmatprep.mubr.msk.f32.mxu1 %vm56_vm0, %v46_v29  ;;  %1830 = vmatprep.mubr.msk.f32.mxu0 %vm56_vm0, %v2149_v21 }
  0x36   :  { %1809 = vmatmul.mubr.msk.f32.gmra.mrb[14].mxu1 %vm56_vm0, %v47_v30  ;;  %1831 = vmatmul.mubr.msk.f32.gmra.mrb[14].mxu0 %vm56_vm0, %v2167_v25 }
  0x37   :  { %1811 = vmatprep.mubr.msk.f32.mxu1 %vm56_vm0, %v2104_v4  ;;  %1833 = vmatprep.mubr.msk.f32.mxu0 %vm56_vm0, %v2177_v27 }
  0x3a   :  { %1812 = vmatmul.mubr.msk.f32.gmra.mrb[16].mxu1 %vm56_vm0, %v2116_v9  ;;  %1834 = vmatmul.mubr.msk.f32.gmra.mrb[16].mxu0 %vm56_vm0, %v45_v28 }
  0x3b   :  { %1814 = vmatprep.mubr.msk.f32.mxu1 %vm56_vm0, %v2126_v14  ;;  %1836 = vmatprep.mubr.msk.f32.mxu0 %vm56_vm0, %v46_v29 }
  0x3e   :  { %1815 = vmatmul.mubr.msk.f32.gmra.mrb[18].mxu1 %vm56_vm0, %v2142_v18  ;;  %1837 = vmatmul.mubr.msk.f32.gmra.mrb[18].mxu0 %vm56_vm0, %v47_v30 }
  0x3f   :  { %1817 = vmatprep.mubr.msk.f32.mxu1 %vm56_vm0, %v2154_v22  ;;  %1839 = vmatprep.mubr.msk.f32.mxu0 %vm56_vm0, %v2104_v4 }
  0x42   :  { %1818 = vmatmul.mubr.msk.f32.gmra.mrb[20].mxu1 %vm56_vm0, %v2172_v26  ;;  %1840 = vmatmul.mubr.msk.f32.gmra.mrb[20].mxu0 %vm56_vm0, %v2116_v9 }
  0x43   :  { %1842 = vmatprep.mubr.msk.f32.mxu0 %vm56_vm0, %v2126_v14  ;;  %1852 = vmatprep.mubr.msk.f32.mxu1 %vm56_vm0, %v2097_v2 }
  0x46   :  { %1843 = vmatmul.mubr.msk.f32.gmra.mrb[22].mxu0 %vm56_vm0, %v2142_v18  ;;  %1853 = vmatmul.mubr.msk.f32.vlgmr.msra.gmra.mrb[22].mxu1 %vm56_vm0, %v2111_v7 }
  0x47   :  { %1845 = vmatprep.mubr.msk.f32.mxu0 %vm56_vm0, %v2154_v22  ;;  %1855 = vmatprep.mubr.msk.f32.mxu1 %vm56_vm0, %v2121_v12 }
  0x48   :  { %1961 = vmatpush3.bf16.msra.mxu1 %v1960_v33 }
  0x49   :  { %1962 = vmatprep.subr.bf16.mxu1 %v2043_v34 }
  0x4a   :  { %1846 = vmatmul.mubr.msk.f32.gmra.mrb[24].mxu0 %vm56_vm0, %v2172_v26  ;;  %1856 = vmatmul.mubr.msk.f32.gmra.mrb[24].mxu1 %vm56_vm0, %v2135_v15 }
  0x4b   :  { %1858 = vmatprep.mubr.msk.f32.mxu1 %vm56_vm0, %v2149_v21  ;;  %1880 = vmatprep.mubr.msk.f32.mxu0 %vm56_vm0, %v2097_v2 }
  0x4c   :  { %1964 = vmatpush3.bf16.msra.mxu1 %v1963_v37 }
  0x4d   :  { %1965 = vmatprep.subr.bf16.mxu1 %v2043_v34 }
  0x4e   :  { %1859 = vmatmul.mubr.msk.f32.gmra.mrb[26].mxu1 %vm56_vm0, %v2167_v25  ;;  %1881 = vmatmul.mubr.msk.f32.vlgmr.msra.gmra.mrb[26].mxu0 %vm56_vm0, %v2111_v7 }
  0x4f   :  { %1861 = vmatprep.mubr.msk.f32.mxu1 %vm56_vm0, %v2177_v27  ;;  %1883 = vmatprep.mubr.msk.f32.mxu0 %vm56_vm0, %v2121_v12 }
  0x50   :  { %1967 = vmatpush3.bf16.msra.mxu1 %v1966_v40 }
  0x51   :  { %1968 = vmatprep.subr.bf16.mxu1 %v2043_v34 }
  0x52   :  { %1862 = vmatmul.mubr.msk.f32.gmra.mrb[28].mxu1 %vm56_vm0, %v45_v28  ;;  %1884 = vmatmul.mubr.msk.f32.gmra.mrb[28].mxu0 %vm56_vm0, %v2135_v15 }
  0x53   :  { %1864 = vmatprep.mubr.msk.f32.mxu1 %vm56_vm0, %v46_v29  ;;  %1886 = vmatprep.mubr.msk.f32.mxu0 %vm56_vm0, %v2149_v21 }
  0x54   :  { %1970 = vmatpush3.bf16.msra.mxu1 %v1969_v43 }
  0x55   :  { %1971 = vmatprep.subr.bf16.mxu1 %v2043_v34 }
  0x56   :  { %1865 = vmatmul.mubr.msk.f32.gmra.mrb[30].mxu1 %vm56_vm0, %v47_v30  ;;  %1887 = vmatmul.mubr.msk.f32.gmra.mrb[30].mxu0 %vm56_vm0, %v2167_v25 }
  0x57   :  { %1867 = vmatprep.mubr.msk.f32.mxu1 %vm56_vm0, %v2104_v4  ;;  %1889 = vmatprep.mubr.msk.f32.mxu0 %vm56_vm0, %v2177_v27 }
  0x58   :  { %1973 = vmatpush3.bf16.msra.mxu1 %v1972_v46 }
  0x59   :  { %1974 = vmatprep.subr.bf16.mxu1 %v2043_v34 }
  0x5a   :  { %1868 = vmatmul.mubr.msk.f32.gmra.mrb[32].mxu1 %vm56_vm0, %v2116_v9  ;;  %1890 = vmatmul.mubr.msk.f32.gmra.mrb[32].mxu0 %vm56_vm0, %v45_v28 }
  0x5b   :  { %1870 = vmatprep.mubr.msk.f32.mxu1 %vm56_vm0, %v2126_v14  ;;  %1892 = vmatprep.mubr.msk.f32.mxu0 %vm56_vm0, %v46_v29 }
  0x5c   :  { %1976 = vmatpush3.bf16.msra.mxu1 %v1975_v49 }
  0x5d   :  { %1977 = vmatprep.subr.bf16.mxu1 %v2043_v34 }
  0x5e   :  { %1871 = vmatmul.mubr.msk.f32.gmra.mrb[34].mxu1 %vm56_vm0, %v2142_v18  ;;  %1893 = vmatmul.mubr.msk.f32.gmra.mrb[34].mxu0 %vm56_vm0, %v47_v30 }
  0x5f   :  { %1873 = vmatprep.mubr.msk.f32.mxu1 %vm56_vm0, %v2154_v22  ;;  %1895 = vmatprep.mubr.msk.f32.mxu0 %vm56_vm0, %v2104_v4 }
  0x60   :  { %1979 = vmatpush3.bf16.msra.mxu1 %v1978_v52 }
  0x61   :  { %1980 = vmatprep.subr.bf16.mxu1 %v2043_v34 }
  0x62   :  { %1874 = vmatmul.mubr.msk.f32.gmra.mrb[36].mxu1 %vm56_vm0, %v2172_v26  ;;  %1896 = vmatmul.mubr.msk.f32.gmra.mrb[36].mxu0 %vm56_vm0, %v2116_v9 }
  0x63   :  { %1898 = vmatprep.mubr.msk.f32.mxu0 %vm56_vm0, %v2126_v14  ;;  %1936 = vmatprep.mubr.msk.f32.mxu1 %vm2044_vm1, %v2045_v55 }
  0x64   :  { %1982 = vmatpush3.bf16.msra.mxu1 %v1981_v56 }
  0x66   :  { %1899 = vmatmul.mubr.msk.f32.gmra.mrb[38].mxu0 %vm56_vm0, %v2142_v18 }
  0x67   :  { %1901 = vmatprep.mubr.msk.f32.mxu0 %vm56_vm0, %v2154_v22 }
  0x6a   :  { %1902 = vmatmul.mubr.msk.f32.gmra.mrb[40].mxu0 %vm56_vm0, %v2172_v26 }
  0xed   :  { %v1770_v57 = vpop.f32.mrb[0].mxu0  ;;  %v2361_v58 = vpop.f32.mrb[0].mxu1 }
  0xee   :  { %v2363_v59 = vpop.f32.mrb[1].mxu0  ;;  %v2365_v60 = vpop.f32.mrb[1].mxu1 }
  0xf1   :  { %v1773_v61 = vpop.f32.mrb[2].mxu0  ;;  %v2367_v62 = vpop.f32.mrb[2].mxu1 }
  0xf2   :  { %v181_v63 = vpop.f32.mrb[3].mxu0  ;;  %v2369_v0 = vpop.f32.mrb[3].mxu1 }
  0xf5   :  { %v1776_v1 = vpop.f32.mrb[4].mxu0  ;;  %v2371_v2 = vpop.f32.mrb[4].mxu1 }
  0xf6   :  { %v191_v3 = vpop.f32.mrb[5].mxu0  ;;  %v2373_v4 = vpop.f32.mrb[5].mxu1 }
  0xf9   :  { %v1779_v5 = vpop.f32.mrb[6].mxu0  ;;  %v1798_v6 = vpop.f32.mrb[6].mxu1 }
  0xfa   :  { %v434_v7 = vrot.slane %v1798_v6, 7  ;;  %v201_v8 = vpop.f32.mrb[7].mxu0  ;;  %v2375_v9 = vpop.f32.mrb[7].mxu1 }
  0xfb   :  { %v433_v10 = vrot.slane %v2375_v9, 7 }
  0xfd   :  { %v435_v11 = vsel %vm432_vm2, %v433_v10, %v434_v7  ;;  %v1782_v12 = vpop.f32.mrb[8].mxu0  ;;  %v1801_v13 = vpop.f32.mrb[8].mxu1 }
  0xfe   :  { %v497_v14 = vadd.f32 %v1770_v57, %v435_v11  ;;  %v438_v15 = vrot.slane %v1801_v13, 7  ;;  %v211_v16 = vpop.f32.mrb[9].mxu0  ;;  %v345_v17 = vpop.f32.mrb[9].mxu1 }
  0xff   :  { %v436_v18 = vrot.slane %v345_v17, 7 }
 0x101   :  { %v437_v19 = vsel %vm432_vm2, %v434_v7, %v436_v18  ;;  %v439_v20 = vsel %vm432_vm2, %v436_v18, %v438_v15  ;;  %v1804_v21 = vpop.f32.mrb[10].mxu1  ;;  %v1826_v22 = vpop.f32.mrb[10].mxu0 }
 0x102   :  { %v498_v23 = vadd.f32 %v437_v19, %v181_v63  ;;  %v499_v24 = vadd.f32 %v1773_v61, %v439_v20  ;;  %v442_v25 = vrot.slane %v1804_v21, 7  ;;  %v696_v26 = vrot.slane %v1826_v22, 6  ;;  %v355_v27 = vpop.f32.mrb[11].mxu1  ;;  %v2383_v28 = vpop.f32.mrb[11].mxu0 }
 0x103   :  { %v440_v29 = vrot.slane %v355_v27, 7  ;;  %v695_v30 = vrot.slane %v2383_v28, 6 }
 0x105   :  { %v441_v31 = vsel %vm432_vm2, %v438_v15, %v440_v29  ;;  %v443_v32 = vsel %vm432_vm2, %v440_v29, %v442_v25  ;;  %v697_v33 = vsel %vm694_vm3, %v695_v30, %v696_v26  ;;  %v1807_v34 = vpop.f32.mrb[12].mxu1  ;;  %v1829_v35 = vpop.f32.mrb[12].mxu0 }
 0x106   :  { %v500_v36 = vadd.f32 %v441_v31, %v191_v3  ;;  %v501_v37 = vadd.f32 %v1776_v1, %v443_v32  ;;  %v2391_v38 = vadd.f32 %v697_v33, %v497_v14  ;;  %v446_v39 = vrot.slane %v1807_v34, 7  ;;  %v365_v40 = vpop.f32.mrb[13].mxu1  ;;  %v607_v41 = vpop.f32.mrb[13].mxu0 }
 0x107   :  { %v700_v42 = vrot.slane %v1829_v35, 6  ;;  %v444_v43 = vrot.slane %v365_v40, 7  ;;  %v698_v44 = vrot.slane %v607_v41, 6 }
 0x109   :  { %v445_v45 = vsel %vm432_vm2, %v442_v25, %v444_v43  ;;  %v447_v46 = vsel %vm432_vm2, %v444_v43, %v446_v39  ;;  %v699_v47 = vsel %vm694_vm3, %v696_v26, %v698_v44  ;;  %v701_v48 = vsel %vm694_vm3, %v698_v44, %v700_v42  ;;  %v1810_v49 = vpop.f32.mrb[14].mxu1  ;;  %v1832_v50 = vpop.f32.mrb[14].mxu0 }
 0x10a   :  { %v502_v51 = vadd.f32 %v445_v45, %v201_v8  ;;  %v503_v52 = vadd.f32 %v1779_v5, %v447_v46  ;;  %v2397_v53 = vadd.f32 %v699_v47, %v498_v23  ;;  %v2399_v54 = vadd.f32 %v701_v48, %v499_v24  ;;  %v375_v55 = vpop.f32.mrb[15].mxu1  ;;  %v617_v56 = vpop.f32.mrb[15].mxu0 }
 0x10b   :  { %v450_v57 = vrot.slane %v1810_v49, 7  ;;  %v704_v61 = vrot.slane %v1832_v50, 6  ;;  %v448_v63 = vrot.slane %v375_v55, 7  ;;  %v702_v1 = vrot.slane %v617_v56, 6 }
 0x10d   :  { %v449_v3 = vsel %vm432_vm2, %v446_v39, %v448_v63  ;;  %v451_v6 = vsel %vm432_vm2, %v448_v63, %v450_v57  ;;  %v703_v7 = vsel %vm694_vm3, %v700_v42, %v702_v1  ;;  %v705_v11 = vsel %vm694_vm3, %v702_v1, %v704_v61  ;;  %v1813_v8 = vpop.f32.mrb[16].mxu1  ;;  %v1835_v5 = vpop.f32.mrb[16].mxu0 }
 0x10e   :  { %v504_v13 = vadd.f32 %v449_v3, %v211_v16  ;;  %v505_v14 = vadd.f32 %v1782_v12, %v451_v6  ;;  %v2405_v15 = vadd.f32 %v703_v7, %v500_v36  ;;  %v2407_v17 = vadd.f32 %v705_v11, %v501_v37  ;;  %v385_v18 = vpop.f32.mrb[17].mxu1  ;;  %v627_v19 = vpop.f32.mrb[17].mxu0 }
 0x10f   :  { %v454_v20 = vrot.slane %v1813_v8, 7  ;;  %v708_v21 = vrot.slane %v1835_v5, 6  ;;  %v452_v22 = vrot.slane %v385_v18, 7  ;;  %v706_v23 = vrot.slane %v627_v19, 6 }
 0x111   :  { %v453_v24 = vsel %vm432_vm2, %v450_v57, %v452_v22  ;;  %v455_v25 = vsel %vm432_vm2, %v452_v22, %v454_v20  ;;  %v707_v26 = vsel %vm694_vm3, %v704_v61, %v706_v23  ;;  %v709_v27 = vsel %vm694_vm3, %v706_v23, %v708_v21  ;;  %v1816_v16 = vpop.f32.mrb[18].mxu1  ;;  %v1838_v12 = vpop.f32.mrb[18].mxu0 }
 0x112   :  { %v506_v29 = vadd.f32 %v453_v24, %v2365_v60  ;;  %v507_v31 = vadd.f32 %v2361_v58, %v455_v25  ;;  %v2415_v32 = vadd.f32 %v707_v26, %v502_v51  ;;  %v2417_v33 = vadd.f32 %v709_v27, %v503_v52  ;;  %v395_v34 = vpop.f32.mrb[19].mxu1  ;;  %v637_v35 = vpop.f32.mrb[19].mxu0 }
 0x113   :  { %v458_v36 = vrot.slane %v1816_v16, 7  ;;  %v712_v37 = vrot.slane %v1838_v12, 6  ;;  %v456_v39 = vrot.slane %v395_v34, 7  ;;  %v710_v40 = vrot.slane %v637_v35, 6 }
 0x115   :  { %v457_v41 = vsel %vm432_vm2, %v454_v20, %v456_v39  ;;  %v459_v42 = vsel %vm432_vm2, %v456_v39, %v458_v36  ;;  %v711_v43 = vsel %vm694_vm3, %v708_v21, %v710_v40  ;;  %v713_v60 = vsel %vm694_vm3, %v710_v40, %v712_v37  ;;  %v1819_v44 = vpop.f32.mrb[20].mxu1  ;;  %v1841_v58 = vpop.f32.mrb[20].mxu0 }
 0x116   :  { %v508_v45 = vadd.f32 %v457_v41, %v2369_v0  ;;  %v509_v46 = vadd.f32 %v2367_v62, %v459_v42  ;;  %v2425_v47 = vadd.f32 %v711_v43, %v504_v13  ;;  %v2427_v48 = vadd.f32 %v713_v60, %v505_v14  ;;  %v405_v49 = vpop.f32.mrb[21].mxu1  ;;  %v647_v50 = vpop.f32.mrb[21].mxu0 }
 0x117   :  { %v415_v51 = vrot.slane %v1819_v44, 7  ;;  %v716_v52 = vrot.slane %v1841_v58, 6  ;;  %v460_v55 = vrot.slane %v405_v49, 7  ;;  %v714_v56 = vrot.slane %v647_v50, 6 }
 0x119   :  { %v479_v57 = vsel %vm432_vm2, %v415_v51, %v433_v10  ;;  %v461_v61 = vsel %vm432_vm2, %v458_v36, %v460_v55  ;;  %v462_v0 = vsel %vm432_vm2, %v460_v55, %v415_v51  ;;  %v715_v62 = vsel %vm694_vm3, %v712_v37, %v714_v56  ;;  %v1844_v63 = vpop.f32.mrb[22].mxu0  ;;  %v1854_v1 = vpop.f32.mrb[22].mxu1 }
 0x11a   :  { %v496_v3 = vadd.f32 %v479_v57, %v2363_v59  ;;  %v510_v6 = vadd.f32 %v461_v61, %v2373_v4  ;;  %v511_v7 = vadd.f32 %v2371_v2, %v462_v0  ;;  %v717_v11 = vsel %vm694_vm3, %v714_v56, %v716_v52  ;;  %v657_v8 = vpop.f32.mrb[23].mxu0  ;;  %v2439_v9 = vpop.f32.mrb[23].mxu1 }
 0x11b   :  { %v2441_v10 = vadd.f32 %v715_v62, %v506_v29  ;;  %v2443_v5 = vadd.f32 %v717_v11, %v507_v31  ;;  %v720_v13 = vrot.slane %v1844_v63, 6  ;;  %v958_v14 = vrot.slane %v1854_v1, 5 }
 0x11c   :  { %v718_v18 = vrot.slane %v657_v8, 6  ;;  %v957_v19 = vrot.slane %v2439_v9, 5 }
 0x11d   :  { %v1847_v20 = vpop.f32.mrb[24].mxu0  ;;  %v1857_v59 = vpop.f32.mrb[24].mxu1 }
 0x11e   :  { %v719_v4 = vsel %vm694_vm3, %v716_v52, %v718_v18  ;;  %v721_v2 = vsel %vm694_vm3, %v718_v18, %v720_v13  ;;  %v959_v21 = vsel %vm956_vm4, %v957_v19, %v958_v14  ;;  %v677_v22 = vrot.slane %v1847_v20, 6  ;;  %v667_v23 = vpop.f32.mrb[25].mxu0  ;;  %v869_v24 = vpop.f32.mrb[25].mxu1 }
 0x11f   :  { %v2451_v25 = vadd.f32 %v719_v4, %v508_v45  ;;  %v2453_v26 = vadd.f32 %v721_v2, %v509_v46  ;;  %v1021_v27 = vadd.f32 %v959_v21, %v2391_v38  ;;  %v962_v16 = vrot.slane %v1857_v59, 5  ;;  %v2492_v59 = vld [vmem:[%s2600_s2] ss:$0 sm:$0xff] }
 0x120   :  { %v741_v12 = vsel %vm694_vm3, %v677_v22, %v695_v30  ;;  %v722_v29 = vrot.slane %v667_v23, 6  ;;  %v960_v31 = vrot.slane %v869_v24, 5 }
 0x121   :  { %v2459_v34 = vadd.f32 %v741_v12, %v496_v3  ;;  %v1860_v35 = vpop.f32.mrb[26].mxu1  ;;  %v1882_v36 = vpop.f32.mrb[26].mxu0 }
 0x122   :  { %v723_v37 = vsel %vm694_vm3, %v720_v13, %v722_v29  ;;  %v724_v39 = vsel %vm694_vm3, %v722_v29, %v677_v22  ;;  %v961_v40 = vsel %vm956_vm4, %v958_v14, %v960_v31  ;;  %v963_v38 = vsel %vm956_vm4, %v960_v31, %v962_v16  ;;  %v879_v41 = vpop.f32.mrb[27].mxu1  ;;  %v2465_v42 = vpop.f32.mrb[27].mxu0 }
 0x123   :  { %v2467_v28 = vadd.f32 %v723_v37, %v510_v6  ;;  %v2469_v30 = vadd.f32 %v724_v39, %v511_v7  ;;  %v1022_v43 = vadd.f32 %v961_v40, %v2397_v53  ;;  %v1023_v60 = vadd.f32 %v963_v38, %v2399_v54 }
 0x124   :  { %v966_v44 = vrot.slane %v1860_v35, 5  ;;  %v1220_v58 = vrot.slane %v1882_v36, 4  ;;  %v964_v45 = vrot.slane %v879_v41, 5  ;;  %v1219_v46 = vrot.slane %v2465_v42, 4 }
 0x125   :  { %v1863_v49 = vpop.f32.mrb[28].mxu1  ;;  %v1885_v50 = vpop.f32.mrb[28].mxu0 }
 0x126   :  { %v965_v51 = vsel %vm956_vm4, %v962_v16, %v964_v45  ;;  %v967_v52 = vsel %vm956_vm4, %v964_v45, %v966_v44  ;;  %v1221_v55 = vsel %vm1218_vm5, %v1219_v46, %v1220_v58  ;;  %v970_v56 = vrot.slane %v1863_v49, 5  ;;  %v889_v57 = vpop.f32.mrb[29].mxu1  ;;  %v1131_v53 = vpop.f32.mrb[29].mxu0 }
 0x127   :  { %v1024_v54 = vadd.f32 %v965_v51, %v2405_v15  ;;  %v1025_v61 = vadd.f32 %v967_v52, %v2407_v17  ;;  %v2481_v0 = vadd.f32 %v1221_v55, %v1021_v27  ;;  %v1224_v62 = vrot.slane %v1885_v50, 4 }
 0x128   :  { %v968_v63 = vrot.slane %v889_v57, 5  ;;  %v1222_v1 = vrot.slane %v1131_v53, 4 }
 0x129   :  { %v1866_v3 = vpop.f32.mrb[30].mxu1  ;;  %v1888_v6 = vpop.f32.mrb[30].mxu0 }
 0x12a   :  { %v969_v7 = vsel %vm956_vm4, %v966_v44, %v968_v63  ;;  %v971_v11 = vsel %vm956_vm4, %v968_v63, %v970_v56  ;;  %v1223_v8 = vsel %vm1218_vm5, %v1220_v58, %v1222_v1  ;;  %v1225_v13 = vsel %vm1218_vm5, %v1222_v1, %v1224_v62  ;;  %v899_v14 = vpop.f32.mrb[31].mxu1  ;;  %v1141_v18 = vpop.f32.mrb[31].mxu0  ;;  %v2510_v58 = vld [vmem:[%s2601_s3 + $0x8] sm:$0xff] }
 0x12b   :  { %v1026_v15 = vadd.f32 %v969_v7, %v2415_v32  ;;  %v1027_v17 = vadd.f32 %v971_v11, %v2417_v33  ;;  %v1284_v20 = vadd.f32 %v1223_v8, %v1022_v43  ;;  %v1285_v4 = vadd.f32 %v1225_v13, %v1023_v60  ;;  %v2499_v32 = vld [vmem:[%s2601_s3] sm:$0xff] }
 0x12c   :  { %v974_v2 = vrot.slane %v1866_v3, 5  ;;  %v1228_v21 = vrot.slane %v1888_v6, 4  ;;  %v972_v22 = vrot.slane %v899_v14, 5  ;;  %v1226_v24 = vrot.slane %v1141_v18, 4 }
 0x12d   :  { %v1339_v23 = vadd.f32 %v2492_v59, %v1284_v20  ;;  %v1869_v27 = vpop.f32.mrb[32].mxu1  ;;  %v1891_v16 = vpop.f32.mrb[32].mxu0  ;;  %v1340_v12 = vadd.f32 %v2492_v59, %v1285_v4 }
 0x12e   :  { %v973_v33 = vsel %vm956_vm4, %v970_v56, %v972_v22  ;;  %v975_v29 = vsel %vm956_vm4, %v972_v22, %v974_v2  ;;  %v978_v31 = vrot.slane %v1869_v27, 5  ;;  %v909_v35 = vpop.f32.mrb[33].mxu1  ;;  %v1151_v36 = vpop.f32.mrb[33].mxu0  ;;  %v1227_v38 = vsel %vm1218_vm5, %v1224_v62, %v1226_v24 }
 0x12f   :  { %v1355_v37 = vmax.f32 %v1339_v23, 0.0  ;;  %v1028_v39 = vadd.f32 %v973_v33, %v2425_v47  ;;  %v1029_v40 = vadd.f32 %v975_v29, %v2427_v48  ;;  %v1356_v41 = vmax.f32 %v1340_v12, 0.0 }
 0x130   :  { %v1229_v43 = vsel %vm1218_vm5, %v1226_v24, %v1228_v21  ;;  %v1286_v60 = vadd.f32 %v1227_v38, %v1024_v54  ;;  %v1232_v44 = vrot.slane %v1891_v16, 4  ;;  %v976_v50 = vrot.slane %v909_v35, 5 }
 0x131   :  { %v1373_v45 = vmul.f32 %v2499_v32, %v1355_v37  ;;  %v1287_v49 = vadd.f32 %v1229_v43, %v1025_v61  ;;  %v1230_v51 = vrot.slane %v1151_v36, 4  ;;  %v1872_v47 = vpop.f32.mrb[34].mxu1  ;;  %v2513_v52 = vpop.f32.mrb[34].mxu0  ;;  %v1374_v48 = vmul.f32 %v2510_v58, %v1356_v41 }
 0x132   :  { %v1341_v55 = vadd.f32 %v2492_v59, %v1286_v60  ;;  %v982_v56 = vrot.slane %v1872_v47, 5  ;;  %v1236_v57 = vrot.slane %v2513_v52, 4  ;;  %v919_v53 = vpop.f32.mrb[35].mxu1  ;;  %v1161_v54 = vpop.f32.mrb[35].mxu0  ;;  %v977_v63 = vsel %vm956_vm4, %v974_v2, %v976_v50 }
 0x133   :  { %v1342_v62 = vadd.f32 %v2492_v59, %v1287_v49  ;;  %v979_v61 = vsel %vm956_vm4, %v976_v50, %v978_v31  ;;  %v1231_v1 = vsel %vm1218_vm5, %v1228_v21, %v1230_v51  ;;  %v2522_v3 = vmax.f32 %v1373_v45, %v1374_v48 }
 0x134   :  { %v1357_v6 = vmax.f32 %v1341_v55, 0.0  ;;  %v1030_v7 = vadd.f32 %v977_v63, %v2441_v10  ;;  %v1031_v11 = vadd.f32 %v979_v61, %v2443_v5  ;;  %v1233_v13 = vsel %vm1218_vm5, %v1230_v51, %v1232_v44 }
 0x135   :  { %v1358_v8 = vmax.f32 %v1342_v62, 0.0  ;;  %v1288_v14 = vadd.f32 %v1231_v1, %v1026_v15  ;;  %v980_v18 = vrot.slane %v919_v53, 5  ;;  %v1875_v20 = vpop.f32.mrb[36].mxu1  ;;  %v1897_v4 = vpop.f32.mrb[36].mxu0  ;;  %v1289_v22 = vadd.f32 %v1233_v13, %v1027_v17 }
 0x136   :  { %v1375_v2 = vmul.f32 %v2499_v32, %v1357_v6  ;;  %v1234_v23 = vrot.slane %v1161_v54, 4  ;;  %v929_v24 = vpop.f32.mrb[37].mxu1  ;;  %v1171_v21 = vpop.f32.mrb[37].mxu0  ;;  %v939_v45 = vrot.slane %v1875_v20, 5  ;;  %v1240_v48 = vrot.slane %v1897_v4, 4 }
 0x137   :  { %v1376_v27 = vmul.f32 %v2510_v58, %v1358_v8  ;;  %v1343_v16 = vadd.f32 %v2492_v59, %v1288_v14  ;;  %v981_v10 = vsel %vm956_vm4, %v978_v31, %v980_v18  ;;  %v983_v5 = vsel %vm956_vm4, %v980_v18, %v982_v56 }
 0x138   :  { %v1344_v12 = vadd.f32 %v2492_v59, %v1289_v22  ;;  %v1032_v15 = vadd.f32 %v981_v10, %v2451_v25  ;;  %v1033_v33 = vadd.f32 %v983_v5, %v2453_v26  ;;  %v1235_v35 = vsel %vm1218_vm5, %v1232_v44, %v1234_v23 }
 0x139   :  { %v2535_v29 = vmax.f32 %v1375_v2, %v1376_v27  ;;  %v1359_v17 = vmax.f32 %v1343_v16, 0.0  ;;  %v1237_v36 = vsel %vm1218_vm5, %v1234_v23, %v1236_v57  ;;  %v1900_v37 = vpop.f32.mrb[38].mxu0  ;;  %v1290_v41 = vadd.f32 %v1235_v35, %v1028_v39 }
 0x13a   :  { %v1360_v38 = vmax.f32 %v1344_v12, 0.0  ;;  %v1291_v43 = vadd.f32 %v1237_v36, %v1029_v40  ;;  %v1181_v31 = vpop.f32.mrb[39].mxu0  ;;  %v1003_v44 = vsel %vm956_vm4, %v939_v45, %v957_v19  ;;  %v984_v50 = vrot.slane %v929_v24, 5 }
 0x13b   :  { %v1377_v60 = vmul.f32 %v2499_v32, %v1359_v17  ;;  %v1345_v25 = vadd.f32 %v2492_v59, %v1290_v41  ;;  %v1238_v51 = vrot.slane %v1171_v21, 4  ;;  %v1020_v53 = vadd.f32 %v1003_v44, %v2459_v34 }
 0x13c   :  { %v1378_v49 = vmul.f32 %v2510_v58, %v1360_v38  ;;  %v1346_v26 = vadd.f32 %v2492_v59, %v1291_v43  ;;  %v985_v54 = vsel %vm956_vm4, %v982_v56, %v984_v50  ;;  %v986_v62 = vsel %vm956_vm4, %v984_v50, %v939_v45 }
 0x13d   :  { %v1903_v47 = vpop.f32.mrb[40].mxu0  ;;  %v1361_v39 = vmax.f32 %v1345_v25, 0.0  ;;  %v1034_v19 = vadd.f32 %v985_v54, %v2467_v28  ;;  %v1035_v61 = vadd.f32 %v986_v62, %v2469_v30  ;;  %v1239_v1 = vsel %vm1218_vm5, %v1236_v57, %v1238_v51 }
 0x13e   :  { %v1408_v52 = vmax.f32 %v1377_v60, %v1378_v49  ;;  %v1362_v40 = vmax.f32 %v1346_v26, 0.0  ;;  %v1191_v55 = vpop.f32.mrb[41].mxu0  ;;  %v1241_v8 = vsel %vm1218_vm5, %v1238_v51, %v1240_v48  ;;  %v1292_v13 = vadd.f32 %v1239_v1, %v1030_v7 }
 0x13f   :  { %v1379_v63 = vmul.f32 %v2499_v32, %v1361_v39  ;;  %v1293_v14 = vadd.f32 %v1241_v8, %v1031_v11  ;;  %v1244_v34 = vrot.slane %v1900_v37, 4  ;;  %v1242_v18 = vrot.slane %v1181_v31, 4 }
 0x140   :  { %v1380_v9 = vmul.f32 %v2510_v58, %v1362_v40  ;;  %v1338_v56 = vadd.f32 %v2492_v59, %v2481_v0  ;;  %v1347_v20 = vadd.f32 %v2492_v59, %v1292_v13  ;;  %v1201_v4 = vrot.slane %v1903_v47, 4 }
 0x141   :  { %v1348_v2 = vadd.f32 %v2492_v59, %v1293_v14  ;;  %v1243_v28 = vsel %vm1218_vm5, %v1240_v48, %v1242_v18  ;;  %v1245_v30 = vsel %vm1218_vm5, %v1242_v18, %v1244_v34  ;;  %v1246_v11 = vrot.slane %v1191_v55, 4 }
 0x142   :  { %v1415_v6 = vmax.f32 %v1379_v63, %v1380_v9  ;;  %v1363_v57 = vmax.f32 %v1347_v20, 0.0  ;;  %v1294_v22 = vadd.f32 %v1243_v28, %v1032_v15  ;;  %v1295_v24 = vadd.f32 %v1245_v30, %v1033_v33 }
 0x143   :  { %v1364_v23 = vmax.f32 %v1348_v2, 0.0  ;;  %v1265_v7 = vsel %vm1218_vm5, %v1201_v4, %v1219_v46  ;;  %v1354_v21 = vmax.f32 %v1338_v56, 0.0  ;;  %v1395_v0 = vrot.slane %v2522_v3, 4 }
 0x144   :  { %v1381_v27 = vmul.f32 %v2499_v32, %v1363_v57  ;;  %v1349_v16 = vadd.f32 %v2492_v59, %v1294_v22  ;;  %v1350_v5 = vadd.f32 %v2492_v59, %v1295_v24  ;;  %v1282_v12 = vadd.f32 %v1265_v7, %v1020_v53 }
 0x145   :  { %v1382_v10 = vmul.f32 %v2510_v58, %v1364_v23  ;;  %v1247_v15 = vsel %vm1218_vm5, %v1244_v34, %v1246_v11  ;;  %v1402_v33 = vrot.slane %v2535_v29, 4  ;;  %v1409_v42 = vrot.slane %v1408_v52, 4 }
 0x146   :  { %v1365_v17 = vmax.f32 %v1349_v16, 0.0  ;;  %v1248_v46 = vsel %vm1218_vm5, %v1246_v11, %v1201_v4  ;;  %v1366_v36 = vmax.f32 %v1350_v5, 0.0  ;;  %v1337_v37 = vadd.f32 %v2492_v59, %v1282_v12 }
 0x147   :  { %v1422_v35 = vmax.f32 %v1381_v27, %v1382_v10  ;;  %v1296_v38 = vadd.f32 %v1247_v15, %v1034_v19  ;;  %v1396_v41 = vmax.f32 %v2522_v3, %v1395_v0  ;;  %v1416_v43 = vrot.slane %v1415_v6, 4 }
 0x148   :  { %v1383_v31 = vmul.f32 %v2499_v32, %v1365_v17  ;;  %v1297_v60 = vadd.f32 %v1248_v46, %v1035_v61  ;;  %v1384_v49 = vmul.f32 %v2510_v58, %v1366_v36  ;;  %v1353_v25 = vmax.f32 %v1337_v37, 0.0 }
 0x149   :  { %v1423_v45 = vrot.slane %v1422_v35, 4  ;;  %v1351_v26 = vadd.f32 %v2492_v59, %v1296_v38  ;;  %v1372_v44 = vmul.f32 %v2510_v58, %v1354_v21  ;;  %v1403_v50 = vmax.f32 %v2535_v29, %v1402_v33 }
 0x14a   :  { %v1352_v51 = vadd.f32 %v2492_v59, %v1297_v60  ;;  %v1410_v47 = vmax.f32 %v1408_v52, %v1409_v42  ;;  %v1429_v39 = vmax.f32 %v1383_v31, %v1384_v49  ;;  %v1371_v3 = vmul.f32 %v2499_v32, %v1353_v25  ;;  %v1656_v60 = vld [vmem:[%s2603_s5] ss:$0 sm:$0xff] }
 0x14b   :  { %v1367_v40 = vmax.f32 %v1351_v26, 0.0  ;;  %v1397_v48 = vrot.slane %v1396_v41, 2  ;;  %v1417_v55 = vmax.f32 %v1415_v6, %v1416_v43  ;;  %v1424_v54 = vmax.f32 %v1422_v35, %v1423_v45 }
 0x14c   :  { %v1368_v53 = vmax.f32 %v1352_v51, 0.0  ;;  %v1430_v62 = vrot.slane %v1429_v39, 4  ;;  %v1387_v63 = vmax.f32 %v1371_v3, %v1372_v44  ;;  %v1404_v19 = vrot.slane %v1403_v50, 2 }
 0x14d   :  { %v1385_v9 = vmul.f32 %v2499_v32, %v1367_v40  ;;  %v1411_v1 = vrot.slane %v1410_v47, 2  ;;  %v1418_v59 = vrot.slane %v1417_v55, 2  ;;  %v1398_v13 = vmax.f32 %v1396_v41, %v1397_v48 }
 0x14e   :  { %v1386_v61 = vmul.f32 %v2510_v58, %v1368_v53  ;;  %v1431_v29 = vmax.f32 %v1429_v39, %v1430_v62  ;;  %v1388_v8 = vrot.slane %v1387_v63, 4  ;;  %v1425_v14 = vrot.slane %v1424_v54, 2 }
 0x14f   :  { %v1405_v18 = vmax.f32 %v1403_v50, %v1404_v19  ;;  %v1412_v20 = vmax.f32 %v1410_v47, %v1411_v1  ;;  %v1419_v2 = vmax.f32 %v1417_v55, %v1418_v59  ;;  %v1399_v30 = vrot.slane %v1398_v13, 1 }
 0x150   :  { %v1436_v52 = vmax.f32 %v1385_v9, %v1386_v61  ;;  %v1389_v34 = vmax.f32 %v1387_v63, %v1388_v8  ;;  %v1432_v6 = vrot.slane %v1431_v29, 2  ;;  %v1426_v32 = vmax.f32 %v1424_v54, %v1425_v14 }
 0x151   :  { %v1406_v22 = vrot.slane %v1405_v18, 1  ;;  %v1413_v24 = vrot.slane %v1412_v20, 1  ;;  %v1420_v11 = vrot.slane %v1419_v2, 1  ;;  %v1400_v0 = vmax.f32 %v1398_v13, %v1399_v30 }
 0x152   :  { %v1437_v56 = vrot.slane %v1436_v52, 4  ;;  %v1390_v4 = vrot.slane %v1389_v34, 2  ;;  %v1433_v58 = vmax.f32 %v1431_v29, %v1432_v6  ;;  %v1427_v16 = vrot.slane %v1426_v32, 1 }
 0x153   :  { %v1407_v10 = vmax.f32 %v1405_v18, %v1406_v22  ;;  %v1414_v12 = vmax.f32 %v1412_v20, %v1413_v24  ;;  %v1421_v42 = vmax.f32 %v1419_v2, %v1420_v11 }
 0x154   :  { %v1438_v28 = vmax.f32 %v1436_v52, %v1437_v56  ;;  %v1391_v57 = vmax.f32 %v1389_v34, %v1390_v4  ;;  %v1434_v5 = vrot.slane %v1433_v58, 1  ;;  %v1428_v46 = vmax.f32 %v1426_v32, %v1427_v16 }
 0x156   :  { %v1439_v23 = vrot.slane %v1438_v28, 2  ;;  %v1392_v7 = vrot.slane %v1391_v57, 1  ;;  %v1435_v36 = vmax.f32 %v1433_v58, %v1434_v5 }
 0x158   :  { %v1440_v21 = vmax.f32 %v1438_v28, %v1439_v23  ;;  %v1393_v27 = vmax.f32 %v1391_v57, %v1392_v7 }
 0x15a   :  { %v1441_v15 = vrot.slane %v1440_v21, 1  ;;  %v1475_v33 = vsel %vm1474_vm6, %v1400_v0, %v1393_v27 }
 0x15b   :  { %v1477_v17 = vsel %vm1476_vm7, %v1407_v10, %v1475_v33 }
 0x15c   :  { %v1479_v35 = vsel %vm1478_vm8, %v1414_v12, %v1477_v17  ;;  %v1442_v38 = vmax.f32 %v1440_v21, %v1441_v15 }
 0x15d   :  { %v1481_v37 = vsel %vm1480_vm9, %v1421_v42, %v1479_v35 }
 0x15e   :  { %v1483_v41 = vsel %vm1482_vm10, %v1428_v46, %v1481_v37 }
 0x15f   :  { %v1485_v43 = vsel %vm1484_vm11, %v1435_v36, %v1483_v41 }
 0x160   :  { %v1487_v31 = vsel %vm1486_vm12, %v1442_v38, %v1485_v43 }
 0x161   :  { %1937 = vmatmul.mubr.f32.vlgmr.msra.gmra.mrb[38].mxu1 %v1487_v31 }
 0x234   :  { %v1555_v45 = vpop.f32.mrb[38].mxu1 }
 0x235   :  { %v1556_v49 = vadd.f32 %v1656_v60, %v1555_v45  ;;  %v1938_v25 = vpop.f32.mrb[39].mxu1 }
 0x237   :  { %1559 = vst [vmem:[#allocation6] sm:$0xff] %v1556_v49 }
 0x238   :  { %2025 = shalt.err (!%p2022_p12)
}
 0x239   :  { %s2026_s8 = scalar_lea.hbm %s2604_s6, 128 }
 0x23a   :  { %p2027_p13 = scmp.ne.s32.totalorder %s2604_s6, %s2026_s8  ;;  %p2030_p0 = scmp.lt.u32.totalorder %s2026_s8, %s2604_s6 }
 0x23c   :  { %p2032_p1 = pnand %p2030_p0, %p2027_p13 }
 0x23e   :  { %2035 = shalt.err (!%p2032_p1)
}
 0x23f   :  { %1569 = dma.vmem_to_hbm [thread:$0]  %s1567_s28, 128, %s2604_s6, [#allocation5]  }
 0x240   :  { %2038 = dma.done.wait [#allocation5], 128  }
 0x241   :  { %2039 = vsyncadd [#allocation5], 4294967168 }
 0x242   :  { %1573 = vsyncpa [#allocation4], 1 }
 0x243   :  { %1574 = vsyncpa [#allocation5], 1 }

</bundles_post_ra>
